<compile_context>
chip_gen: v5e
topology: v5e:2x2
jax: 0.10.0
libtpu: 0.0.40
codegen_flags: <defaults>
</compile_context>

<pallas_src>
import math
from functools import partial

import jax
import jax.numpy as jnp
import numpy as np
from jax import lax
from jax.experimental import pallas as pl
from jax.experimental.pallas import tpu as pltpu

PI = float(math.pi)


def _fourier_kernel(x_ref, ls_ref, lc_ref, col_ref, sel_ref, out_ref, *, n):
    tk = x_ref.shape[1]
    two_n = 2 * n
    HI = lax.Precision.HIGHEST

    x = x_ref[...]                                              # (2, TK) lane-dense

    # Packed trig argument rows: [pi*i*x0 ; pi*i*x1], i = 1..n  ->  (2n, TK).
    xa = jnp.concatenate(
        [jnp.broadcast_to(x[0:1, :], (n, tk)),
         jnp.broadcast_to(x[1:2, :], (n, tk))], axis=0)
    za = col_ref[...] * xa                                      # col = pi*[1..n,1..n]

    # EUP: sin/cos(pi*z) only (full 8-sublane tiles).
    sa = jnp.sin(za)                                            # [S1_0 ; S1_1]
    ca = jnp.cos(za)                                            # [C1_0 ; C1_1]

    # VPU: 2*pi trig via double-angle.  Row i of t2/t3 holds sin/cos(2*pi*(i%n+1) *
    # x_{i//n}), i.e. component 1's multiplier sits in the TOP half -- the
    # anti-diagonal LHS layout below is built to match exactly that pairing.
    sc = sa * ca
    t2 = sc + sc                                                # [S2_1 ; S2_0]
    ss = sa * sa
    t3 = 1.0 - (ss + ss)                                        # [C2_1 ; C2_0]

    # MXU: every n-contraction as two packed matmuls.
    os_ = jnp.dot(ls_ref[...], sa, precision=HI,
                  preferred_element_type=jnp.float32)           # (Ms, TK)
    oc_ = jnp.dot(lc_ref[...], ca, precision=HI,
                  preferred_element_type=jnp.float32)           # (Mc, TK)

    u2g = os_[0:two_n]                    # [U2_1 ; U2_0]
    u3g = os_[two_n:2 * two_n]            # [U3_1 ; U3_0]
    u2sg = os_[2 * two_n:3 * two_n]       # 2*pi*j-scaled (off-diagonal terms)
    u3sg = os_[3 * two_n:4 * two_n]
    wag = os_[4 * two_n:4 * two_n + 2]    # (2, TK): sum_j wa_c * S1_c
    v2g = oc_[0:two_n]                    # pi*i-scaled (derivative / diagonal terms)
    v3g = oc_[two_n:2 * two_n]
    wadg = oc_[2 * two_n:2 * two_n + 2]   # (2, TK): sum_j pi*j*wa_c * C1_c

    # VPU: pair the contraction outputs with the swapped 2*pi trig tiles.
    py = u2g * t2 + u3g * t3              # y terms
    pd = v2g * t2 + v3g * t3              # diag(D@w) terms
    po = u2sg * t3 - u3sg * t2            # off-diag(D@w) terms

    # MXU: per-component row sums via a 0/1 selector LHS (row 0 -> component 0,
    # row 1 -> component 1); never a VPU add tree, never mixes components.
    sel = sel_ref[...]
    ry = jnp.dot(sel, py, precision=HI, preferred_element_type=jnp.float32)
    rd = jnp.dot(sel, pd, precision=HI, preferred_element_type=jnp.float32)
    ro = jnp.dot(sel, po, precision=HI, preferred_element_type=jnp.float32)

    y = x + ry[0:2] + wag                                       # (2, TK)
    a_diag = rd[0:2] + wadg                                     # [A00 ; A11]
    det = ((1.0 + a_diag[0:1, :]) * (1.0 + a_diag[1:2, :])
           - ro[0:1, :] * ro[1:2, :])                           # (1, TK)

    # Direct lane-dense row stores (no concat temp).
    out_ref[0:2, :] = y
    out_ref[2:3, :] = det


def _round_up(a, b):
    return ((a + b - 1) // b) * b


def fourier_layer_forward(x, weights, n, *, tk_max=2048):
    """Pallas implementation of FourierLayer(n).forward(x).

    x:       (K, 2) float32
    weights: (2 * (2*n^2 + n),) float32
    returns: (x + B @ w) of shape (K, 2), det(I + D @ w) of shape (K, 1)
    """
    assert x.ndim == 2 and x.shape[1] == 2
    K = x.shape[0]
    N = 2 * n * n + n
    assert weights.shape == (2 * N,)

    x = x.astype(jnp.float32)
    weights = weights.astype(jnp.float32)
    two_n = 2 * n

    nvec = jnp.arange(1, n + 1, dtype=jnp.float32)
    zero_nn = jnp.zeros((n, n), jnp.float32)
    zero_n = jnp.zeros((n,), jnp.float32)

    def blocks(w):
        wa = w[:n]
        w2t = w[n:n + n * n].reshape(n, n).T          # [j, i]
        w3t = w[n + n * n:].reshape(n, n).T
        return wa, w2t, w3t

    wa0, a2_0, a3_0 = blocks(weights[:N])
    wa1, a2_1, a3_1 = blocks(weights[N:])

    rs = (2.0 * PI * nvec)[:, None]      # output-frequency (j) scale: 2*pi*j on rows
    cs = (PI * nvec)[None, :]            # input-frequency (i) scale: pi*i on cols (d/dx)

    def anti(b0, b1):
        # Component 1's block on the TOP rows (contracts S1_1 via columns n:2n),
        # component 0's block on the BOTTOM rows -- matches the swapped-component
        # packing of the 2*pi trig tiles inside the kernel.
        top = jnp.concatenate([zero_nn, b1], axis=1)
        bot = jnp.concatenate([b0, zero_nn], axis=1)
        return jnp.concatenate([top, bot], axis=0)            # (2n, 2n)

    def two_rows(r0, r1):
        return jnp.stack([jnp.concatenate([r0, zero_n]),
                          jnp.concatenate([zero_n, r1])], axis=0)   # (2, 2n)

    ls = jnp.concatenate([
        anti(a2_0, a2_1),                    # U2   (y,          * S2)
        anti(a3_0, a3_1),                    # U3   (y,          * C2)
        anti(rs * a2_0, rs * a2_1),          # U2s  (off-diag A,  * C2)
        anti(rs * a3_0, rs * a3_1),          # U3s  (off-diag A,  * -S2)
        two_rows(wa0, wa1),                  # direct sum_j wa*S1 rows
    ], axis=0)                               # (8n+2, 2n)
    lc = jnp.concatenate([
        anti(a2_0 * cs, a2_1 * cs),          # V2   (diag A,      * S2)
        anti(a3_0 * cs, a3_1 * cs),          # V3   (diag A,      * C2)
        two_rows(PI * nvec * wa0, PI * nvec * wa1),   # direct sum_j pi*j*wa*C1 rows
    ], axis=0)                               # (4n+2, 2n)

    # Pad the MXU LHS slabs to a multiple of 8 rows (layout-friendly; the extra
    # rows are zero and their outputs are never read).
    ms = _round_up(8 * n + 2, 8)
    mc = _round_up(4 * n + 2, 8)
    ls = jnp.zeros((ms, two_n), jnp.float32).at[:8 * n + 2, :].set(ls)
    lc = jnp.zeros((mc, two_n), jnp.float32).at[:4 * n + 2, :].set(lc)

    # pi*[1..n, 1..n] column for the packed trig arguments.
    piccol = jnp.concatenate([PI * nvec, PI * nvec])[:, None]   # (2n, 1)

    # 0/1 selector for the per-component row sums (padded to 8 rows).
    sel = jnp.zeros((8, two_n), jnp.float32)
    sel = sel.at[0, n:].set(1.0)     # bottom half of the packed rows -> component 0
    sel = sel.at[1, :n].set(1.0)     # top half                       -> component 1

    # --- K tiling: lane-dense, ~2 large grid steps -------------------------------
    # v5e/v6e: few, large steps amortize the ~0.35us/step overhead.
    # v7x: an even number of >=2 "parallel" steps feeds both TensorCores.
    tk = min(int(tk_max), max(128, _round_up(-(-K // 2), 128)))
    Kp = _round_up(K, tk)
    if Kp // tk < 2:
        Kp = 2 * tk                  # padded lanes are zero -> benign values

    xt = jnp.zeros((2, Kp), jnp.float32).at[:, :K].set(x.T)

    out = pl.pallas_call(
        partial(_fourier_kernel, n=n),
        out_shape=jax.ShapeDtypeStruct((3, Kp), jnp.float32),
        grid_spec=pltpu.PrefetchScalarGridSpec(
            num_scalar_prefetch=0,
            grid=(Kp // tk,),
            in_specs=[
                pl.BlockSpec((2, tk), lambda i: (0, i)),
                pl.BlockSpec((ms, two_n), lambda i: (0, 0)),
                pl.BlockSpec((mc, two_n), lambda i: (0, 0)),
                pl.BlockSpec((two_n, 1), lambda i: (0, 0)),
                pl.BlockSpec((8, two_n), lambda i: (0, 0)),
            ],
            out_specs=pl.BlockSpec((3, tk), lambda i: (0, i)),
        ),
        compiler_params=pltpu.CompilerParams(
            dimension_semantics=("parallel",)),
    )(xt, ls, lc, piccol, sel)

    y = out[:2, :K].T
    J = out[2:3, :K].T
    return y, J


def ref_forward(x, w, n):
    """Pure-JAX transcription of the PyTorch forward (materialising B and D)."""
    K = x.shape[0]
    N = 2 * n * n + n
    nvec = jnp.arange(1, n + 1, dtype=x.dtype)
    z = x[:, :, None] * nvec                                    # (K, 2, n)
    S1 = jnp.sin(PI * z)
    S2 = jnp.sin(2 * PI * z)[:, ::-1, :]
    C1 = jnp.cos(PI * z)
    C2 = jnp.cos(2 * PI * z)[:, ::-1, :]

    up = lambda a: jnp.repeat(a, n, axis=-1)        # nearest upsample x n
    rep = lambda a: jnp.tile(a, (1, 1, n))          # .repeat(1, 1, n)

    T2 = up(S1) * rep(S2)
    T3 = up(S1) * rep(C2)

    B = jnp.zeros((K, 2, 2 * N), dtype=x.dtype)
    B = B.at[:, 0, :n].set(S1[:, 0, :])
    B = B.at[:, 1, N:N + n].set(S1[:, 1, :])
    B = B.at[:, 0, n:n + n * n].set(T2[:, 0, :])
    B = B.at[:, 1, N + n:N + n + n * n].set(T2[:, 1, :])
    B = B.at[:, 0, n + n * n:N].set(T3[:, 0, :])
    B = B.at[:, 1, N + n + n * n:].set(T3[:, 1, :])

    T11 = up(nvec * PI * C1) * rep(S2)
    T12 = up(S1) * rep(2 * PI * nvec * C2)
    T21 = up(nvec * PI * C1) * rep(C2)
    T22 = up(S1) * rep(-2 * PI * nvec * S2)

    D = jnp.zeros((K, 2, 2, 2 * N), dtype=x.dtype)
    D = D.at[:, 0, 0, :n].set(nvec * PI * C1[:, 0, :])
    D = D.at[:, 1, 1, N:N + n].set(nvec * PI * C1[:, 1, :])
    D = D.at[:, 0, 0, n:n + n * n].set(T11[:, 0, :])
    D = D.at[:, 0, 1, n:n + n * n].set(T12[:, 0, :])
    D = D.at[:, 1, 1, N + n:N + n + n * n].set(T11[:, 1, :])
    D = D.at[:, 1, 0, N + n:N + n + n * n].set(T12[:, 1, :])
    D = D.at[:, 0, 0, n + n * n:N].set(T21[:, 0, :])
    D = D.at[:, 0, 1, n + n * n:N].set(T22[:, 0, :])
    D = D.at[:, 1, 1, N + n + n * n:].set(T21[:, 1, :])
    D = D.at[:, 1, 0, N + n + n * n:].set(T22[:, 1, :])

    A = jnp.einsum('kabn,n->kab', D, w)
    y = x + jnp.einsum('kan,n->ka', B, w)
    M = jnp.eye(2, dtype=x.dtype)[None] + A
    J = (M[:, 0, 0] * M[:, 1, 1] - M[:, 1, 0] * M[:, 0, 1])[:, None]
    return y, J


if __name__ == "__main__":
    n = 4               # FourierLayer(n=4)
    N = 2 * n * n + n   # 36
    K = 2000            # batch of (K, 2) points (padded to 2048 -> 2 grid steps)

    key = jax.random.PRNGKey(0)
    kx, kw = jax.random.split(key)
    x = jax.random.uniform(kx, (K, 2), dtype=jnp.float32)
    init_scale = 0.1    # nonzero so the output is non-trivial (default 0.0 -> identity)
    weights = init_scale * jax.random.normal(kw, (2 * N,), dtype=jnp.float32)

    y, J = fourier_layer_forward(x, weights, n)
    jax.block_until_ready((y, J))

    y_ref, J_ref = ref_forward(x, weights, n)
    if not (np.allclose(np.asarray(y), np.asarray(y_ref), atol=2e-4)
            and np.allclose(np.asarray(J), np.asarray(J_ref), atol=2e-4)):
        raise AssertionError("Pallas kernel does not match reference")

    print("KERNEL_OK")
</pallas_src>

<mosaic_0001>
module attributes {stable_mosaic.version = 11 : i64} {
  func.func @_fourier_kernel(%arg0: i32, %arg1: memref<2x1024xf32, #tpu.memory_space<vmem>>, %arg2: memref<40x8xf32, #tpu.memory_space<vmem>>, %arg3: memref<24x8xf32, #tpu.memory_space<vmem>>, %arg4: memref<8x1xf32, #tpu.memory_space<vmem>>, %arg5: memref<8x8xf32, #tpu.memory_space<vmem>>, %arg6: memref<3x1024xf32, #tpu.memory_space<vmem>>) attributes {dimension_semantics = [#tpu.dimension_semantics<parallel>], iteration_bounds = array<i64: 2>, scalar_prefetch = 0 : i64, scratch_operands = 0 : i64, tpu.core_type = #tpu.core_type<tc>, window_params = [{transform_indices = @transform_0, window_bounds = array<i64: 2, 1024>}, {pipeline_mode = #tpu.pipeline_mode<synchronous>, transform_indices = @transform_1, window_bounds = array<i64: 40, 8>}, {pipeline_mode = #tpu.pipeline_mode<synchronous>, transform_indices = @transform_2, window_bounds = array<i64: 24, 8>}, {pipeline_mode = #tpu.pipeline_mode<synchronous>, transform_indices = @transform_3, window_bounds = array<i64: 8, 1>}, {pipeline_mode = #tpu.pipeline_mode<synchronous>, transform_indices = @transform_4, window_bounds = array<i64: 8, 8>}, {transform_indices = @transform_5, window_bounds = array<i64: 3, 1024>}]} {
    %c0 = arith.constant 0 : index
    %c0_0 = arith.constant 0 : index
    %0 = vector.load %arg1[%c0, %c0_0] : memref<2x1024xf32, #tpu.memory_space<vmem>>, vector<2x1024xf32>
    %1 = vector.extract_strided_slice %0 {offsets = [0, 0], sizes = [1, 1024], strides = [1, 1]} : vector<2x1024xf32> to vector<1x1024xf32>
    %2 = vector.shape_cast %1 : vector<1x1024xf32> to vector<1x1024xf32>
    %3 = vector.broadcast %2 : vector<1x1024xf32> to vector<4x1024xf32>
    %4 = vector.extract_strided_slice %0 {offsets = [1, 0], sizes = [1, 1024], strides = [1, 1]} : vector<2x1024xf32> to vector<1x1024xf32>
    %5 = vector.shape_cast %4 : vector<1x1024xf32> to vector<1x1024xf32>
    %6 = vector.broadcast %5 : vector<1x1024xf32> to vector<4x1024xf32>
    %7 = tpu.concatenate %3, %6 in 0 : vector<4x1024xf32>, vector<4x1024xf32> -> vector<8x1024xf32>
    %c0_1 = arith.constant 0 : index
    %c0_2 = arith.constant 0 : index
    %8 = vector.load %arg4[%c0_1, %c0_2] : memref<8x1xf32, #tpu.memory_space<vmem>>, vector<8x1xf32>
    %9 = vector.broadcast %8 : vector<8x1xf32> to vector<8x1024xf32>
    %10 = arith.mulf %9, %7 : vector<8x1024xf32>
    %11 = math.sin %10 : vector<8x1024xf32>
    %12 = math.cos %10 : vector<8x1024xf32>
    %13 = arith.mulf %11, %12 : vector<8x1024xf32>
    %14 = arith.addf %13, %13 : vector<8x1024xf32>
    %15 = arith.mulf %11, %11 : vector<8x1024xf32>
    %16 = arith.addf %15, %15 : vector<8x1024xf32>
    %cst = arith.constant 1.000000e+00 : f32
    %17 = vector.broadcast %cst : f32 to vector<8x1024xf32>
    %18 = arith.subf %17, %16 : vector<8x1024xf32>
    %c0_3 = arith.constant 0 : index
    %c0_4 = arith.constant 0 : index
    %19 = vector.load %arg2[%c0_3, %c0_4] : memref<40x8xf32, #tpu.memory_space<vmem>>, vector<40x8xf32>
    %cst_5 = arith.constant dense<0.000000e+00> : vector<40x1024xf32>
    %20 = tpu.matmul %19, %11, %cst_5 {dimension_numbers = #tpu.dot_dimension_numbers<[1], [0], [0], [1], [0, 0, 1, 1], [], []>, precision = #tpu.contract_precision<fp32>} : vector<40x8xf32>, vector<8x1024xf32>, vector<40x1024xf32> -> vector<40x1024xf32>
    %c0_6 = arith.constant 0 : index
    %c0_7 = arith.constant 0 : index
    %21 = vector.load %arg3[%c0_6, %c0_7] : memref<24x8xf32, #tpu.memory_space<vmem>>, vector<24x8xf32>
    %cst_8 = arith.constant dense<0.000000e+00> : vector<24x1024xf32>
    %22 = tpu.matmul %21, %12, %cst_8 {dimension_numbers = #tpu.dot_dimension_numbers<[1], [0], [0], [1], [0, 0, 1, 1], [], []>, precision = #tpu.contract_precision<fp32>} : vector<24x8xf32>, vector<8x1024xf32>, vector<24x1024xf32> -> vector<24x1024xf32>
    %23 = vector.extract_strided_slice %20 {offsets = [0, 0], sizes = [8, 1024], strides = [1, 1]} : vector<40x1024xf32> to vector<8x1024xf32>
    %24 = vector.extract_strided_slice %20 {offsets = [8, 0], sizes = [8, 1024], strides = [1, 1]} : vector<40x1024xf32> to vector<8x1024xf32>
    %25 = vector.extract_strided_slice %20 {offsets = [16, 0], sizes = [8, 1024], strides = [1, 1]} : vector<40x1024xf32> to vector<8x1024xf32>
    %26 = vector.extract_strided_slice %20 {offsets = [24, 0], sizes = [8, 1024], strides = [1, 1]} : vector<40x1024xf32> to vector<8x1024xf32>
    %27 = vector.extract_strided_slice %20 {offsets = [32, 0], sizes = [2, 1024], strides = [1, 1]} : vector<40x1024xf32> to vector<2x1024xf32>
    %28 = vector.extract_strided_slice %22 {offsets = [0, 0], sizes = [8, 1024], strides = [1, 1]} : vector<24x1024xf32> to vector<8x1024xf32>
    %29 = vector.extract_strided_slice %22 {offsets = [8, 0], sizes = [8, 1024], strides = [1, 1]} : vector<24x1024xf32> to vector<8x1024xf32>
    %30 = vector.extract_strided_slice %22 {offsets = [16, 0], sizes = [2, 1024], strides = [1, 1]} : vector<24x1024xf32> to vector<2x1024xf32>
    %31 = arith.mulf %23, %14 : vector<8x1024xf32>
    %32 = arith.mulf %24, %18 : vector<8x1024xf32>
    %33 = arith.addf %31, %32 : vector<8x1024xf32>
    %34 = arith.mulf %28, %14 : vector<8x1024xf32>
    %35 = arith.mulf %29, %18 : vector<8x1024xf32>
    %36 = arith.addf %34, %35 : vector<8x1024xf32>
    %37 = arith.mulf %25, %18 : vector<8x1024xf32>
    %38 = arith.mulf %26, %14 : vector<8x1024xf32>
    %39 = arith.subf %37, %38 : vector<8x1024xf32>
    %c0_9 = arith.constant 0 : index
    %c0_10 = arith.constant 0 : index
    %40 = vector.load %arg5[%c0_9, %c0_10] : memref<8x8xf32, #tpu.memory_space<vmem>>, vector<8x8xf32>
    %cst_11 = arith.constant dense<0.000000e+00> : vector<8x1024xf32>
    %41 = tpu.matmul %40, %33, %cst_11 {dimension_numbers = #tpu.dot_dimension_numbers<[1], [0], [0], [1], [0, 0, 1, 1], [], []>, precision = #tpu.contract_precision<fp32>} : vector<8x8xf32>, vector<8x1024xf32>, vector<8x1024xf32> -> vector<8x1024xf32>
    %cst_12 = arith.constant dense<0.000000e+00> : vector<8x1024xf32>
    %42 = tpu.matmul %40, %36, %cst_12 {dimension_numbers = #tpu.dot_dimension_numbers<[1], [0], [0], [1], [0, 0, 1, 1], [], []>, precision = #tpu.contract_precision<fp32>} : vector<8x8xf32>, vector<8x1024xf32>, vector<8x1024xf32> -> vector<8x1024xf32>
    %cst_13 = arith.constant dense<0.000000e+00> : vector<8x1024xf32>
    %43 = tpu.matmul %40, %39, %cst_13 {dimension_numbers = #tpu.dot_dimension_numbers<[1], [0], [0], [1], [0, 0, 1, 1], [], []>, precision = #tpu.contract_precision<fp32>} : vector<8x8xf32>, vector<8x1024xf32>, vector<8x1024xf32> -> vector<8x1024xf32>
    %44 = vector.extract_strided_slice %41 {offsets = [0, 0], sizes = [2, 1024], strides = [1, 1]} : vector<8x1024xf32> to vector<2x1024xf32>
    %45 = arith.addf %0, %44 : vector<2x1024xf32>
    %46 = arith.addf %45, %27 : vector<2x1024xf32>
    %47 = vector.extract_strided_slice %42 {offsets = [0, 0], sizes = [2, 1024], strides = [1, 1]} : vector<8x1024xf32> to vector<2x1024xf32>
    %48 = arith.addf %47, %30 : vector<2x1024xf32>
    %49 = vector.extract_strided_slice %48 {offsets = [0, 0], sizes = [1, 1024], strides = [1, 1]} : vector<2x1024xf32> to vector<1x1024xf32>
    %cst_14 = arith.constant 1.000000e+00 : f32
    %50 = vector.broadcast %cst_14 : f32 to vector<1x1024xf32>
    %51 = arith.addf %50, %49 : vector<1x1024xf32>
    %52 = vector.extract_strided_slice %48 {offsets = [1, 0], sizes = [1, 1024], strides = [1, 1]} : vector<2x1024xf32> to vector<1x1024xf32>
    %cst_15 = arith.constant 1.000000e+00 : f32
    %53 = vector.broadcast %cst_15 : f32 to vector<1x1024xf32>
    %54 = arith.addf %53, %52 : vector<1x1024xf32>
    %55 = arith.mulf %51, %54 : vector<1x1024xf32>
    %56 = vector.extract_strided_slice %43 {offsets = [0, 0], sizes = [1, 1024], strides = [1, 1]} : vector<8x1024xf32> to vector<1x1024xf32>
    %57 = vector.extract_strided_slice %43 {offsets = [1, 0], sizes = [1, 1024], strides = [1, 1]} : vector<8x1024xf32> to vector<1x1024xf32>
    %58 = arith.mulf %56, %57 : vector<1x1024xf32>
    %59 = arith.subf %55, %58 : vector<1x1024xf32>
    %c0_16 = arith.constant 0 : index
    %c0_17 = arith.constant 0 : index
    %60 = vector.load %arg6[%c0_16, %c0_17] : memref<3x1024xf32, #tpu.memory_space<vmem>>, vector<2x1024xf32>
    tpu.vector_store %arg6[%c0_16, %c0_17], %46 {strides = array<i32>} : memref<3x1024xf32, #tpu.memory_space<vmem>>, vector<2x1024xf32>,
    %c2 = arith.constant 2 : index
    %c0_18 = arith.constant 0 : index
    %61 = vector.load %arg6[%c2, %c0_18] : memref<3x1024xf32, #tpu.memory_space<vmem>>, vector<1x1024xf32>
    tpu.vector_store %arg6[%c2, %c0_18], %59 {strides = array<i32>} : memref<3x1024xf32, #tpu.memory_space<vmem>>, vector<1x1024xf32>,
    return
  }
  func.func @transform_0(%arg0: i32) -> (i32, i32) {
    %c0_i32 = arith.constant 0 : i32
    %c0_i32_0 = arith.constant 0 : i32
    return %c0_i32, %arg0 : i32, i32
  }
  func.func @transform_1(%arg0: i32) -> (i32, i32) {
    %c0_i32 = arith.constant 0 : i32
    %c0_i32_0 = arith.constant 0 : i32
    %c0_i32_1 = arith.constant 0 : i32
    return %c0_i32, %c0_i32_0 : i32, i32
  }
  func.func @transform_2(%arg0: i32) -> (i32, i32) {
    %c0_i32 = arith.constant 0 : i32
    %c0_i32_0 = arith.constant 0 : i32
    %c0_i32_1 = arith.constant 0 : i32
    return %c0_i32, %c0_i32_0 : i32, i32
  }
  func.func @transform_3(%arg0: i32) -> (i32, i32) {
    %c0_i32 = arith.constant 0 : i32
    %c0_i32_0 = arith.constant 0 : i32
    %c0_i32_1 = arith.constant 0 : i32
    return %c0_i32, %c0_i32_0 : i32, i32
  }
  func.func @transform_4(%arg0: i32) -> (i32, i32) {
    %c0_i32 = arith.constant 0 : i32
    %c0_i32_0 = arith.constant 0 : i32
    %c0_i32_1 = arith.constant 0 : i32
    return %c0_i32, %c0_i32_0 : i32, i32
  }
  func.func @transform_5(%arg0: i32) -> (i32, i32) {
    %c0_i32 = arith.constant 0 : i32
    %c0_i32_0 = arith.constant 0 : i32
    return %c0_i32, %arg0 : i32, i32
  }
}

</mosaic_0001>

<bundles_post_ra>
// kernel: tpu_custom_call.1
= control target key start
LH: loop header
LB: loop body
LE: loop exit
PB: predicated region body
PF: predicated region fallthrough
CT: control target
= control target key end

     0   :  { %10 = vsyncpa [#allocation3], 0  ;;  %s13832_s0 = inlined_call_operand.vmem [shape: f32[2,2048], index: 0, kind: input, shape index: {}]   ;;  %s13833_s1 = inlined_call_operand.vmem [shape: f32[40,8], index: 1, kind: input, shape index: {}]   ;;  %s13834_s2 = inlined_call_operand.vmem [shape: f32[24,8], index: 2, kind: input, shape index: {}]   ;;  %s13835_s3 = inlined_call_operand.vmem [shape: f32[8,1], index: 3, kind: input, shape index: {}]   ;;  %s13836_s4 = inlined_call_operand.vmem [shape: f32[8,8], index: 4, kind: input, shape index: {}]   ;;  %s13837_s5 = inlined_call_operand.hbm [shape: f32[3,2048], index: 5, kind: output, shape index: {}]  }
   0x1   :  { %12 = vsyncpa [#allocation3 + $0x1], 0  ;;  %s10722_s18 = smov 0   ;;  %s10724_s19 = smov 0  }
   0x2   :  { %s10726_s20 = smov 0   ;;  %s10728_s21 = smov 0  }
   0x3 LB: > { %s10743_s22 = sadd.s32 4294967295, %s10683_s21   ;;  %s10510_s23 = sadd.s32 4294967294, %s10683_s21   ;;  %s10683_s21 = sphi %s10728_s21, %s14232_s21   ;;  %s10679_s20 = sphi %s10726_s20, %s14231_s20   ;;  %s10675_s19 = sphi %s10724_s19, %s14230_s19   ;;  %s10671_s18 = sphi %s10722_s18, %s14229_s18  }
   0x4   : > { %s10747_s24 = sadd.s32 1, %s10683_s21   ;;  %s135_s25 = sadd.s32 1, %s10679_s20 }
   0x5   : > { %s132_s26 = ssub.s32 %s10683_s21, %s10747_s24  ;;  %p145_p0 = scmp.ne.s32.totalorder %s10679_s20, %s10675_s19 }
   0x6   : > { %p133_p1 = scmp.eq.s32.totalorder %s132_s26, 0  ;;  %p146_p2 = scmp.eq.s32.totalorder %s10743_s22, 1 }
   0x7   : > { %p151_p3 = scmp.ne.s32.totalorder %s10675_s19, %s10671_s18  ;;  %p152_p4 = scmp.eq.s32.totalorder %s10510_s23, 1 }
   0x8   : > { %s10758_s27 = scalar_select %p133_p1, %s10679_s20, %s135_s25  }
   0x9   : > { %p10760_p5 = por %p146_p2, %p145_p0  ;;  %p10764_p6 = por %p152_p4, %p151_p3 }
   0xa   : > { %p10513_p7 = scmp.ge.s32.totalorder %s10683_s21, 1  ;;  %p191_p8 = scmp.lt.s32.totalorder %s10683_s21, 3 }
   0xc   : > { %p192_p9 = pnand %p10513_p7, %p191_p8 }
   0xe   : > { %195 = sbr.rel (%p192_p9) target bundleno = 1472 (0x5c0), region = 40 }
  0x13   : > { %v287_v0 = vld [vmem:[%s13835_s3] sm:$0xff]  ;;  %v13841_v1 = vmov 0   ;;  %s10515_s7 = sshll.u32 %s10743_s22, 3  ;;  %vm13960_vm0 = vcmask 1043456   ;;  %v13843_v62 = vmov 1326507024  }
  0x14   : > { %10618 = vset.pattern.permute.xlu0 %v13841_v1  ;;  %p220_p10 = scmp.lt.s32.totalorder %s10515_s7, 15  ;;  %s10571_s17 = sshll.u32 %s10743_s22, 5 }
  0x15   : > { %290 = vperm.xlu0 %10618, %v287_v0   ;;  %s10446_s26 = scalar_lea.hbm %s13837_s5, %s10571_s17  ;;  %s10641_s12 = scalar_lea.hbm %s13837_s5, 64 }
  0x16   : > { %s14234_s7 = smov (!%p220_p10, %s10515_s7), 15  ;;  %s10450_s6 = sshll.u32 %s10446_s26, 4  ;;  %s10451_s6 = int_to_ptr.hbm [resolvable:$true] %s10450_s6 }
  0x17   : > { %s10516_s8 = sshll.u32 %s14234_s7, 1  ;;  %s10635_s7 = sshra.s32 %s10451_s6, 4  ;;  %s10636_s7 = int_to_ptr.hbm [resolvable:$true] %s10635_s7 }
  0x18   : > { %s10778_s11 = scalar_lea.vmem %s13832_s0, %s10516_s8  ;;  %s10637_s8 = scalar_lea.hbm %s10636_s7, 32 }
  0x19   : > { %v226_v2 = vld [vmem:[%s10778_s11] sm:$0xff]  ;;  %v10789_v13 = vld [vmem:[%s10778_s11 + $0x8] sm:$0xff]  ;;  %p10638_p11 = scmp.ne.s32.totalorder %s10636_s7, %s10637_s8  ;;  %p10642_p0 = scmp.lt.s32.totalorder %s10636_s7, %s13837_s5 }
  0x1a   : > { %v233_v3 = vperm.slane %v226_v2, 6  ;;  %v257_v4 = vperm.slane %v226_v2, 7  ;;  %v230_v12 = vperm.slane %v226_v2, 0  ;;  %v231_v14 = vperm.slane %v226_v2, 2  ;;  %p10643_p1 = scmp.lt.s32.totalorder %s10641_s12, %s10637_s8 }
  0x1b   : > { %v254_v15 = vperm.slane %v226_v2, 1  ;;  %v255_v16 = vperm.slane %v226_v2, 3  ;;  %v232_v18 = vperm.slane %v226_v2, 4  ;;  %v256_v19 = vperm.slane %v226_v2, 5  ;;  %p10639_p12 = pnand %p10638_p11, %p10760_p5 }
  0x1c   : > { %v249_v5 = vperm.slane %v233_v3, 0  ;;  %v273_v6 = vperm.slane %v257_v4, 1  ;;  %v234_v20 = vperm.slane %v10789_v13, 0  ;;  %v246_v21 = vperm.slane %v230_v12, 0  ;;  %p10644_p2 = por %p10643_p1, %p10642_p0 }
  0x1d   : > { %v247_v22 = vperm.slane %v231_v14, 0  ;;  %v258_v23 = vperm.slane %v10789_v13, 1  ;;  %v270_v24 = vperm.slane %v254_v15, 1  ;;  %v271_v25 = vperm.slane %v255_v16, 1  ;;  %p10640_p13 = pneg %p10639_p12 }
  0x1e   : > { %v282_v7 = vsel %vm13960_vm0, %v249_v5, %v273_v6  ;;  %v235_v26 = vperm.slane %v10789_v13, 2  ;;  %v259_v27 = vperm.slane %v10789_v13, 3  ;;  %v248_v29 = vperm.slane %v232_v18, 0 }
  0x1f   : > { %v272_v30 = vperm.slane %v256_v19, 1  ;;  %v250_v31 = vperm.slane %v234_v20, 0  ;;  %v274_v32 = vperm.slane %v258_v23, 1  ;;  %v279_v33 = vsel %vm13960_vm0, %v246_v21, %v270_v24  ;;  %p10645_p3 = pnand %p10644_p2, %p10640_p13 }
  0x20   : > { %v280_v34 = vsel %vm13960_vm0, %v247_v22, %v271_v25  ;;  %v251_v35 = vperm.slane %v235_v26, 0  ;;  %v275_v36 = vperm.slane %v259_v27, 1  ;;  %v236_v54 = vperm.slane %v10789_v13, 4 }
  0x21   : > { %v281_v37 = vsel %vm13960_vm0, %v248_v29, %v272_v30  ;;  %v283_v40 = vsel %vm13960_vm0, %v250_v31, %v274_v32  ;;  %v237_v55 = vperm.slane %v10789_v13, 6  ;;  %v260_v57 = vperm.slane %v10789_v13, 5 }
  0x22   : > { %v284_v42 = vsel %vm13960_vm0, %v251_v35, %v275_v36  ;;  %v252_v2 = vperm.slane %v236_v54, 0  ;;  %v261_v4 = vperm.slane %v10789_v13, 7  ;;  %v13854_v15 = vmov 2131351028  }
  0x23   : > { %v253_v3 = vperm.slane %v237_v55, 0  ;;  %v276_v6 = vperm.slane %v260_v57, 1  ;;  %v13850_v23 = vmov 2475754826   ;;  %v13847_v36 = vmov 683565275  }
  0x87   : > { %v10782_v8 = vpop.permute.xlu0 %290 }
  0x88   : > { %v10785_v9 = vmul.f32 %v10782_v8, %v282_v7  ;;  %v10799_v38 = vmul.f32 %v10782_v8, %v279_v33  ;;  %v10802_v39 = vmul.f32 %v10782_v8, %v280_v34  ;;  %v10807_v43 = vmul.f32 %v10782_v8, %v281_v37 }
  0x89   : > { %v10810_v44 = vmul.f32 %v10782_v8, %v283_v40  ;;  %v10815_v48 = vmul.f32 %v10782_v8, %v284_v42  ;;  %v285_v42 = vsel %vm13960_vm0, %v252_v2, %v276_v6 }
  0x8a   : > { %13996 = vst [vmem:[#allocation5_spill] sm:$0xff] %v10785_v9  ;;  %v769_v10 = vand.u32 2139095040, %v10785_v9  ;;  %v304_v45 = vand.u32 2139095040, %v10799_v38  ;;  %v459_v46 = vand.u32 2139095040, %v10802_v39  ;;  %v614_v49 = vand.u32 2139095040, %v10807_v43 }
  0x8b   : > { %13997 = vst [vmem:[#allocation6_spill] sm:$0xff] %v10799_v38  ;;  %v924_v53 = vand.u32 2139095040, %v10810_v44  ;;  %v1079_v56 = vand.u32 2139095040, %v10815_v48  ;;  %v13839_v59 = vand.u32 2147483647, %v10785_v9  ;;  %v10878_v2 = vmul.f32 %v10782_v8, %v285_v42 }
  0x8c   : > { %v770_v11 = vshrl.u32 %v769_v10, 23  ;;  %13998 = vst [vmem:[#allocation7_spill] sm:$0xff] %v10802_v39  ;;  %v305_v50 = vshrl.u32 %v304_v45, 23  ;;  %v460_v51 = vshrl.u32 %v459_v46, 23  ;;  %v615_v58 = vshrl.u32 %v614_v49, 23 }
  0x8d   : > { %13999 = vst [vmem:[#allocation8_spill] sm:$0xff] %v10807_v43  ;;  %v925_v0 = vshrl.u32 %v924_v53, 23  ;;  %v1080_v5 = vshrl.u32 %v1079_v56, 23  ;;  %v773_v10 = vand.u32 8388607, %v13839_v59 }
  0x8e   : > { %v10526_v17 = vadd.s32 4294967169, %v770_v11  ;;  %14000 = vst [vmem:[#allocation9_spill] sm:$0xff] %v10810_v44  ;;  %v10517_v60 = vadd.s32 4294967169, %v305_v50  ;;  %v10520_v61 = vadd.s32 4294967169, %v460_v51  ;;  %v10523_v7 = vadd.s32 4294967169, %v615_v58 }
  0x8f   : > { %14001 = vst [vmem:[#allocation10_spill] sm:$0xff] %v10815_v48  ;;  %v13863_v11 = vmov 920167782   ;;  %v10529_v22 = vadd.s32 4294967169, %v925_v0  ;;  %v10532_v27 = vadd.s32 4294967169, %v1080_v5  ;;  %v774_v35 = vor.u32 8388608, %v773_v10 }
  0x90   : > { %v776_v28 = vadd.s32 1, %v10526_v17  ;;  %v13865_v17 = vmov 2102212464   ;;  %v311_v19 = vadd.s32 1, %v10517_v60  ;;  %v466_v20 = vadd.s32 1, %v10520_v61  ;;  %14003 = vst [vmem:[#allocation12_spill] sm:$0xff] %v10878_v2 }
  0x91   : > { %v621_v29 = vadd.s32 1, %v10523_v7  ;;  %v13838_v31 = vand.u32 2147483647, %v10815_v48  ;;  %v1086_v45 = vadd.s32 1, %v10532_v27  ;;  %v10861_v55 = vshll.u32 %v774_v35, 8 }
  0x92   : > { %vm777_vm1 = vcmp.gt.s32.totalorder %v776_v28, 0  ;;  %vm312_vm3 = vcmp.gt.s32.totalorder %v311_v19, 0  ;;  %vm467_vm4 = vcmp.gt.s32.totalorder %v466_v20, 0 }
  0x93   : > { %v778_v41 = vsel %vm777_vm1, %v776_v28, 0  ;;  %v277_v28 = vperm.slane %v261_v4, 1  ;;  %vm622_vm5 = vcmp.gt.s32.totalorder %v621_v29, 0  ;;  %v1083_v51 = vand.u32 8388607, %v13838_v31  ;;  %14002 = vst [vmem:[#allocation11_spill] sm:$0xff] %v10861_v55 }
  0x94   : > { %v780_v47 = vand.u32 31, %v778_v41  ;;  %v10832_v14 = vshrl.u32 %v778_v41, 5  ;;  %v931_v41 = vadd.s32 1, %v10529_v22  ;;  %v313_v53 = vsel %vm312_vm3, %v311_v19, 0 }
  0x95   : > { %v468_v54 = vsel %vm467_vm4, %v466_v20, 0  ;;  %v623_v56 = vsel %vm622_vm5, %v621_v29, 0  ;;  %vm1087_vm10 = vcmp.gt.s32.totalorder %v1086_v45, 0  ;;  %v286_v0 = vsel %vm13960_vm0, %v253_v3, %v277_v28 }
  0x96   : > { %v10818_v52 = vsub.s32 32, %v780_v47  ;;  %v795_v12 = vshll.u32 %v13863_v11, %v780_v47  ;;  %v786_v24 = vshll.u32 %v13850_v23, %v780_v47  ;;  %v789_v25 = vshll.u32 %v13854_v15, %v780_v47 }
  0x97   : > { %v792_v26 = vshll.u32 %v13865_v17, %v780_v47  ;;  %vm801_vm2 = vcmp.lt.s32.totalorder %v10832_v14, 4  ;;  %v783_v37 = vshll.u32 %v13847_v36, %v780_v47  ;;  %vm798_vm6 = vcmp.lt.s32.totalorder %v10832_v14, 1 }
  0x98   : > { %v796_v63 = vshrl.u32 %v13843_v62, %v10818_v52  ;;  %v787_v16 = vshrl.u32 %v13854_v15, %v10818_v52  ;;  %v790_v18 = vshrl.u32 %v13865_v17, %v10818_v52  ;;  %v793_v13 = vshrl.u32 %v13863_v11, %v10818_v52 }
  0x99   : > { %v784_v30 = vshrl.u32 %v13850_v23, %v10818_v52  ;;  %vm800_vm7 = vcmp.lt.s32.totalorder %v10832_v14, 3  ;;  %vm932_vm8 = vcmp.gt.s32.totalorder %v931_v41, 0  ;;  %vm799_vm9 = vcmp.lt.s32.totalorder %v10832_v14, 2 }
  0x9a   : > { %v797_v21 = vor.u32 %v796_v63, %v795_v12  ;;  %v788_v32 = vor.u32 %v787_v16, %v786_v24  ;;  %v791_v33 = vor.u32 %v790_v18, %v789_v25  ;;  %v794_v34 = vor.u32 %v793_v13, %v792_v26 }
  0x9b   : > { %v785_v46 = vor.u32 %v784_v30, %v783_v37  ;;  %v782_v58 = vshrl.u32 %v13847_v36, %v10818_v52  ;;  %v933_v4 = vsel %vm932_vm8, %v931_v41, 0  ;;  %v1084_v5 = vor.u32 8388608, %v1083_v51 }
  0x9c   : > { %v811_v40 = vsel %vm801_vm2, %v797_v21, 1326507024  ;;  %v807_v49 = vsel %vm801_vm2, %v794_v34, 920167782  ;;  %v810_v47 = vsel %vm798_vm6, %v788_v32, %v791_v33  ;;  %v803_v57 = vsel %vm801_vm2, %v791_v33, 2102212464 }
  0x9d   : > { %v812_v50 = vsel %vm800_vm7, %v794_v34, %v811_v40  ;;  %v806_v60 = vsel %vm798_vm6, %v785_v46, %v788_v32  ;;  %v808_v61 = vsel %vm800_vm7, %v791_v33, %v807_v49  ;;  %v315_v6 = vand.u32 31, %v313_v53 }
  0x9e   : > { %v10874_v63 = vsel %vm799_vm9, %v810_v47, %v812_v50  ;;  %v802_v52 = vsel %vm798_vm6, %v782_v58, %v785_v46  ;;  %v804_v7 = vsel %vm800_vm7, %v788_v32, %v803_v57  ;;  %v1088_v10 = vsel %vm1087_vm10, %v1086_v45, 0 }
  0x9f   : > { %v10884_v12 = vand.u32 31, %v468_v54  ;;  %v10886_v16 = vand.u32 31, %v623_v56  ;;  %v10890_v3 = vsel %vm799_vm9, %v806_v60, %v808_v61  ;;  %v818_v18 = vshrl.u32 %v10874_v63, 16 }
  0xa0   : > { %v10894_v13 = vmul.f32 %v10782_v8, %v286_v0  ;;  %v10896_v19 = vshrl.u32 %v313_v53, 5  ;;  %v10899_v20 = vand.u32 65535, %v10861_v55  ;;  %v10901_v21 = vand.u32 31, %v933_v4 }
  0xa1   : > { %v10903_v22 = vshrl.u32 %v468_v54, 5  ;;  %v10907_v24 = vsel %vm799_vm9, %v802_v52, %v804_v7  ;;  %v1090_v25 = vand.u32 31, %v1088_v10  ;;  %v10909_v26 = vshll.u32 %v1084_v5, 8 }
  0xa2   : > { %14004 = vst [vmem:[#allocation13_spill] sm:$0xff] %v10894_v13  ;;  %v10911_v27 = vshrl.u32 %v623_v56, 5  ;;  %v10914_v8 = vshrl.u32 %v10861_v55, 16  ;;  %v13840_v28 = vand.u32 65535, %v10874_v63  ;;  %v840_v29 = vshrl.u32 %v10890_v3, 16 }
  0xa3   : > { %14005 = vst [vmem:[#allocation14_spill] sm:$0xff] %v10899_v20  ;;  %v316_v30 = vsub.s32 32, %v315_v6  ;;  %v10919_v32 = vsub.s32 32, %v10884_v12  ;;  %v10922_v14 = vsub.s32 32, %v10886_v16  ;;  %v10925_v33 = vmul.u32 %v818_v18, %v10899_v20 }
  0xa4   : > { %14006 = vst [vmem:[#allocation15_spill] sm:$0xff] %v10901_v21  ;;  %v10930_v37 = vshrl.u32 %v933_v4, 5  ;;  %v10933_v40 = vsub.s32 32, %v10901_v21  ;;  %v10935_v41 = vshrl.u32 %v1088_v10, 5  ;;  %v1091_v42 = vsub.s32 32, %v1090_v25 }
  0xa5   : > { %14007 = vst [vmem:[#allocation16_spill] sm:$0xff] %v10907_v24  ;;  %v10938_v45 = vand.u32 65535, %v10909_v26  ;;  %v10941_v46 = vshrl.u32 %v10909_v26, 16  ;;  %v10946_v49 = vmul.u32 %v13840_v28, %v10899_v20  ;;  %v10949_v47 = vmul.u32 %v818_v18, %v10914_v8 }
  0xa6   : > { %14008 = vst [vmem:[#allocation17_spill] sm:$0xff] %v10909_v26  ;;  %v10952_v50 = vmul.u32 %v840_v29, %v10899_v20  ;;  %v10955_v51 = vmul.u32 %v840_v29, %v10914_v8  ;;  %v1093_v54 = vshll.u32 %v13847_v36, %v1090_v25  ;;  %v1096_v56 = vshll.u32 %v13850_v23, %v1090_v25 }
  0xa7   : > { %14009 = vst [vmem:[#allocation18_spill] sm:$0xff] %v10930_v37  ;;  %v13860_v57 = vand.u32 2147483647, %v10799_v38  ;;  %v1099_v58 = vshll.u32 %v13854_v15, %v1090_v25  ;;  %v319_v60 = vshrl.u32 %v13850_v23, %v316_v30  ;;  %v322_v61 = vshrl.u32 %v13854_v15, %v316_v30 }
  0xa8   : > { %14010 = vst [vmem:[#allocation19_spill] sm:$0xff] %v10933_v40  ;;  %v325_v0 = vshrl.u32 %v13865_v17, %v316_v30  ;;  %v1094_v4 = vshrl.u32 %v13850_v23, %v1091_v42  ;;  %v1097_v5 = vshrl.u32 %v13854_v15, %v1091_v42  ;;  %v328_v52 = vshrl.u32 %v13863_v11, %v316_v30 }
  0xa9   : > { %14011 = vst [vmem:[#allocation20_spill] sm:$0xff] %v10955_v51  ;;  %v331_v7 = vshrl.u32 %v13843_v62, %v316_v30  ;;  %v1100_v10 = vshrl.u32 %v13865_v17, %v1091_v42  ;;  %v318_v18 = vshll.u32 %v13847_v36, %v315_v6  ;;  %v321_v29 = vshll.u32 %v13850_v23, %v315_v6 }
  0xaa   : > { %v324_v31 = vshll.u32 %v13854_v15, %v315_v6  ;;  %v1103_v59 = vshrl.u32 %v13863_v11, %v1091_v42  ;;  %v308_v35 = vand.u32 8388607, %v13860_v57  ;;  %v327_v34 = vshll.u32 %v13865_v17, %v315_v6 }
  0xab   : > { %v330_v28 = vshll.u32 %v13863_v11, %v315_v6  ;;  %v1102_v53 = vshll.u32 %v13865_v17, %v1090_v25  ;;  %v320_v1 = vor.u32 %v319_v60, %v318_v18  ;;  %v323_v62 = vor.u32 %v322_v61, %v321_v29 }
  0xac   : > { %v326_v48 = vor.u32 %v325_v0, %v324_v31  ;;  %v1105_v36 = vshll.u32 %v13863_v11, %v1090_v25  ;;  %v14012_v26 = vmov 1326507024   ;;  %v329_v9 = vor.u32 %v328_v52, %v327_v34 }
  0xad   : > { %v1106_v23 = vshrl.u32 %v14012_v26, %v1091_v42  ;;  %v332_v15 = vor.u32 %v331_v7, %v330_v28  ;;  %v14013_v37 = vmov 683565275   ;;  %v1095_v55 = vor.u32 %v1094_v4, %v1093_v54 }
  0xae   : > { %v1092_v24 = vshrl.u32 %v14013_v37, %v1091_v42  ;;  %v10982_v40 = vor.u32 %v1097_v5, %v1096_v56  ;;  %v10984_v57 = vor.u32 %v1100_v10, %v1099_v58  ;;  %v10986_v21 = vor.u32 %v1103_v59, %v1102_v53 }
  0xaf   : > { %vm1108_vm11 = vcmp.lt.s32.totalorder %v10935_v41, 1  ;;  %v309_v6 = vor.u32 8388608, %v308_v35  ;;  %vm333_vm12 = vcmp.lt.s32.totalorder %v10896_v19, 1  ;;  %vm335_vm13 = vcmp.lt.s32.totalorder %v10896_v19, 3 }
  0xb0   : > { %vm336_vm14 = vcmp.lt.s32.totalorder %v10896_v19, 4  ;;  %v341_v31 = vsel %vm333_vm12, %v320_v1, %v323_v62  ;;  %v345_v25 = vsel %vm333_vm12, %v323_v62, %v326_v48  ;;  %v1107_v28 = vor.u32 %v1106_v23, %v1105_v36 }
  0xb1   : > { %v338_v34 = vsel %vm336_vm14, %v326_v48, 2102212464  ;;  %v342_v42 = vsel %vm336_vm14, %v329_v9, 920167782  ;;  %v346_v59 = vsel %vm336_vm14, %v332_v15, 1326507024  ;;  %v317_v53 = vshrl.u32 %v14013_v37, %v316_v30 }
  0xb2   : > { %vm334_vm15 = vcmp.lt.s32.totalorder %v10896_v19, 2  ;;  %v343_v35 = vsel %vm335_vm13, %v326_v48, %v342_v42  ;;  %v347_v54 = vsel %vm335_vm13, %v329_v9, %v346_v59  ;;  %vm1111_vm1 = vcmp.lt.s32.totalorder %v10935_v41, 4 }
  0xb3   : > { %v344_v56 = vsel %vm334_vm15, %v341_v31, %v343_v35  ;;  %v348_v23 = vsel %vm334_vm15, %v345_v25, %v347_v54  ;;  %v11007_v36 = vshll.u32 %v309_v6, 8  ;;  %v337_v15 = vsel %vm333_vm12, %v317_v53, %v320_v1 }
  0xb4   : > { %v339_v30 = vsel %vm335_vm13, %v323_v62, %v338_v34  ;;  %v352_v48 = vand.u32 65535, %v348_v23  ;;  %v353_v58 = vshrl.u32 %v348_v23, 16  ;;  %v374_v61 = vand.u32 65535, %v344_v56 }
  0xb5   : > { %v350_v9 = vand.u32 65535, %v11007_v36  ;;  %v351_v60 = vshrl.u32 %v11007_v36, 16  ;;  %v375_v0 = vshrl.u32 %v344_v56, 16  ;;  %v11017_v4 = vsel %vm1108_vm11, %v1092_v24, %v1095_v55 }
  0xb6   : > { %v11022_v5 = vsel %vm1111_vm1, %v10984_v57, 2102212464  ;;  %v11027_v1 = vsel %vm1108_vm11, %v1095_v55, %v10982_v40  ;;  %v11033_v62 = vsel %vm1108_vm11, %v10982_v40, %v10984_v57  ;;  %v1117_v24 = vsel %vm1111_vm1, %v10986_v21, 920167782 }
  0xb7   : > { %v1121_v52 = vsel %vm1111_vm1, %v1107_v28, 1326507024  ;;  %v355_v7 = vmul.u32 %v353_v58, %v350_v9  ;;  %v356_v10 = vmul.u32 %v352_v48, %v351_v60  ;;  %v11042_v18 = vsel %vm334_vm15, %v337_v15, %v339_v30 }
  0xb8   : > { %v377_v55 = vmul.u32 %v375_v0, %v350_v9  ;;  %v378_v29 = vmul.u32 %v374_v61, %v351_v60  ;;  %v13867_v6 = vand.u32 2147483647, %v10802_v39  ;;  %v354_v31 = vmul.u32 %v352_v48, %v350_v9 }
  0xb9   : > { %v357_v25 = vmul.u32 %v353_v58, %v351_v60  ;;  %v358_v34 = vshll.u32 %v355_v7, 16  ;;  %v376_v42 = vmul.u32 %v374_v61, %v350_v9  ;;  %v359_v59 = vshrl.u32 %v355_v7, 16 }
  0xba   : > { %v360_v53 = vshll.u32 %v356_v10, 16  ;;  %v379_v35 = vmul.u32 %v375_v0, %v351_v60  ;;  %v380_v54 = vshll.u32 %v377_v55, 16  ;;  %vm1110_vm2 = vcmp.lt.s32.totalorder %v10935_v41, 3 }
  0xbb   : > { %v361_v28 = vshrl.u32 %v356_v10, 16  ;;  %vm362_vm3 = vc.u32 %v354_v31, %v358_v34  ;;  %v364_v56 = vadd.s32 %v358_v34, %v354_v31  ;;  %v381_v19 = vshrl.u32 %v377_v55, 16 }
  0xbc   : > { %v14014_v23 = vmov 0   ;;  %v382_v30 = vshll.u32 %v378_v29, 16  ;;  %vm384_vm4 = vc.u32 %v376_v42, %v380_v54  ;;  %v386_v11 = vadd.s32 %v380_v54, %v376_v42 }
  0xbd   : > { %v363_v15 = vsel %vm362_vm3, 1, %v14014_v23  ;;  %vm366_vm5 = vc.u32 %v364_v56, %v360_v53  ;;  %v383_v48 = vshrl.u32 %v378_v29, 16  ;;  %v385_v58 = vsel %vm384_vm4, 1, %v14014_v23 }
  0xbe   : > { %v365_v17 = vadd.s32 %v363_v15, %v357_v25  ;;  %v367_v9 = vsel %vm366_vm5, 1, %v14014_v23  ;;  %v387_v60 = vadd.s32 %v385_v58, %v379_v35  ;;  %vm388_vm6 = vc.u32 %v386_v11, %v382_v30 }
  0xbf   : > { %v463_v61 = vand.u32 8388607, %v13867_v6  ;;  %v389_v7 = vsel %vm388_vm6, 1, %v14014_v23  ;;  %v473_v10 = vshll.u32 %v14013_v37, %v10884_v12  ;;  %v14015_v55 = vmov 2475754826  }
  0xc0   : > { %v369_v0 = vadd.s32 %v367_v9, %v365_v17  ;;  %v474_v31 = vshrl.u32 %v14015_v55, %v10919_v32  ;;  %v11056_v25 = vadd.s32 %v386_v11, %v382_v30  ;;  %v391_v29 = vadd.s32 %v389_v7, %v387_v60 }
  0xc1   : > { %v476_v34 = vshll.u32 %v14015_v55, %v10884_v12  ;;  %v14016_v42 = vmov 2131351028   ;;  %v14017_v56 = vmov 2102212464   ;;  %vm1109_vm7 = vcmp.lt.s32.totalorder %v10935_v41, 2 }
  0xc2   : > { %v477_v53 = vshrl.u32 %v14016_v42, %v10919_v32  ;;  %v370_v35 = vadd.s32 %v369_v0, %v359_v59  ;;  %v11062_v54 = vor.u32 %v474_v31, %v473_v10  ;;  %v479_v17 = vshll.u32 %v14016_v42, %v10884_v12 }
  0xc3   : > { %v480_v15 = vshrl.u32 %v14017_v56, %v10919_v32  ;;  %v392_v11 = vadd.s32 %v391_v29, %v381_v19  ;;  %v482_v58 = vshll.u32 %v14017_v56, %v10884_v12  ;;  %v14018_v9 = vmov 920167782  }
  0xc4   : > { %v11069_v30 = vor.u32 %v477_v53, %v476_v34  ;;  %v483_v60 = vshrl.u32 %v14018_v9, %v10919_v32  ;;  %v11075_v59 = vadd.s32 %v370_v35, %v361_v28  ;;  %v485_v7 = vshll.u32 %v14018_v9, %v10884_v12 }
  0xc5   : > { %v481_v0 = vor.u32 %v480_v15, %v479_v17  ;;  %v486_v10 = vshrl.u32 %v14012_v26, %v10919_v32  ;;  %v1118_v19 = vsel %vm1110_vm2, %v10984_v57, %v1117_v24  ;;  %v1122_v31 = vsel %vm1110_vm2, %v10986_v21, %v1121_v52 }
  0xc6   : > { %v393_v29 = vadd.s32 %v392_v11, %v383_v48  ;;  %v484_v34 = vor.u32 %v483_v60, %v482_v58  ;;  %vm396_vm8 = vc.u32 %v11075_v59, %v11056_v25  ;;  %v464_v28 = vor.u32 8388608, %v463_v61 }
  0xc7   : > { %v487_v53 = vor.u32 %v486_v10, %v485_v7  ;;  %vm488_vm9 = vcmp.lt.s32.totalorder %v10903_v22, 1  ;;  %v394_v12 = vmul.u32 %v11007_v36, %v11042_v18  ;;  %vm491_vm10 = vcmp.lt.s32.totalorder %v10903_v22, 4 }
  0xc8   : > { %v397_v35 = vadd.s32 1, %v393_v29  ;;  %v496_v21 = vsel %vm488_vm9, %v11062_v54, %v11069_v30  ;;  %vm490_vm11 = vcmp.lt.s32.totalorder %v10903_v22, 3  ;;  %v497_v57 = vsel %vm491_vm10, %v484_v34, 920167782 }
  0xc9   : > { %v500_v24 = vsel %vm488_vm9, %v11069_v30, %v481_v0  ;;  %v501_v36 = vsel %vm491_vm10, %v487_v53, 1326507024  ;;  %vm489_vm12 = vcmp.lt.s32.totalorder %v10903_v22, 2  ;;  %v498_v18 = vsel %vm490_vm11, %v481_v0, %v497_v57 }
  0xca   : > { %v398_v52 = vsel %vm396_vm8, %v397_v35, %v393_v29  ;;  %v502_v48 = vsel %vm490_vm11, %v484_v34, %v501_v36  ;;  %v499_v17 = vsel %vm489_vm12, %v496_v21, %v498_v18  ;;  %v11114_v11 = vshll.u32 %v464_v28, 8 }
  0xcb   : > { %v399_v61 = vadd.s32 %v398_v52, %v394_v12  ;;  %v503_v15 = vsel %vm489_vm12, %v500_v24, %v502_v48  ;;  %v1114_v58 = vsel %vm1110_vm2, %v10982_v40, %v11022_v5  ;;  %v530_v10 = vshrl.u32 %v499_v17, 16 }
  0xcc   : > { %v507_v60 = vand.u32 65535, %v503_v15  ;;  %v508_v7 = vshrl.u32 %v503_v15, 16  ;;  %v14019_v29 = vshll.u32 %v10925_v33, 16  ;;  %v11128_v53 = vsel %vm1109_vm7, %v11033_v62, %v1122_v31 }
  0xcd   : > { %v400_v28 = vadd.s32 536870912, %v399_v61  ;;  %v505_v12 = vand.u32 65535, %v11114_v11  ;;  %v11134_v40 = vsel %vm1109_vm7, %v11027_v1, %v1118_v19  ;;  %v506_v35 = vshrl.u32 %v11114_v11, 16 }
  0xce   : > { %v11123_v34 = vadd.s32 %v14019_v29, %v10946_v49  ;;  %v529_v21 = vand.u32 65535, %v499_v17  ;;  %v11141_v57 = vsel %vm1109_vm7, %v11017_v4, %v1114_v58  ;;  %vm303_vm13 = vcmp.lt.s32.totalorder %v10799_v38, 0 }
  0xcf   : > { %14020 = vst [vmem:[#allocation21_spill] sm:$0xff] %v11141_v57  ;;  %v401_v31 = vshrl.u32 %v400_v28, 30  ;;  %v510_v24 = vmul.u32 %v508_v7, %v505_v12  ;;  %v511_v1 = vmul.u32 %v507_v60, %v506_v35  ;;  %v532_v19 = vmul.u32 %v530_v10, %v505_v12 }
  0xd0   : > { %v509_v15 = vmul.u32 %v507_v60, %v505_v12  ;;  %v472_v41 = vshrl.u32 %v14013_v37, %v10919_v32  ;;  %v493_v4 = vsel %vm491_vm10, %v481_v0, 2102212464  ;;  %v533_v58 = vmul.u32 %v529_v21, %v506_v35 }
  0xd1   : > { %v402_v48 = vshll.u32 %v401_v31, 30  ;;  %v513_v17 = vshll.u32 %v510_v24, 16  ;;  %v535_v29 = vshll.u32 %v532_v19, 16  ;;  %v512_v62 = vmul.u32 %v508_v7, %v506_v35 }
  0xd2   : > { %v425_v52 = vsub.s32 4, %v401_v31  ;;  %v515_v5 = vshll.u32 %v511_v1, 16  ;;  %v531_v60 = vmul.u32 %v529_v21, %v505_v12  ;;  %v534_v44 = vmul.u32 %v530_v10, %v506_v35 }
  0xd3   : > { %v403_v28 = vsub.s32 %v399_v61, %v402_v48  ;;  %vm517_vm14 = vc.u32 %v509_v15, %v513_v17  ;;  %v519_v6 = vadd.s32 %v513_v17, %v509_v15  ;;  %v537_v32 = vshll.u32 %v533_v58, 16 }
  0xd4   : > { %v518_v18 = vsel %vm517_vm14, 1, %v14014_v23  ;;  %vm539_vm2 = vc.u32 %v531_v60, %v535_v29  ;;  %v541_v51 = vadd.s32 %v535_v29, %v531_v60  ;;  %v514_v20 = vshrl.u32 %v510_v24, 16 }
  0xd5   : > { %vm404_vm15 = vcmp.lt.s32.totalorder %v403_v28, 0  ;;  %v405_v36 = vsub.s32 0, %v403_v28  ;;  %v520_v57 = vadd.s32 %v518_v18, %v512_v62  ;;  %vm521_vm1 = vc.u32 %v519_v6, %v515_v5 }
  0xd6   : > { %v522_v61 = vsel %vm521_vm1, 1, %v14014_v23  ;;  %v540_v7 = vsel %vm539_vm2, 1, %v14014_v23  ;;  %vm543_vm3 = vc.u32 %v541_v51, %v537_v32  ;;  %v492_v12 = vsel %vm488_vm9, %v472_v41, %v11062_v54 }
  0xd7   : > { %v406_v0 = vsel %vm404_vm15, %v405_v36, %v403_v28  ;;  %v524_v15 = vadd.s32 %v522_v61, %v520_v57  ;;  %v542_v17 = vadd.s32 %v540_v7, %v534_v44  ;;  %v494_v6 = vsel %vm490_vm11, %v11069_v30, %v493_v4 }
  0xd8   : > { %v407_v48 = vclz %v406_v0  ;;  %v516_v10 = vshrl.u32 %v511_v1, 16  ;;  %v544_v5 = vsel %vm543_vm3, 1, %v14014_v23  ;;  %v536_v62 = vshrl.u32 %v532_v19, 16 }
  0xd9   : > { %v525_v21 = vadd.s32 %v524_v15, %v514_v20  ;;  %v546_v24 = vadd.s32 %v544_v5, %v542_v17  ;;  %v14021_v44 = vand.u32 2147483647, %v10799_v38  ;;  %v395_v54 = vadd.s32 %v11056_v25, %v11075_v59 }
  0xda   : > { %v10518_v35 = vadd.s32 4294967294, %v407_v48  ;;  %v426_v30 = vsel %vm303_vm13, %v425_v52, %v401_v31  ;;  %v538_v20 = vshrl.u32 %v533_v58, 16  ;;  %v495_v41 = vsel %vm489_vm12, %v492_v12, %v494_v6 }
  0xdb   : > { %vm11165_vm4 = vcmp.le.f32.partialorder %v14021_v44, 0.7853982  ;;  %v11173_v1 = vadd.s32 %v525_v21, %v516_v10  ;;  %v547_v19 = vadd.s32 %v546_v24, %v536_v62  ;;  %v11177_v4 = vadd.s32 %v541_v51, %v537_v32 }
  0xdc   : > { %vm10519_vm5 = vcmp.lt.s32.totalorder %v10518_v35, 0  ;;  %v13871_v29 = vand.u32 2147483647, %v10807_v43  ;;  %v11182_v25 = vsel %vm11165_vm4, 0, %v426_v30  ;;  %v14025_v31 = vand.u32 65535, %v11128_v53 }
  0xdd   : > { %v410_v18 = vsel %vm10519_vm5, 0, %v10518_v35  ;;  %14024 = vst [vmem:[#allocation22_spill] sm:$0xff] %v11182_v25  ;;  %v548_v59 = vadd.s32 %v547_v19, %v538_v20  ;;  %v14027_v58 = vand.u32 2139095040, %v10878_v2  ;;  %vm551_vm6 = vc.u32 %v11173_v1, %v11177_v4  ;;  %v2813_v19 = vld [vmem:[%s13833_s1] sm:$0xff] }
  0xde   : > { %v411_v60 = vsub.s32 32, %v410_v18  ;;  %v415_v0 = vsub.s32 4294967266, %v410_v18  ;;  %v11187_v52 = vmul.u32 %v14025_v31, %v10938_v45  ;;  %v412_v32 = vshll.u32 %v403_v28, %v410_v18 }
  0xdf   : > { %v11191_v22 = vshrl.u32 %v14027_v58, 23  ;;  %v552_v48 = vadd.s32 1, %v548_v59  ;;  %v445_v15 = vadd.s32 3, %v11182_v25  ;;  %v549_v17 = vmul.u32 %v11114_v11, %v495_v41 }
  0xe0   : > { %14026 = vst [vmem:[#allocation23_spill] sm:$0xff] %v11187_v52  ;;  %v413_v61 = vshrl.u32 %v395_v54, %v411_v60  ;;  %v416_v7 = vadd.s32 127, %v415_v0  ;;  %v618_v12 = vand.u32 8388607, %v13871_v29  ;;  %v632_v6 = vshrl.u32 %v14016_v42, %v10922_v14 }
  0xe1   : > { %v553_v35 = vsel %vm551_vm6, %v552_v48, %v548_v59  ;;  %v635_v21 = vshrl.u32 %v14017_v56, %v10922_v14  ;;  %v628_v62 = vshll.u32 %v14013_v37, %v10886_v16  ;;  %v638_v24 = vshrl.u32 %v14018_v9, %v10922_v14 }
  0xe2   : > { %v414_v10 = vor.u32 %v413_v61, %v412_v32  ;;  %v417_v5 = vshll.u32 %v416_v7, 23  ;;  %v554_v28 = vadd.s32 %v553_v35, %v549_v17  ;;  %v641_v11 = vshrl.u32 %v14012_v26, %v10922_v14 }
  0xe3   : > { %v629_v54 = vshrl.u32 %v14015_v55, %v10922_v14  ;;  %v631_v30 = vshll.u32 %v14015_v55, %v10886_v16  ;;  %v634_v20 = vshll.u32 %v14016_v42, %v10886_v16  ;;  %vm13956_vm7 = vcmask 64512  }
  0xe4   : > { %v418_v44 = vor.u32 4788187, %v417_v5  ;;  %v555_v18 = vadd.s32 536870912, %v554_v28  ;;  %v637_v41 = vshll.u32 %v14017_v56, %v10886_v16  ;;  %v640_v60 = vshll.u32 %v14018_v9, %v10886_v16 }
  0xe5   : > { %v421_v59 = vcvt.s32.f32 %v414_v10  ;;  %v633_v31 = vor.u32 %v632_v6, %v631_v30  ;;  %v636_v58 = vor.u32 %v635_v21, %v634_v20  ;;  %v2820_v32 = vsel %vm13956_vm7, %v2813_v19, 0 }
  0xe6   : > { %v419_v0 = vand.u32 2147483647, %v418_v44  ;;  %v556_v61 = vshrl.u32 %v555_v18, 30  ;;  %v639_v7 = vor.u32 %v638_v24, %v637_v41  ;;  %v642_v48 = vor.u32 %v641_v11, %v640_v60 }
  0xe7   : > { %v14028_v17 = vshrl.u32 %v11128_v53, 16  ;;  %v11229_v51 = vand.u32 3, %v445_v15  ;;  %v627_v16 = vshrl.u32 %v14013_v37, %v10922_v14  ;;  %v619_v10 = vor.u32 8388608, %v618_v12 }
  0xe8   : > { %v422_v35 = vmul.f32 %v421_v59, %v419_v0  ;;  %v557_v44 = vshll.u32 %v556_v61, 30  ;;  %v630_v6 = vor.u32 %v629_v54, %v628_v62  ;;  %vm643_vm8 = vcmp.lt.s32.totalorder %v10911_v27, 1 }
  0xe9   : > { %v11227_v5 = vmul.u32 %v14028_v17, %v10938_v45  ;;  %v11234_v30 = vand.u32 4294901760, %v2820_v32  ;;  %vm458_vm9 = vcmp.lt.s32.totalorder %v10802_v39, 0  ;;  %vm645_vm10 = vcmp.lt.s32.totalorder %v10911_v27, 3 }
  0xea   : > { %v423_v21 = vxor.u32 2147483648, %v422_v35  ;;  %vm646_vm11 = vcmp.lt.s32.totalorder %v10911_v27, 4  ;;  %v11239_v24 = vsub.s32 %v554_v28, %v557_v44  ;;  %v655_v14 = vsel %vm643_vm8, %v633_v31, %v636_v58 }
  0xeb   : > { %v652_v15 = vsel %vm646_vm11, %v639_v7, 920167782  ;;  %v656_v11 = vsel %vm646_vm11, %v642_v48, 1326507024  ;;  %vm644_vm12 = vcmp.lt.s32.totalorder %v10911_v27, 2  ;;  %v651_v19 = vsel %vm643_vm8, %v630_v6, %v633_v31 }
  0xec   : > { %v424_v12 = vsel %vm303_vm13, %v423_v21, %v422_v35  ;;  %v648_v62 = vsel %vm646_vm11, %v636_v58, 2102212464  ;;  %v657_v54 = vsel %vm645_vm10, %v639_v7, %v656_v11  ;;  %vm559_vm14 = vcmp.lt.s32.totalorder %v11239_v24, 0 }
  0xed   : > { %v11251_v20 = vsel %vm11165_vm4, %v10799_v38, %v424_v12  ;;  %v560_v28 = vsub.s32 0, %v11239_v24  ;;  %v653_v41 = vsel %vm645_vm10, %v636_v58, %v652_v15  ;;  %v658_v60 = vsel %vm644_vm12, %v655_v14, %v657_v54 }
  0xee   : > { %v429_v18 = vmul.f32 %v11251_v20, %v11251_v20  ;;  %v11263_v0 = vshll.u32 %v619_v10, 8  ;;  %v11266_v57 = vsub.f32 %v2820_v32, %v11234_v30  ;;  %v580_v7 = vsub.s32 4, %v556_v61 }
  0xef   : > { %v561_v59 = vsel %vm559_vm14, %v560_v28, %v11239_v24  ;;  %v663_v48 = vshrl.u32 %v658_v60, 16  ;;  %v550_v44 = vadd.s32 %v11177_v4, %v11173_v1  ;;  %v14029_v58 = vand.u32 2147483647, %v10802_v39 }
  0xf0   : > { %v430_v17 = vmul.f32 -0.001358992, %v429_v18  ;;  %v437_v35 = vmul.f32 -0.00019511016, %v429_v18  ;;  %v562_v21 = vclz %v561_v59  ;;  %v11279_v32 = vsel %vm643_vm8, %v627_v16, %v630_v6 }
  0xf1   : > { %vm11273_vm13 = vcmp.le.f32.partialorder %v14029_v58, 0.7853982  ;;  %v654_v10 = vsel %vm644_vm12, %v651_v19, %v653_v41  ;;  %v660_v14 = vand.u32 65535, %v11263_v0  ;;  %v662_v11 = vand.u32 65535, %v658_v60 }
  0xf2   : > { %v431_v12 = vadd.f32 0.041655596, %v430_v17  ;;  %v438_v54 = vadd.f32 0.008332121, %v437_v35  ;;  %v10521_v1 = vadd.s32 4294967294, %v562_v21  ;;  %v11286_v4 = vsel %vm645_vm10, %v633_v31, %v648_v62 }
  0xf3   : > { %v11289_v28 = vand.u32 4294901760, %v11266_v57  ;;  %v581_v16 = vsel %vm458_vm9, %v580_v7, %v556_v61  ;;  %v661_v6 = vshrl.u32 %v11263_v0, 16  ;;  %v665_v59 = vmul.u32 %v663_v48, %v660_v14 }
  0xf4   : > { %v432_v19 = vmul.f32 %v431_v12, %v429_v18  ;;  %v439_v41 = vmul.f32 %v438_v54, %v429_v18  ;;  %vm10522_vm15 = vcmp.lt.s32.totalorder %v10521_v1, 0  ;;  %v684_v60 = vand.u32 65535, %v654_v10 }
  0xf5   : > { %14032 = vst [vmem:[#allocation24_spill] sm:$0xff] %v11289_v28  ;;  %v565_v17 = vsel %vm10522_vm15, 0, %v10521_v1  ;;  %v664_v35 = vmul.u32 %v662_v11, %v660_v14  ;;  %v11294_v21 = vmul.u32 %v662_v11, %v661_v6  ;;  %v668_v58 = vshll.u32 %v665_v59, 16 }
  0xf6   : > { %v433_v31 = vadd.f32 -0.4999988, %v432_v19  ;;  %v440_v62 = vadd.f32 -0.16666654, %v439_v41  ;;  %v566_v29 = vsub.s32 32, %v565_v17  ;;  %v685_v36 = vshrl.u32 %v654_v10, 16 }
  0xf7   : > { %vm448_vm1 = vcmp.eq.s32.totalorder %v11229_v51, 0  ;;  %vm451_vm2 = vcmp.eq.s32.totalorder %v11229_v51, 2  ;;  %v567_v61 = vshll.u32 %v11239_v24, %v565_v17  ;;  %v570_v7 = vsub.s32 4294967266, %v565_v17 }
  0xf8   : > { %v667_v12 = vmul.u32 %v663_v48, %v661_v6  ;;  %vm672_vm3 = vc.u32 %v664_v35, %v668_v58  ;;  %v434_v54 = vmul.f32 %v433_v31, %v429_v18  ;;  %v441_v25 = vmul.f32 %v440_v62, %v429_v18 }
  0xf9   : > { %vm447_vm4 = vcmp.lt.s32.totalorder %v11229_v51, 2  ;;  %v568_v11 = vshrl.u32 %v550_v44, %v566_v29  ;;  %v673_v1 = vsel %vm672_vm3, 1, %v14014_v23  ;;  %vm444_vm5 = vweird.f32 %v10799_v38 }
  0xfa   : > { %v571_v19 = vadd.s32 127, %v570_v7  ;;  %v670_v10 = vshll.u32 %v11294_v21, 16  ;;  %v674_v41 = vadd.s32 %v668_v58, %v664_v35  ;;  %v675_v2 = vadd.s32 %v673_v1, %v667_v12 }
  0xfb   : > { %v11303_v52 = vadd.f32 1.0, %v434_v54  ;;  %v442_v24 = vadd.f32 1.0, %v441_v25  ;;  %v11307_v48 = vsel %vm11273_vm13, 0, %v581_v16  ;;  %v687_v18 = vmul.u32 %v685_v36, %v660_v14 }
  0xfc   : > { %14034 = vst [vmem:[#allocation26_spill] sm:$0xff] %v11307_v48  ;;  %v2854_v29 = vsub.f32 %v11266_v57, %v11289_v28  ;;  %v569_v44 = vor.u32 %v568_v11, %v567_v61  ;;  %v572_v17 = vshll.u32 %v571_v19, 23  ;;  %vm676_vm6 = vc.u32 %v674_v41, %v670_v10 }
  0xfd   : > { %14033 = vst [vmem:[#allocation25_spill] sm:$0xff] %v11303_v52  ;;  %v11312_v31 = vmul.f32 %v442_v24, %v11251_v20  ;;  %v13876_v35 = vxor.u32 2147483648, %v11303_v52  ;;  %v677_v58 = vsel %vm676_vm6, 1, %v14014_v23  ;;  %v11316_v62 = vmul.u32 %v684_v60, %v661_v6 }
  0xfe   : > { %v573_v25 = vor.u32 4788187, %v572_v17  ;;  %v679_v7 = vadd.s32 %v677_v58, %v675_v2  ;;  %v686_v16 = vmul.u32 %v684_v60, %v660_v14  ;;  %v690_v12 = vshll.u32 %v687_v18, 16 }
  0xff   : > { %14035 = vst [vmem:[#allocation27_spill] sm:$0xff] %v11312_v31  ;;  %v13877_v54 = vxor.u32 2147483648, %v11312_v31  ;;  %v600_v1 = vadd.s32 3, %v11307_v48  ;;  %v669_v61 = vshrl.u32 %v665_v59, 16  ;;  %v689_v11 = vmul.u32 %v685_v36, %v661_v6 }
 0x100   : > { %v574_v19 = vand.u32 2147483647, %v573_v25  ;;  %v576_v10 = vcvt.s32.f32 %v569_v44  ;;  %vm694_vm8 = vc.u32 %v686_v16, %v690_v12  ;;  %v696_v20 = vadd.s32 %v690_v12, %v686_v16 }
 0x101   : > { %v450_v41 = vsel %vm448_vm1, %v11303_v52, %v13877_v54  ;;  %v453_v2 = vsel %vm451_vm2, %v13876_v35, %v11312_v31  ;;  %v692_v14 = vshll.u32 %v11316_v62, 16  ;;  %v695_v36 = vsel %vm694_vm8, 1, %v14014_v23 }
 0x102   : > { %v454_v6 = vsel %vm447_vm4, %v450_v41, %v453_v2  ;;  %v577_v59 = vmul.f32 %v576_v10, %v574_v19  ;;  %v680_v60 = vadd.s32 %v679_v7, %v669_v61  ;;  %v697_v24 = vadd.s32 %v695_v36, %v689_v11 }
 0x103   : > { %v14036_v44 = vshll.u32 %v10925_v33, 16  ;;  %v14039_v58 = vshrl.u32 %v11128_v53, 16  ;;  %v11348_v16 = vsel %vm444_vm5, nan, %v454_v6  ;;  %v11350_v51 = vand.u32 4294901760, %v2854_v29 }
 0x104   : > { %14040 = vst [vmem:[#allocation28_spill] sm:$0xff] %v11348_v16  ;;  %vm698_vm11 = vc.u32 %v696_v20, %v692_v14  ;;  %v11353_v7 = vand.u32 4294901760, %v11348_v16  ;;  %v578_v12 = vxor.u32 2147483648, %v577_v59  ;;  %v14042_v11 = vshrl.u32 %v11134_v40, 16 }
 0x105   : > { %vm11337_vm10 = vc.u32 %v10946_v49, %v14036_v44  ;;  %v11344_v25 = vmul.u32 %v14039_v58, %v10941_v46  ;;  %14041 = vst [vmem:[#allocation29_spill] sm:$0xff] %v11350_v51  ;;  %v671_v49 = vshrl.u32 %v11294_v21, 16  ;;  %v699_v61 = vsel %vm698_vm11, 1, %v14014_v23  ;;  %v2815_v44 = vld [vmem:[%s13833_s1 + $0x10] sm:$0xff] }
 0x106   : > { %v11360_v19 = vmul.u32 %v14042_v11, %v10938_v45  ;;  %v650_v29 = vsel %vm644_vm12, %v11279_v32, %v11286_v4  ;;  %v691_v10 = vshrl.u32 %v687_v18, 16  ;;  %v701_v41 = vadd.s32 %v699_v61, %v697_v24  ;;  %2850 = vmatpush.msra.mxu0 %v11353_v7  ;;  %2994 = vmatpush.msra.mxu3 %v11353_v7  ;;  %v2814_v32 = vld [vmem:[%s13833_s1 + $0x8] sm:$0xff] }
 0x107   : > { %v2908_v21 = vsub.f32 %v11348_v16, %v11353_v7  ;;  %v579_v2 = vsel %vm458_vm9, %v578_v12, %v577_v59  ;;  %v11372_v36 = vand.u32 3, %v600_v1  ;;  %v11374_v6 = vadd.s32 %v680_v60, %v671_v49  ;;  %2856 = vmatmul.f32.vlgmr.msra.gmra.mxu0 %v11350_v51  ;;  %2998 = vmatmul.f32.vlgmr.msra.gmra.mxu3 %v11289_v28 }
 0x108   : > { %v11381_v27 = vsel %vm11273_vm13, %v10802_v39, %v579_v2  ;;  %v693_v4 = vshrl.u32 %v11316_v62, 16  ;;  %v702_v18 = vadd.s32 %v701_v41, %v691_v10  ;;  %v14043_v1 = vand.u32 65535, %v10874_v63  ;;  %v2816_v62 = vld [vmem:[%s13833_s1 + $0x18] sm:$0xff]  ;;  %v2817_v63 = vld [vmem:[%s13833_s1 + $0x20] sm:$0xff] }
 0x109   : > { %2951 = vmatpush.msra.mxu2 %v2908_v21  ;;  %v584_v60 = vmul.f32 %v11381_v27, %v11381_v27  ;;  %v2909_v24 = vand.u32 4294901760, %v2908_v21  ;;  %v2823_v15 = vsel %vm13956_vm7, %v2814_v32, 0  ;;  %v11404_v58 = vadd.s32 %v696_v20, %v692_v14 }
 0x10a   : > { %v11390_v59 = vmul.u32 %v14043_v1, %v10914_v8  ;;  %2954 = vmatmul.f32.vlgmr.msra.gmra.mxu2 %v11266_v57  ;;  %v11407_v12 = vand.u32 4294901760, %v2823_v15  ;;  %v2826_v49 = vsel %vm13956_vm7, %v2815_v44, 0  ;;  %v2829_v61 = vsel %vm13956_vm7, %v2816_v62, 0 }
 0x10b   : > { %v2832_v11 = vsel %vm13956_vm7, %v2817_v63, 0  ;;  %v585_v10 = vmul.f32 -0.001358992, %v584_v60  ;;  %v592_v41 = vmul.f32 -0.00019511016, %v584_v60  ;;  %3044 = vmatpush.msrb.mxu0 %v2909_v24  ;;  %v2910_v2 = vsub.f32 %v2908_v21, %v2909_v24 }
 0x10c   : > { %v11412_v32 = vand.u32 4294901760, %v2826_v49  ;;  %v11415_v1 = vsub.f32 %v2823_v15, %v11407_v12  ;;  %v703_v20 = vadd.s32 %v702_v18, %v693_v4  ;;  %vm706_vm9 = vc.u32 %v11374_v6, %v11404_v58 }
 0x10d   : > { %v825_v14 = vshll.u32 %v11390_v59, 16  ;;  %v586_v44 = vadd.f32 0.041655596, %v585_v10  ;;  %v593_v35 = vadd.f32 0.008332121, %v592_v41  ;;  %v2911_v62 = vand.u32 4294901760, %v2910_v2 }
 0x10e   : > { %14044 = vst [vmem:[#allocation30_spill] sm:$0xff] %v11415_v1  ;;  %v11421_v63 = vsub.f32 %v2826_v49, %v11412_v32  ;;  %v11424_v54 = vand.u32 4294901760, %v11415_v1  ;;  %v11426_v21 = vand.u32 4294901760, %v2829_v61  ;;  %v11428_v24 = vand.u32 4294901760, %v2832_v11 }
 0x10f   : > { %v707_v15 = vadd.s32 1, %v703_v20  ;;  %v587_v4 = vmul.f32 %v586_v44, %v584_v60  ;;  %v594_v18 = vmul.f32 %v593_v35, %v584_v60  ;;  %2912 = vmatpush.msra.mxu1 %v2911_v62  ;;  %v704_v48 = vmul.u32 %v11263_v0, %v650_v29 }
 0x110   : > { %14045 = vst [vmem:[#allocation31_spill] sm:$0xff] %v11421_v63  ;;  %v828_v10 = vsel %vm11337_vm10, 1, %v14014_v23  ;;  %v2862_v49 = vsub.f32 %v11415_v1, %v11424_v54  ;;  %2914 = vmatmul.f32.vlgmr.msra.gmra.mxu1 %v11234_v30  ;;  %3004 = vmatmul.f32.gmra.mxu3 %v11424_v54  ;;  %v11439_v41 = vand.u32 4294901760, %v11421_v63  ;;  %vm831_vm12 = vc.u32 %v11123_v34, %v825_v14 }
 0x111   : > { %14046 = vst [vmem:[#allocation32_spill] sm:$0xff] %v11424_v54  ;;  %v708_v35 = vsel %vm706_vm9, %v707_v15, %v703_v20  ;;  %v14050_v0 = vshrl.u32 %v11134_v40, 16  ;;  %v588_v29 = vadd.f32 -0.4999988, %v587_v4  ;;  %v595_v2 = vadd.f32 -0.16666654, %v594_v18  ;;  %3082 = vmatpush.msrb.mxu1 %v11353_v7 }
 0x112   : > { %14047 = vst [vmem:[#allocation33_spill] sm:$0xff] %v11426_v21  ;;  %v709_v44 = vadd.s32 %v708_v35, %v704_v48  ;;  %v11451_v62 = vand.u32 4294901760, %v2862_v49  ;;  %2959 = vmatmul.f32.gmra.mxu2 %v11415_v1  ;;  %v11455_v38 = vsub.f32 %v2829_v61, %v11426_v21  ;;  %v11458_v20 = vsub.f32 %v2832_v11, %v11428_v24 }
 0x113   : > { %14048 = vst [vmem:[#allocation34_spill] sm:$0xff] %v11428_v24  ;;  %v11448_v17 = vmul.u32 %v14050_v0, %v10941_v46  ;;  %v830_v34 = vadd.s32 %v828_v10, %v10949_v47  ;;  %v589_v14 = vmul.f32 %v588_v29, %v584_v60  ;;  %v596_v15 = vmul.f32 %v595_v2, %v584_v60  ;;  %v14056_v29 = vld [vmem:[#allocation14_spill] sm:$0xff] }
 0x114   : > { %14049 = vst [vmem:[#allocation35_spill] sm:$0xff] %v11439_v41  ;;  %v710_v0 = vadd.s32 536870912, %v709_v44  ;;  %v832_v4 = vsel %vm831_vm12, 1, %v14014_v23  ;;  %vm599_vm14 = vweird.f32 %v10802_v39  ;;  %vm602_vm13 = vcmp.lt.s32.totalorder %v11372_v36, 2  ;;  %2864 = vmatmul.f32.gmra.mxu0 %v11451_v62 }
 0x115   : > { %14051 = vst [vmem:[#allocation36_spill] sm:$0xff] %v11455_v38  ;;  %vm603_vm15 = vcmp.eq.s32.totalorder %v11372_v36, 0  ;;  %v2870_v48 = vsub.f32 %v11421_v63, %v11439_v41  ;;  %v14053_v7 = vand.u32 65535, %v10890_v3  ;;  %v11473_v60 = vadd.f32 1.0, %v589_v14 }
 0x116   : > { %14052 = vst [vmem:[#allocation37_spill] sm:$0xff] %v11458_v20  ;;  %v597_v61 = vadd.f32 1.0, %v596_v15  ;;  %v711_v11 = vshrl.u32 %v710_v0, 30  ;;  %v845_v18 = vshll.u32 %v10952_v50, 16  ;;  %v11477_v10 = vand.u32 4294901760, %v11455_v38 }
 0x117   : > { %v11471_v47 = vmul.u32 %v14053_v7, %v10914_v8  ;;  %14054 = vst [vmem:[#allocation38_spill] sm:$0xff] %v11473_v60  ;;  %v824_v49 = vshrl.u32 %v10925_v33, 16  ;;  %v834_v35 = vadd.s32 %v832_v4, %v830_v34  ;;  %v14057_v2 = vmov %v14053_v7 }
 0x118   : > { %14055 = vst [vmem:[#allocation39_spill] sm:$0xff] %v11477_v10  ;;  %v841_v16 = vmul.u32 %v14057_v2, %v14056_v29  ;;  %v11484_v52 = vmul.f32 %v597_v61, %v11381_v27  ;;  %v13884_v8 = vxor.u32 2147483648, %v11473_v60  ;;  %v11488_v14 = vand.u32 4294901760, %v11458_v20  ;;  %2918 = vmatmul.f32.gmra.mxu1 %v11407_v12  ;;  %3010 = vmatmul.f32.gmra.mxu3 %v11439_v41 }
 0x119   : > { %v712_v15 = vshll.u32 %v711_v11, 30  ;;  %v11490_v0 = vand.u32 4294901760, %v2870_v48  ;;  %v847_v33 = vshll.u32 %v11471_v47, 16  ;;  %vm606_vm2 = vcmp.eq.s32.totalorder %v11372_v36, 2 }
 0x11a   : > { %14058 = vst [vmem:[#allocation14_spill] sm:$0xff] %v11484_v52  ;;  %vm849_vm1 = vc.u32 %v841_v16, %v845_v18  ;;  %v851_v3 = vadd.s32 %v845_v18, %v841_v16  ;;  %v13885_v34 = vxor.u32 2147483648, %v11484_v52  ;;  %v826_v4 = vshrl.u32 %v11390_v59, 16  ;;  %2964 = vmatmul.f32.gmra.mxu2 %v11421_v63 }
 0x11b   : > { %14059 = vst [vmem:[#allocation40_spill] sm:$0xff] %v11488_v14  ;;  %v11497_v27 = vsub.s32 %v709_v44, %v712_v15  ;;  %v2878_v48 = vsub.f32 %v11455_v38, %v11477_v10  ;;  %v835_v7 = vadd.s32 %v834_v35, %v824_v49  ;;  %v850_v61 = vsel %vm849_vm1, 1, %v14014_v23  ;;  %v14060_v35 = vld [vmem:[#allocation20_spill] sm:$0xff] }
 0x11c   : > { %vm853_vm3 = vc.u32 %v851_v3, %v847_v33  ;;  %v605_v16 = vsel %vm603_vm15, %v11473_v60, %v13885_v34  ;;  %v608_v44 = vsel %vm606_vm2, %v13884_v8, %v11484_v52  ;;  %2872 = vmatmul.f32.gmra.mxu0 %v11490_v0  ;;  %v2886_v49 = vsub.f32 %v11458_v20, %v11488_v14 }
 0x11d   : > { %vm714_vm4 = vcmp.lt.s32.totalorder %v11497_v27, 0  ;;  %v715_v59 = vsub.s32 0, %v11497_v27  ;;  %v609_v18 = vsel %vm602_vm13, %v605_v16, %v608_v44  ;;  %v852_v29 = vadd.s32 %v850_v61, %v14060_v35  ;;  %v14063_v35 = vld [vmem:[#allocation9_spill] sm:$0xff] }
 0x11e   : > { %v854_v2 = vsel %vm853_vm3, 1, %v14014_v23  ;;  %v11523_v15 = vsel %vm599_vm14, nan, %v609_v18  ;;  %v735_v34 = vsub.s32 4, %v711_v11  ;;  %v846_v60 = vshrl.u32 %v10952_v50, 16 }
 0x11f   : > { %14061 = vst [vmem:[#allocation20_spill] sm:$0xff] %v11523_v15  ;;  %v716_v8 = vsel %vm714_vm4, %v715_v59, %v11497_v27  ;;  %v3119_v36 = vand.u32 4294901760, %v11523_v15  ;;  %v11528_v44 = vadd.s32 %v835_v7, %v826_v4  ;;  %v856_v52 = vadd.s32 %v854_v2, %v852_v29 }
 0x120   : > { %v717_v16 = vclz %v716_v8  ;;  %v11530_v31 = vand.u32 4294901760, %v2878_v48  ;;  %vm613_vm6 = vcmp.lt.s32.totalorder %v10807_v43, 0  ;;  %v848_v61 = vshrl.u32 %v11471_v47, 16  ;;  %2922 = vmatmul.f32.gmra.mxu1 %v11412_v32  ;;  %3016 = vmatmul.f32.gmra.mxu3 %v11477_v10 }
 0x121   : > { %v13895_v18 = vand.u32 2147483647, %v14063_v35  ;;  %3120 = vmatpush.msrb.mxu2 %v3119_v36  ;;  %v3178_v59 = vsub.f32 %v11523_v15, %v3119_v36  ;;  %3264 = vmatpush.msra.mxu1 %v3119_v36  ;;  %v11536_v50 = vadd.s32 %v851_v3, %v847_v33  ;;  %v857_v41 = vadd.s32 %v856_v52, %v846_v60  ;;  %v14069_v3 = vld [vmem:[#allocation19_spill] sm:$0xff] }
 0x122   : > { %14062 = vst [vmem:[#allocation41_spill] sm:$0xff] %v11530_v31  ;;  %v10524_v39 = vadd.s32 4294967294, %v717_v16  ;;  %v11539_v8 = vadd.s32 4294967169, %v11191_v22  ;;  %v11543_v4 = vand.u32 4294901760, %v2886_v49  ;;  %v705_v47 = vadd.s32 %v11404_v58, %v11374_v6  ;;  %2969 = vmatmul.f32.gmra.mxu2 %v11455_v38  ;;  %v14068_v58 = vld [vmem:[#allocation15_spill] sm:$0xff] }
 0x123   : > { %v736_v48 = vsel %vm613_vm6, %v735_v34, %v711_v11  ;;  %v3179_v7 = vand.u32 4294901760, %v3178_v59  ;;  %3221 = vmatpush.msra.mxu0 %v3178_v59  ;;  %v14065_v52 = vand.u32 2147483647, %v10807_v43  ;;  %v858_v60 = vadd.s32 %v857_v41, %v848_v61 }
 0x124   : > { %14064 = vst [vmem:[#allocation42_spill] sm:$0xff] %v11543_v4  ;;  %vm10525_vm10 = vcmp.lt.s32.totalorder %v10524_v39, 0  ;;  %vm861_vm11 = vc.u32 %v11528_v44, %v11536_v50  ;;  %v928_v6 = vand.u32 8388607, %v13895_v18  ;;  %v938_v11 = vshll.u32 %v14013_v37, %v14068_v58  ;;  %2880 = vmatmul.f32.gmra.mxu0 %v11530_v31 }
 0x125   : > { %vm11552_vm8 = vcmp.le.f32.partialorder %v14065_v52, 0.7853982  ;;  %v720_v33 = vsel %vm10525_vm10, 0, %v10524_v39  ;;  %v939_v34 = vshrl.u32 %v14015_v55, %v14069_v3  ;;  %3314 = vmatpush.msra.mxu2 %v3179_v7  ;;  %v3180_v49 = vsub.f32 %v3178_v59, %v3179_v7 }
 0x126   : > { %v721_v29 = vsub.s32 32, %v720_v33  ;;  %v725_v2 = vsub.s32 4294967266, %v720_v33  ;;  %v941_v41 = vshll.u32 %v14015_v55, %v14068_v58  ;;  %v722_v39 = vshll.u32 %v11497_v27, %v720_v33 }
 0x127   : > { %v862_v16 = vadd.s32 1, %v858_v60  ;;  %v942_v61 = vshrl.u32 %v14016_v42, %v14069_v3  ;;  %v944_v52 = vshll.u32 %v14016_v42, %v14068_v58  ;;  %v3181_v18 = vand.u32 4294901760, %v3180_v49 }
 0x128   : > { %v723_v15 = vshrl.u32 %v705_v47, %v721_v29  ;;  %v726_v10 = vadd.s32 127, %v725_v2  ;;  %v945_v59 = vshrl.u32 %v14017_v56, %v14069_v3  ;;  %v947_v27 = vshll.u32 %v14017_v56, %v14068_v58  ;;  %v14070_v29 = vld [vmem:[#allocation11_spill] sm:$0xff]  ;;  %v14071_v2 = vld [vmem:[#allocation16_spill] sm:$0xff]  ;;  %2926 = vmatmul.f32.gmra.mxu1 %v11426_v21  ;;  %3022 = vmatmul.f32.gmra.mxu3 %v11488_v14 }
 0x129   : > { %v863_v7 = vsel %vm861_vm11, %v862_v16, %v858_v60  ;;  %v948_v33 = vshrl.u32 %v14018_v9, %v14069_v3  ;;  %v950_v38 = vshll.u32 %v14018_v9, %v14068_v58  ;;  %3182 = vmatpush.msrb.mxu3 %v3181_v18  ;;  %v14072_v35 = vmul.u32 %v14070_v29, %v14071_v2 }
 0x12a   : > { %v724_v49 = vor.u32 %v723_v15, %v722_v39  ;;  %v727_v47 = vshll.u32 %v726_v10, 23  ;;  %v951_v54 = vshrl.u32 %v14012_v26, %v14069_v3  ;;  %v929_v60 = vor.u32 8388608, %v928_v6  ;;  %2974 = vmatmul.f32.gmra.mxu2 %v11458_v20 }
 0x12b   : > { %v864_v63 = vadd.s32 %v863_v7, %v14072_v35  ;;  %3352 = vmatpush.msra.mxu3 %v3119_v36  ;;  %v11589_v16 = vor.u32 %v939_v34, %v938_v11  ;;  %v11591_v1 = vor.u32 %v942_v61, %v941_v41  ;;  %v949_v56 = vor.u32 %v948_v33, %v947_v27  ;;  %v14075_v11 = vld [vmem:[#allocation18_spill] sm:$0xff] }
 0x12c   : > { %v728_v10 = vor.u32 4788187, %v727_v47  ;;  %v11595_v18 = vor.u32 %v945_v59, %v944_v52  ;;  %v952_v35 = vor.u32 %v951_v54, %v950_v38  ;;  %v13910_v58 = vshll.u32 %v11227_v5, 16  ;;  %2888 = vmatmul.f32.gmra.mxu0 %v11543_v4 }
 0x12d   : > { %v865_v15 = vadd.s32 536870912, %v864_v63  ;;  %v14073_v36 = vand.u32 2139095040, %v10894_v13  ;;  %v11602_v6 = vsel %vm11552_vm8, 0, %v736_v48  ;;  %vm953_vm9 = vcmp.lt.s32.totalorder %v14075_v11, 1 }
 0x12e   : > { %14074 = vst [vmem:[#allocation15_spill] sm:$0xff] %v11602_v6  ;;  %v729_v34 = vand.u32 2147483647, %v728_v10  ;;  %v731_v41 = vcvt.s32.f32 %v724_v49  ;;  %vm956_vm12 = vcmp.lt.s32.totalorder %v14075_v11, 4  ;;  %vm955_vm13 = vcmp.lt.s32.totalorder %v14075_v11, 3 }
 0x12f   : > { %v1390_v39 = vshrl.u32 %v14073_v36, 23  ;;  %v11606_v61 = vshrl.u32 %v865_v15, 30  ;;  %v961_v38 = vsel %vm953_vm9, %v11589_v16, %v11591_v1  ;;  %v962_v54 = vsel %vm956_vm12, %v949_v56, 920167782 }
 0x130   : > { %v966_v48 = vsel %vm956_vm12, %v952_v35, 1326507024  ;;  %v732_v52 = vmul.f32 %v731_v41, %v729_v34  ;;  %v965_v7 = vsel %vm953_vm9, %v11591_v1, %v11595_v18  ;;  %v11623_v27 = vshll.u32 %v929_v60, 8  ;;  %v14077_v60 = vld [vmem:[#allocation23_spill] sm:$0xff]  ;;  %2930 = vmatmul.f32.gmra.mxu1 %v11428_v24  ;;  %3184 = vmatmul.f32.vlgmr.msrb.gmra.mxu3 %v11234_v30 }
 0x131   : > { %v867_v59 = vshll.u32 %v11606_v61, 30  ;;  %v11626_v33 = vadd.s32 1, %v11539_v8  ;;  %v14076_v49 = vand.u32 2147483647, %v10894_v13  ;;  %v963_v29 = vsel %vm955_vm13, %v11595_v18, %v962_v54 }
 0x132   : > { %v967_v2 = vsel %vm955_vm13, %v949_v56, %v966_v48  ;;  %v10538_v10 = vadd.s32 4294967169, %v1390_v39  ;;  %v733_v15 = vxor.u32 2147483648, %v732_v52  ;;  %vm954_vm15 = vcmp.lt.s32.totalorder %v14075_v11, 2  ;;  %3126 = vmatmul.f32.vlgmr.msrb.gmra.mxu2 %v11350_v51 }
 0x133   : > { %v11630_v47 = vand.u32 8388607, %v14076_v49  ;;  %v11637_v35 = vsub.s32 %v864_v63, %v867_v59  ;;  %v11643_v8 = vadd.s32 %v13910_v58, %v14077_v60  ;;  %v755_v36 = vadd.s32 3, %v11602_v6 }
 0x134   : > { %v11649_v34 = vsel %vm954_vm15, %v961_v38, %v963_v29  ;;  %v968_v56 = vsel %vm954_vm15, %v965_v7, %v967_v2  ;;  %v734_v63 = vsel %vm613_vm6, %v733_v15, %v732_v52  ;;  %v970_v41 = vand.u32 65535, %v11623_v27  ;;  %3046 = vmatmul.f32.vlgmr.msrb.gmra.mxu0 %v11234_v30 }
 0x135   : > { %vm869_vm1 = vcmp.lt.s32.totalorder %v11637_v35, 0  ;;  %v870_v39 = vsub.s32 0, %v11637_v35  ;;  %v11663_v38 = vsel %vm11552_vm8, %v10807_v43, %v734_v63  ;;  %v11666_v54 = vshrl.u32 %v11623_v27, 16 }
 0x136   : > { %v972_v48 = vand.u32 65535, %v968_v56  ;;  %v973_v59 = vshrl.u32 %v968_v56, 16  ;;  %v11668_v7 = vadd.s32 1, %v10538_v10  ;;  %v739_v52 = vmul.f32 %v11663_v38, %v11663_v38 }
 0x137   : > { %v871_v49 = vsel %vm869_vm1, %v870_v39, %v11637_v35  ;;  %v995_v29 = vshrl.u32 %v11649_v34, 16  ;;  %v860_v22 = vadd.s32 %v11536_v50, %v11528_v44  ;;  %v11682_v58 = vand.u32 3, %v755_v36 }
 0x138   : > { %v872_v2 = vclz %v871_v49  ;;  %v11677_v15 = vmul.u32 %v973_v59, %v970_v41  ;;  %v11680_v63 = vmul.u32 %v972_v48, %v11666_v54  ;;  %v740_v10 = vmul.f32 -0.001358992, %v739_v52  ;;  %3084 = vmatmul.f32.vlgmr.msrb.gmra.mxu1 %v11234_v30  ;;  %3188 = vmatmul.f32.gmra.mxu3 %v11407_v12 }
 0x139   : > { %v747_v56 = vmul.f32 -0.00019511016, %v739_v52  ;;  %v937_v6 = vshrl.u32 %v14013_v37, %v14069_v3  ;;  %v974_v39 = vmul.u32 %v972_v48, %v970_v41  ;;  %v994_v14 = vand.u32 65535, %v11649_v34 }
 0x13a   : > { %v10527_v13 = vadd.s32 4294967294, %v872_v2  ;;  %v978_v51 = vshll.u32 %v11677_v15, 16  ;;  %v741_v44 = vadd.f32 0.041655596, %v740_v10  ;;  %v977_v49 = vmul.u32 %v973_v59, %v11666_v54  ;;  %3134 = vmatmul.f32.gmra.mxu2 %v11451_v62 }
 0x13b   : > { %v748_v50 = vadd.f32 0.008332121, %v747_v56  ;;  %v11689_v20 = vmul.u32 %v995_v29, %v970_v41  ;;  %v980_v36 = vshll.u32 %v11680_v63, 16  ;;  %v11699_v56 = vsel %vm953_vm9, %v937_v6, %v11589_v16 }
 0x13c   : > { %vm10528_vm2 = vcmp.lt.s32.totalorder %v10527_v13, 0  ;;  %vm982_vm3 = vc.u32 %v974_v39, %v978_v51  ;;  %v984_v9 = vadd.s32 %v978_v51, %v974_v39  ;;  %v742_v3 = vmul.f32 %v741_v44, %v739_v52  ;;  %3050 = vmatmul.f32.gmra.mxu0 %v11407_v12 }
 0x13d   : > { %v749_v2 = vmul.f32 %v748_v50, %v739_v52  ;;  %v875_v34 = vsel %vm10528_vm2, 0, %v10527_v13  ;;  %v983_v48 = vsel %vm982_vm3, 1, %v14014_v23  ;;  %vm758_vm6 = vcmp.eq.s32.totalorder %v11682_v58, 0 }
 0x13e   : > { %v876_v10 = vsub.s32 32, %v875_v34  ;;  %v880_v59 = vsub.s32 4294967266, %v875_v34  ;;  %v985_v37 = vadd.s32 %v983_v48, %v977_v49  ;;  %v743_v26 = vadd.f32 -0.4999988, %v742_v3 }
 0x13f   : > { %v750_v28 = vadd.f32 -0.16666654, %v749_v2  ;;  %v877_v51 = vshll.u32 %v11637_v35, %v875_v34  ;;  %vm986_vm4 = vc.u32 %v984_v9, %v980_v36  ;;  %vm761_vm8 = vcmp.eq.s32.totalorder %v11682_v58, 2 }
 0x140   : > { %v878_v13 = vshrl.u32 %v860_v22, %v876_v10  ;;  %v881_v39 = vadd.s32 127, %v880_v59  ;;  %v987_v44 = vsel %vm986_vm4, 1, %v14014_v23  ;;  %v998_v50 = vmul.u32 %v994_v14, %v11666_v54  ;;  %3088 = vmatmul.f32.gmra.mxu1 %v11407_v12  ;;  %3192 = vmatmul.f32.gmra.mxu3 %v11412_v32 }
 0x141   : > { %v744_v16 = vmul.f32 %v743_v26, %v739_v52  ;;  %v751_v6 = vmul.f32 %v750_v28, %v739_v52  ;;  %vm757_vm10 = vcmp.lt.s32.totalorder %v11682_v58, 2  ;;  %v989_v49 = vadd.s32 %v987_v44, %v985_v37  ;;  %v14081_v52 = vld [vmem:[#allocation5_spill] sm:$0xff] }
 0x142   : > { %v1000_v3 = vshll.u32 %v11689_v20, 16  ;;  %v14078_v35 = vshll.u32 %v11227_v5, 16  ;;  %vm754_vm9 = vweird.f32 %v10807_v43  ;;  %v879_v22 = vor.u32 %v878_v13, %v877_v51  ;;  %3142 = vmatmul.f32.gmra.mxu2 %v11490_v0 }
 0x143   : > { %v882_v36 = vshll.u32 %v881_v39, 23  ;;  %v958_v26 = vsel %vm956_vm12, %v11595_v18, 2102212464  ;;  %v996_v28 = vmul.u32 %v994_v14, %v970_v41  ;;  %vm768_vm1 = vcmp.lt.s32.totalorder %v14081_v52, 0 }
 0x144   : > { %vm11712_vm11 = vc.u32 %v14077_v60, %v14078_v35  ;;  %v11721_v37 = vadd.f32 1.0, %v744_v16  ;;  %v752_v2 = vadd.f32 1.0, %v751_v6  ;;  %v979_v34 = vshrl.u32 %v11677_v15, 16  ;;  %3054 = vmatmul.f32.gmra.mxu0 %v11412_v32 }
 0x145   : > { %v999_v60 = vmul.u32 %v995_v29, %v11666_v54  ;;  %v883_v48 = vor.u32 4788187, %v882_v36  ;;  %v1002_v10 = vshll.u32 %v998_v50, 16  ;;  %vm1004_vm2 = vc.u32 %v996_v28, %v1000_v3 }
 0x146   : > { %14082 = vst [vmem:[#allocation19_spill] sm:$0xff] %v11721_v37  ;;  %v1006_v59 = vadd.s32 %v1000_v3, %v996_v28  ;;  %v11727_v51 = vmul.f32 %v752_v2, %v11663_v38  ;;  %v13927_v14 = vxor.u32 2147483648, %v11721_v37  ;;  %v990_v18 = vadd.s32 %v989_v49, %v979_v34 }
 0x147   : > { %v1005_v41 = vsel %vm1004_vm2, 1, %v14014_v23  ;;  %v884_v15 = vand.u32 2147483647, %v883_v48  ;;  %v886_v54 = vcvt.s32.f32 %v879_v22  ;;  %v959_v38 = vsel %vm955_vm13, %v11591_v1, %v958_v26 }
 0x148   : > { %14083 = vst [vmem:[#allocation11_spill] sm:$0xff] %v11727_v51  ;;  %v1007_v29 = vadd.s32 %v1005_v41, %v999_v60  ;;  %vm1008_vm12 = vc.u32 %v1006_v59, %v1002_v10  ;;  %v13928_v13 = vxor.u32 2147483648, %v11727_v51  ;;  %v981_v39 = vshrl.u32 %v11680_v63, 16  ;;  %3092 = vmatmul.f32.gmra.mxu1 %v11412_v32  ;;  %3196 = vmatmul.f32.gmra.mxu3 %v11426_v21 }
 0x149   : > { %v1009_v44 = vsel %vm1008_vm12, 1, %v14014_v23  ;;  %v887_v16 = vmul.f32 %v886_v54, %v884_v15  ;;  %v890_v6 = vsub.s32 4, %v11606_v61  ;;  %v1001_v49 = vshrl.u32 %v11689_v20, 16 }
 0x14a   : > { %v1011_v3 = vadd.s32 %v1009_v44, %v1007_v29  ;;  %v760_v35 = vsel %vm758_vm6, %v11721_v37, %v13928_v13  ;;  %v763_v1 = vsel %vm761_vm8, %v13927_v14, %v11727_v51  ;;  %v11752_v63 = vadd.s32 %v990_v18, %v981_v39  ;;  %3150 = vmatmul.f32.gmra.mxu2 %v11530_v31 }
 0x14b   : > { %v14084_v22 = vand.u32 65535, %v11128_v53  ;;  %v764_v20 = vsel %vm757_vm10, %v760_v35, %v763_v1  ;;  %v888_v26 = vxor.u32 2147483648, %v887_v16  ;;  %v1003_v28 = vshrl.u32 %v998_v50, 16 }
 0x14c   : > { %v1012_v2 = vadd.s32 %v1011_v3, %v1001_v49  ;;  %vm1397_vm13 = vcmp.gt.s32.totalorder %v11668_v7, 0  ;;  %v11764_v34 = vsel %vm754_vm9, nan, %v764_v20  ;;  %v14086_v60 = vand.u32 2147483647, %v14081_v52  ;;  %3058 = vmatmul.f32.gmra.mxu0 %v11426_v21 }
 0x14d   : > { %v11757_v36 = vmul.u32 %v14084_v22, %v10941_v46  ;;  %14085 = vst [vmem:[#allocation16_spill] sm:$0xff] %v11764_v34  ;;  %v960_v53 = vsel %vm954_vm15, %v11699_v56, %v959_v38  ;;  %v11775_v58 = vadd.s32 %v1006_v59, %v1002_v10  ;;  %v11778_v50 = vand.u32 4294901760, %v11764_v34 }
 0x14e   : > { %vm11768_vm3 = vcmp.le.f32.partialorder %v14086_v60, 0.7853982  ;;  %v889_v18 = vsel %vm768_vm1, %v888_v26, %v887_v16  ;;  %v891_v41 = vsel %vm768_vm1, %v890_v6, %v11606_v61  ;;  %v1013_v15 = vadd.s32 %v1012_v2, %v1003_v28 }
 0x14f   : > { %v11791_v11 = vsel %vm11768_vm3, %v14081_v52, %v889_v18  ;;  %vm1016_vm15 = vc.u32 %v11752_v63, %v11775_v58  ;;  %v1135_v56 = vshll.u32 %v11757_v36, 16  ;;  %v1138_v10 = vsel %vm11712_vm11, 1, %v14014_v23  ;;  %3390 = vmatpush.msrb.mxu0 %v11778_v50  ;;  %3534 = vmatpush.msrb.mxu3 %v11778_v50 }
 0x150   : > { %vm1242_vm4 = vcmp.gt.s32.totalorder %v11626_v33, 0  ;;  %v11804_v61 = vsub.f32 %v11764_v34, %v11778_v50  ;;  %v894_v59 = vmul.f32 %v11791_v11, %v11791_v11  ;;  %v1017_v54 = vadd.s32 1, %v1013_v15  ;;  %3096 = vmatmul.f32.gmra.mxu1 %v11426_v21  ;;  %3200 = vmatmul.f32.gmra.mxu3 %v11428_v24 }
 0x151   : > { %v1140_v29 = vadd.s32 %v1138_v10, %v11344_v25  ;;  %v1014_v9 = vmul.u32 %v11623_v27, %v960_v53  ;;  %vm1141_vm6 = vc.u32 %v11643_v8, %v1135_v56  ;;  %v14089_v38 = vand.u32 65535, %v11134_v40 }
 0x152   : > { %v1155_v44 = vshll.u32 %v11360_v19, 16  ;;  %3491 = vmatpush.msrb.mxu2 %v11804_v61  ;;  %v3449_v16 = vand.u32 4294901760, %v11804_v61  ;;  %v895_v6 = vmul.f32 -0.001358992, %v894_v59  ;;  %v902_v49 = vmul.f32 -0.00019511016, %v894_v59 }
 0x153   : > { %v1153_v39 = vmul.u32 %v14089_v38, %v10941_v46  ;;  %v1018_v25 = vsel %vm1016_vm15, %v1017_v54, %v1013_v15  ;;  %v1134_v27 = vshrl.u32 %v11227_v5, 16  ;;  %v1142_v8 = vsel %vm1141_vm6, 1, %v14014_v23  ;;  %3158 = vmatmul.f32.gmra.mxu2 %v11543_v4 }
 0x154   : > { %v1019_v3 = vadd.s32 %v1018_v25, %v1014_v9  ;;  %v14090_v46 = vmov %v14089_v38  ;;  %v3450_v1 = vsub.f32 %v11804_v61, %v3449_v16  ;;  %v896_v22 = vadd.f32 0.041655596, %v895_v6  ;;  %3062 = vmatmul.f32.gmra.mxu0 %v11428_v24 }
 0x155   : > { %v1151_v35 = vmul.u32 %v14090_v46, %v10938_v45  ;;  %v903_v20 = vadd.f32 0.008332121, %v902_v49  ;;  %v1144_v26 = vadd.s32 %v1142_v8, %v1140_v29  ;;  %v1157_v2 = vshll.u32 %v1153_v39, 16 }
 0x156   : > { %v1020_v28 = vadd.s32 536870912, %v1019_v3  ;;  %v3451_v53 = vand.u32 4294901760, %v3450_v1  ;;  %v11832_v5 = vsel %vm11768_vm3, 0, %v891_v41  ;;  %v897_v40 = vmul.f32 %v896_v22, %v894_v59 }
 0x157   : > { %vm1159_vm8 = vc.u32 %v1151_v35, %v1155_v44  ;;  %v1161_v60 = vadd.s32 %v1155_v44, %v1151_v35  ;;  %14091 = vst [vmem:[#allocation18_spill] sm:$0xff] %v11832_v5  ;;  %v904_v45 = vmul.f32 %v903_v20, %v894_v59  ;;  %v1145_v15 = vadd.s32 %v1144_v26, %v1134_v27 }
 0x158   : > { %v11836_v18 = vshrl.u32 %v1020_v28, 30  ;;  %v1160_v56 = vsel %vm1159_vm8, 1, %v14014_v23  ;;  %v1398_v10 = vsel %vm1397_vm13, %v11668_v7, 0  ;;  %3452 = vmatpush.msrb.mxu1 %v3451_v53  ;;  %v898_v48 = vadd.f32 -0.4999988, %v897_v40  ;;  %v14094_v28 = vld [vmem:[#allocation21_spill] sm:$0xff]  ;;  %3354 = vmatmul.f32.vlgmr.msra.gmra.mxu3 %v11234_v30 }
 0x159   : > { %vm1163_vm10 = vc.u32 %v1161_v60, %v1157_v2  ;;  %v905_v41 = vadd.f32 -0.16666654, %v904_v45  ;;  %v1162_v54 = vadd.s32 %v1160_v56, %v11448_v17  ;;  %v910_v29 = vadd.s32 3, %v11832_v5  ;;  %3100 = vmatmul.f32.gmra.mxu1 %v11428_v24  ;;  %v14095_v53 = vld [vmem:[#allocation17_spill] sm:$0xff] }
 0x15a   : > { %v1022_v9 = vshll.u32 %v11836_v18, 30  ;;  %v1136_v38 = vshrl.u32 %v11757_v36, 16  ;;  %v1164_v44 = vsel %vm1163_vm10, 1, %v14014_v23  ;;  %v899_v6 = vmul.f32 %v898_v48, %v894_v59 }
 0x15b   : > { %v906_v49 = vmul.f32 %v905_v41, %v894_v59  ;;  %v1156_v25 = vshrl.u32 %v11360_v19, 16  ;;  %v1166_v7 = vadd.s32 %v1164_v44, %v1162_v54  ;;  %v1243_v27 = vsel %vm1242_vm4, %v11626_v33, 0  ;;  %3316 = vmatmul.f32.vlgmr.msra.gmra.mxu2 %v11234_v30 }
 0x15c   : > { %v11852_v17 = vand.u32 31, %v1398_v10  ;;  %v11854_v8 = vsub.s32 %v1019_v3, %v1022_v9  ;;  %v11856_v46 = vadd.s32 %v1145_v15, %v1136_v38  ;;  %v11858_v35 = vadd.f32 1.0, %v899_v6  ;;  %3224 = vmatmul.f32.vlgmr.msra.gmra.mxu0 %v11266_v57 }
 0x15d   : > { %v907_v36 = vadd.f32 1.0, %v906_v49  ;;  %v1158_v1 = vshrl.u32 %v1153_v39, 16  ;;  %v1167_v22 = vadd.s32 %v1166_v7, %v1156_v25  ;;  %v911_v20 = vand.u32 3, %v910_v29  ;;  %3584 = vmatpush.msra.mxu0 %v3449_v16 }
 0x15e   : > { %14092 = vst [vmem:[#allocation23_spill] sm:$0xff] %v11858_v35  ;;  %vm1024_vm11 = vcmp.lt.s32.totalorder %v11854_v8, 0  ;;  %v1025_v19 = vsub.s32 0, %v11854_v8  ;;  %v11862_v59 = vadd.s32 %v1161_v60, %v1157_v2  ;;  %v13925_v3 = vxor.u32 2147483648, %v11858_v35 }
 0x15f   : > { %v11866_v33 = vmul.f32 %v907_v36, %v11791_v11  ;;  %v1168_v26 = vadd.s32 %v1167_v22, %v1158_v1  ;;  %v1169_v40 = vmul.u32 %v14095_v53, %v14094_v28  ;;  %v11877_v60 = vand.u32 31, %v1243_v27  ;;  %v14097_v1 = vld [vmem:[#allocation24_spill] sm:$0xff] }
 0x160   : > { %v1026_v2 = vsel %vm1024_vm11, %v1025_v19, %v11854_v8  ;;  %vm1171_vm1 = vc.u32 %v11856_v46, %v11862_v59  ;;  %v11881_v56 = vsub.s32 32, %v11852_v17  ;;  %vm912_vm2 = vcmp.lt.s32.totalorder %v911_v20, 2  ;;  %3358 = vmatmul.f32.gmra.mxu3 %v11407_v12 }
 0x161   : > { %14093 = vst [vmem:[#allocation43_spill] sm:$0xff] %v11866_v33  ;;  %v13926_v11 = vxor.u32 2147483648, %v11866_v33  ;;  %v1027_v45 = vclz %v1026_v2  ;;  %v1172_v15 = vadd.s32 1, %v1168_v26  ;;  %vm913_vm12 = vcmp.eq.s32.totalorder %v911_v20, 0  ;;  %3268 = vmatmul.f32.vlgmr.msra.gmra.mxu1 %v14097_v1 }
 0x162   : > { %vm916_vm13 = vcmp.eq.s32.totalorder %v911_v20, 2  ;;  %v11892_v9 = vshrl.u32 %v1243_v27, 5  ;;  %vm909_vm3 = vweird.f32 %v14081_v52  ;;  %v11896_v6 = vsub.s32 32, %v11877_v60  ;;  %3622 = vmatpush.msra.mxu1 %v11778_v50 }
 0x163   : > { %v915_v48 = vsel %vm913_vm12, %v11858_v35, %v13926_v11  ;;  %v918_v41 = vsel %vm916_vm13, %v13925_v3, %v11866_v33  ;;  %v10530_v54 = vadd.s32 4294967294, %v1027_v45  ;;  %v1173_v29 = vsel %vm1171_vm1, %v1172_v15, %v1168_v26  ;;  %3320 = vmatmul.f32.gmra.mxu2 %v11407_v12 }
 0x164   : > { %v919_v38 = vsel %vm912_vm2, %v915_v48, %v918_v41  ;;  %v1174_v44 = vadd.s32 %v1173_v29, %v1169_v40  ;;  %v11898_v61 = vshrl.u32 %v1398_v10, 5  ;;  %v1406_v49 = vshll.u32 %v14015_v55, %v11852_v17 }
 0x165   : > { %v11902_v16 = vsel %vm909_vm3, nan, %v919_v38  ;;  %vm10531_vm15 = vcmp.lt.s32.totalorder %v10530_v54, 0  ;;  %v1407_v36 = vshrl.u32 %v14016_v42, %v11881_v56  ;;  %v1015_v10 = vadd.s32 %v11775_v58, %v11752_v63  ;;  %v14102_v38 = vld [vmem:[#allocation30_spill] sm:$0xff] }
 0x166   : > { %14096 = vst [vmem:[#allocation21_spill] sm:$0xff] %v11902_v16  ;;  %v11907_v25 = vand.u32 4294901760, %v11902_v16  ;;  %v1030_v7 = vsel %vm10531_vm15, 0, %v10530_v54  ;;  %v1175_v27 = vadd.s32 536870912, %v1174_v44  ;;  %v14098_v19 = vmov 2102212464   ;;  %3229 = vmatmul.f32.gmra.mxu0 %v14102_v38 }
 0x167   : > { %v1031_v22 = vsub.s32 32, %v1030_v7  ;;  %v1035_v20 = vsub.s32 4294967266, %v1030_v7  ;;  %v1410_v26 = vshrl.u32 %v14098_v19, %v11881_v56  ;;  %v14099_v28 = vmov 1326507024  }
 0x168   : > { %v1416_v53 = vshrl.u32 %v14099_v28, %v11881_v56  ;;  %v11920_v40 = vsub.f32 %v11902_v16, %v11907_v25  ;;  %3660 = vmatpush.msra.mxu2 %v11907_v25  ;;  %v11924_v2 = vshrl.u32 %v1175_v27, 30  ;;  %v14101_v63 = vmov 920167782   ;;  %3362 = vmatmul.f32.gmra.mxu3 %v11412_v32 }
 0x169   : > { %v1413_v58 = vshrl.u32 %v14101_v63, %v11881_v56  ;;  %v1032_v45 = vshll.u32 %v11854_v8, %v1030_v7  ;;  %v1033_v15 = vshrl.u32 %v1015_v10, %v1031_v22  ;;  %v1036_v48 = vadd.s32 127, %v1035_v20 }
 0x16a   : > { %14100 = vst [vmem:[#allocation17_spill] sm:$0xff] %v11924_v2  ;;  %v1409_v41 = vshll.u32 %v14016_v42, %v11852_v17  ;;  %v1415_v54 = vshll.u32 %v14101_v63, %v11852_v17  ;;  %v13930_v29 = vand.u32 4294901760, %v11920_v40  ;;  %v1177_v27 = vshll.u32 %v11924_v2, 30 }
 0x16b   : > { %v1412_v50 = vshll.u32 %v14098_v19, %v11852_v17  ;;  %vm1421_vm4 = vcmp.lt.s32.totalorder %v11898_v61, 4  ;;  %v1034_v8 = vor.u32 %v1033_v15, %v1032_v45  ;;  %v1037_v7 = vshll.u32 %v1036_v48, 23  ;;  %v14105_v45 = vld [vmem:[#allocation32_spill] sm:$0xff]  ;;  %3324 = vmatmul.f32.gmra.mxu2 %v11412_v32 }
 0x16c   : > { %v11941_v10 = vor.u32 %v1407_v36, %v1406_v49  ;;  %v1417_v22 = vor.u32 %v1416_v53, %v1415_v54  ;;  %v3720_v20 = vsub.f32 %v11920_v40, %v13930_v29  ;;  %v11946_v3 = vsub.s32 %v1174_v44, %v1177_v27  ;;  %v14104_v36 = vld [vmem:[#allocation12_spill] sm:$0xff]  ;;  %3274 = vmatmul.f32.gmra.mxu1 %v14105_v45 }
 0x16d   : > { %v11948_v11 = vor.u32 %v1410_v26, %v1409_v41  ;;  %v11950_v14 = vor.u32 %v1413_v58, %v1412_v50  ;;  %v1038_v13 = vor.u32 4788187, %v1037_v7  ;;  %v1258_v39 = vshrl.u32 %v14101_v63, %v11896_v6 }
 0x16e   : > { %14103 = vst [vmem:[#allocation24_spill] sm:$0xff] %v11941_v10  ;;  %v3721_v52 = vand.u32 4294901760, %v3720_v20  ;;  %vm1179_vm6 = vcmp.lt.s32.totalorder %v11946_v3, 0  ;;  %v1180_v49 = vsub.s32 0, %v11946_v3  ;;  %v13933_v53 = vand.u32 2147483647, %v14104_v36 }
 0x16f   : > { %v1039_v15 = vand.u32 2147483647, %v1038_v13  ;;  %v1041_v44 = vcvt.s32.f32 %v1034_v8  ;;  %v1249_v26 = vshrl.u32 %v14015_v55, %v11896_v6  ;;  %v1257_v58 = vshll.u32 %v14098_v19, %v11877_v60  ;;  %v14118_v36 = vld [vmem:[#allocation37_spill] sm:$0xff] }
 0x170   : > { %vm1418_vm8 = vcmp.lt.s32.totalorder %v11898_v61, 1  ;;  %v1431_v48 = vsel %vm1421_vm4, %v1417_v22, 1326507024  ;;  %3722 = vmatpush.msra.mxu3 %v3721_v52  ;;  %v1181_v41 = vsel %vm1179_vm6, %v1180_v49, %v11946_v3  ;;  %v1252_v54 = vshrl.u32 %v14016_v42, %v11896_v6  ;;  %v14107_v22 = vld [vmem:[#allocation31_spill] sm:$0xff] }
 0x171   : > { %v1255_v13 = vshrl.u32 %v14098_v19, %v11896_v6  ;;  %v1042_v27 = vmul.f32 %v1041_v44, %v1039_v15  ;;  %v1182_v50 = vclz %v1181_v41  ;;  %v14106_v8 = vmov 683565275   ;;  %3234 = vmatmul.f32.gmra.mxu0 %v14107_v22  ;;  %v14108_v15 = vld [vmem:[#allocation9_spill] sm:$0xff]  ;;  %3366 = vmatmul.f32.gmra.mxu3 %v11426_v21 }
 0x172   : > { %v1248_v7 = vshll.u32 %v14106_v8, %v11877_v60  ;;  %v1259_v20 = vor.u32 %v1258_v39, %v1257_v58  ;;  %v1238_v52 = vand.u32 8388607, %v13933_v53  ;;  %v1251_v49 = vshll.u32 %v14015_v55, %v11877_v60 }
 0x173   : > { %v1254_v19 = vshll.u32 %v14016_v42, %v11877_v60  ;;  %v1261_v29 = vshrl.u32 %v14099_v28, %v11896_v6  ;;  %vm923_vm10 = vcmp.lt.s32.totalorder %v14108_v15, 0  ;;  %v1043_v44 = vxor.u32 2147483648, %v1042_v27  ;;  %3328 = vmatmul.f32.gmra.mxu2 %v11426_v21 }
 0x174   : > { %v10533_v41 = vadd.s32 4294967294, %v1182_v50  ;;  %v11984_v16 = vor.u32 %v1249_v26, %v1248_v7  ;;  %v11986_v39 = vor.u32 %v1252_v54, %v1251_v49  ;;  %v1260_v53 = vshll.u32 %v14101_v63, %v11877_v60  ;;  %v14112_v7 = vld [vmem:[#allocation35_spill] sm:$0xff] }
 0x175   : > { %v11988_v58 = vor.u32 %v1255_v13, %v1254_v19  ;;  %vm1266_vm11 = vcmp.lt.s32.totalorder %v11892_v9, 4  ;;  %v14109_v42 = vand.u32 2147483647, %v14108_v15  ;;  %v1044_v28 = vsel %vm923_vm10, %v1043_v44, %v1042_v27  ;;  %3280 = vmatmul.f32.gmra.mxu1 %v14112_v7 }
 0x176   : > { %vm10534_vm2 = vcmp.lt.s32.totalorder %v10533_v41, 0  ;;  %v1272_v26 = vsel %vm1266_vm11, %v1259_v20, 920167782  ;;  %v1239_v63 = vor.u32 8388608, %v1238_v52  ;;  %v1262_v13 = vor.u32 %v1261_v29, %v1260_v53 }
 0x177   : > { %vm11995_vm1 = vcmp.le.f32.partialorder %v14109_v42, 0.7853982  ;;  %v12008_v60 = vsel %vm10534_vm2, 0, %v10533_v41  ;;  %v1404_v50 = vshrl.u32 %v14015_v55, %v11881_v56  ;;  %vm1263_vm12 = vcmp.lt.s32.totalorder %v11892_v9, 1  ;;  %v14115_v42 = vld [vmem:[#allocation36_spill] sm:$0xff] }
 0x178   : > { %v12006_v54 = vsel %vm11995_vm1, %v14108_v15, %v1044_v28  ;;  %vm1265_vm13 = vcmp.lt.s32.totalorder %v11892_v9, 3  ;;  %vm1420_vm15 = vcmp.lt.s32.totalorder %v11898_v61, 3  ;;  %v1190_v49 = vsub.s32 4294967266, %v12008_v60 }
 0x179   : > { %v12015_v27 = vmul.f32 %v12006_v54, %v12006_v54  ;;  %v1271_v29 = vsel %vm1263_vm12, %v11984_v16, %v11986_v39  ;;  %v1273_v55 = vsel %vm1265_vm13, %v11988_v58, %v1272_v26  ;;  %v1403_v53 = vshll.u32 %v14106_v8, %v11852_v17  ;;  %3239 = vmatmul.f32.gmra.mxu0 %v14115_v42 }
 0x17a   : > { %v1430_v52 = vsel %vm1418_vm8, %v11941_v10, %v11948_v11  ;;  %v1432_v19 = vsel %vm1420_vm15, %v11950_v14, %v1431_v48  ;;  %v14113_v44 = vor.u32 8388608, %v11630_v47  ;;  %vm1264_vm6 = vcmp.lt.s32.totalorder %v11892_v9, 2  ;;  %3370 = vmatmul.f32.gmra.mxu3 %v11428_v24 }
 0x17b   : > { %v1275_v17 = vsel %vm1263_vm12, %v11986_v39, %v11988_v58  ;;  %v1276_v48 = vsel %vm1266_vm11, %v1262_v13, 1326507024  ;;  %v12051_v28 = vshll.u32 %v1239_v63, 8  ;;  %v1057_v47 = vmul.f32 -0.00019511016, %v12015_v27  ;;  %3332 = vmatmul.f32.gmra.mxu2 %v11428_v24 }
 0x17c   : > { %v12039_v41 = vshll.u32 %v14113_v44, 8  ;;  %v1191_v26 = vadd.s32 127, %v1190_v49  ;;  %v1274_v44 = vsel %vm1264_vm6, %v1271_v29, %v1273_v55  ;;  %v1277_v33 = vsel %vm1265_vm13, %v1259_v20, %v1276_v48  ;;  %v14117_v48 = vld [vmem:[#allocation39_spill] sm:$0xff] }
 0x17d   : > { %v12058_v5 = vor.u32 %v1404_v50, %v1403_v53  ;;  %vm1419_vm2 = vcmp.lt.s32.totalorder %v11898_v61, 2  ;;  %v1278_v43 = vsel %vm1264_vm6, %v1275_v17, %v1277_v33  ;;  %v1427_v63 = vsel %vm1421_vm4, %v11950_v14, 920167782  ;;  %3286 = vmatmul.f32.gmra.mxu1 %v14117_v48  ;;  %v14140_v61 = vld [vmem:[#allocation37_spill] sm:$0xff] }
 0x17e   : > { %14114 = vst [vmem:[#allocation30_spill] sm:$0xff] %v12039_v41  ;;  %v12068_v13 = vsel %vm1419_vm2, %v1430_v52, %v1432_v19  ;;  %v1282_v49 = vand.u32 65535, %v1278_v43  ;;  %v1280_v29 = vand.u32 65535, %v12051_v28  ;;  %v1281_v20 = vshrl.u32 %v12051_v28, 16 }
 0x17f   : > { %14116 = vst [vmem:[#allocation32_spill] sm:$0xff] %v12058_v5  ;;  %v1283_v50 = vshrl.u32 %v1278_v43, 16  ;;  %v1305_v55 = vshrl.u32 %v1274_v44, 16  ;;  %v12073_v53 = vand.u32 65535, %v12039_v41  ;;  %v1058_v33 = vadd.f32 0.008332121, %v1057_v47 }
 0x180   : > { %v1186_v17 = vsub.s32 32, %v12008_v60  ;;  %v1192_v14 = vshll.u32 %v1191_v26, 23  ;;  %v1426_v52 = vsel %vm1418_vm8, %v12058_v5, %v11941_v10  ;;  %v12082_v19 = vshrl.u32 %v12039_v41, 16 }
 0x181   : > { %v1285_v34 = vmul.u32 %v1283_v50, %v1280_v29  ;;  %v12084_v43 = vmul.u32 %v1282_v49, %v1281_v20  ;;  %v1428_v37 = vsel %vm1420_vm15, %v11948_v11, %v1427_v63  ;;  %v1170_v26 = vadd.s32 %v11862_v59, %v11856_v46  ;;  %3244 = vmatmul.f32.gmra.mxu0 %v14118_v36 }
 0x182   : > { %v1304_v51 = vand.u32 65535, %v1274_v44  ;;  %v1050_v2 = vmul.f32 -0.001358992, %v12015_v27  ;;  %v1284_v4 = vmul.u32 %v1282_v49, %v1280_v29  ;;  %v12096_v21 = vmul.u32 %v1305_v55, %v1280_v29  ;;  %3538 = vmatmul.f32.vlgmr.msrb.gmra.mxu3 %v14097_v1 }
 0x183   : > { %v1288_v41 = vshll.u32 %v1285_v34, 16  ;;  %v1059_v63 = vmul.f32 %v1058_v33, %v12015_v27  ;;  %v1188_v31 = vshrl.u32 %v1170_v26, %v1186_v17  ;;  %v1193_v47 = vor.u32 4788187, %v1192_v14  ;;  %3494 = vmatmul.f32.vlgmr.msrb.gmra.mxu2 %v11266_v57  ;;  %3892 = vmatpush.msrb.mxu3 %v11907_v25 }
 0x184   : > { %v1287_v42 = vmul.u32 %v1283_v50, %v1281_v20  ;;  %v1290_v48 = vshll.u32 %v12084_v43, 16  ;;  %v1310_v46 = vshll.u32 %v12096_v21, 16  ;;  %v1045_v59 = vsub.s32 4, %v11836_v18 }
 0x185   : > { %vm1292_vm7 = vc.u32 %v1284_v4, %v1288_v41  ;;  %v1294_v24 = vadd.s32 %v1288_v41, %v1284_v4  ;;  %v1187_v44 = vshll.u32 %v11946_v3, %v12008_v60  ;;  %v12105_v36 = vmul.u32 %v1304_v51, %v1281_v20  ;;  %v14119_v4 = vld [vmem:[#allocation40_spill] sm:$0xff] }
 0x186   : > { %v1293_v49 = vsel %vm1292_vm7, 1, %v14014_v23  ;;  %v1051_v10 = vadd.f32 0.041655596, %v1050_v2  ;;  %v1306_v17 = vmul.u32 %v1304_v51, %v1280_v29  ;;  %v12109_v50 = vsel %vm1419_vm2, %v1426_v52, %v1428_v37  ;;  %3292 = vmatmul.f32.gmra.mxu1 %v14119_v4  ;;  %v14121_v29 = vld [vmem:[#allocation29_spill] sm:$0xff] }
 0x187   : > { %v1295_v33 = vadd.s32 %v1293_v49, %v1287_v42  ;;  %vm1296_vm0 = vc.u32 %v1294_v24, %v1290_v48  ;;  %v1060_v41 = vadd.f32 -0.16666654, %v1059_v63  ;;  %v1189_v14 = vor.u32 %v1188_v31, %v1187_v44 }
 0x188   : > { %v1297_v26 = vsel %vm1296_vm0, 1, %v14014_v23  ;;  %v14120_v3 = vshrl.u32 %v12068_v13, 16  ;;  %v1194_v5 = vand.u32 2147483647, %v1193_v47  ;;  %vm1314_vm7 = vc.u32 %v1306_v17, %v1310_v46 }
 0x189   : > { %v1299_v2 = vadd.s32 %v1297_v26, %v1295_v33  ;;  %v1309_v24 = vmul.u32 %v1305_v55, %v1281_v20  ;;  %v1312_v37 = vshll.u32 %v12105_v36, 16  ;;  %v1315_v51 = vsel %vm1314_vm7, 1, %v14014_v23  ;;  %3396 = vmatmul.f32.vlgmr.msrb.gmra.mxu0 %v14121_v29 }
 0x18a   : > { %v12116_v60 = vmul.u32 %v14120_v3, %v12073_v53  ;;  %v1316_v31 = vadd.s32 %v1310_v46, %v1306_v17  ;;  %v1437_v42 = vand.u32 65535, %v12068_v13  ;;  %v1046_v48 = vsel %vm923_vm10, %v1045_v59, %v11836_v18  ;;  %3761 = vmatpush.msrb.mxu0 %v11920_v40  ;;  %3544 = vmatmul.f32.gmra.mxu3 %v14105_v45 }
 0x18b   : > { %v1052_v52 = vmul.f32 %v1051_v10, %v12015_v27  ;;  %v1289_v47 = vshrl.u32 %v1285_v34, 16  ;;  %v14122_v20 = vand.u32 4294901760, %v11920_v40  ;;  %v1061_v55 = vmul.f32 %v1060_v41, %v12015_v27  ;;  %v2857_v34 = vpop.f32.mrf.mxu0  ;;  %3499 = vmatmul.f32.gmra.mxu2 %v14102_v38 }
 0x18c   : > { %v1196_v63 = vcvt.s32.f32 %v1189_v14  ;;  %v1317_v46 = vadd.s32 %v1315_v51, %v1309_v24  ;;  %vm1318_vm0 = vc.u32 %v1316_v31, %v1312_v37  ;;  %v1443_v44 = vshll.u32 %v12116_v60, 16  ;;  %v14124_v51 = vld [vmem:[#allocation10_spill] sm:$0xff] }
 0x18d   : > { %3854 = vmatpush.msrb.mxu2 %v14122_v20  ;;  %v1460_v49 = vshrl.u32 %v12109_v50, 16  ;;  %v1268_v18 = vsel %vm1266_vm11, %v11988_v58, 2102212464  ;;  %v1300_v10 = vadd.s32 %v1299_v2, %v1289_v47  ;;  %v12140_v59 = vsel %vm11995_vm1, 0, %v1046_v48 }
 0x18e   : > { %14123 = vst [vmem:[#allocation31_spill] sm:$0xff] %v12140_v59  ;;  %v1197_v40 = vmul.f32 %v1196_v63, %v1194_v5  ;;  %v1247_v33 = vshrl.u32 %v14106_v8, %v11896_v6  ;;  %v1319_v17 = vsel %vm1318_vm0, 1, %v14014_v23  ;;  %v1053_v41 = vadd.f32 -0.4999988, %v1052_v52  ;;  %3454 = vmatmul.f32.vlgmr.msrb.gmra.mxu1 %v11234_v30 }
 0x18f   : > { %v1291_v14 = vshrl.u32 %v12084_v43, 16  ;;  %v1311_v26 = vshrl.u32 %v12096_v21, 16  ;;  %v1321_v3 = vadd.s32 %v1319_v17, %v1317_v46  ;;  %v1439_v58 = vmul.u32 %v1437_v42, %v12073_v53  ;;  %3804 = vmatpush.msrb.mxu1 %v11907_v25  ;;  %v2915_v46 = vpop.f32.mrf.mxu1 }
 0x190   : > { %v1062_v2 = vadd.f32 1.0, %v1061_v55  ;;  %v1267_v5 = vsel %vm1263_vm12, %v1247_v33, %v11984_v16  ;;  %v1269_v35 = vsel %vm1265_vm13, %v11986_v39, %v1268_v18  ;;  %v1313_v21 = vshrl.u32 %v12105_v36, 16  ;;  %v2999_v16 = vpop.f32.mrf.mxu3  ;;  %v2955_v18 = vpop.f32.mrf.mxu2 }
 0x191   : > { %v12156_v6 = vadd.s32 %v1300_v10, %v1291_v14  ;;  %v1322_v43 = vadd.s32 %v1321_v3, %v1311_v26  ;;  %v12160_v24 = vmul.u32 %v1437_v42, %v12082_v19  ;;  %vm1078_vm10 = vcmp.lt.s32.totalorder %v14124_v51, 0  ;;  %3404 = vmatmul.f32.gmra.mxu0 %v11451_v62 }
 0x192   : > { %vm12163_vm11 = vc.u32 %v1439_v58, %v1443_v44  ;;  %v1065_v25 = vadd.s32 3, %v12140_v59  ;;  %v1198_v39 = vxor.u32 2147483648, %v1197_v40  ;;  %v1449_v52 = vadd.s32 %v1443_v44, %v1439_v58  ;;  %3550 = vmatmul.f32.gmra.mxu3 %v14112_v7 }
 0x193   : > { %v1054_v36 = vmul.f32 %v1053_v41, %v12015_v27  ;;  %v12172_v42 = vadd.s32 %v1316_v31, %v1312_v37  ;;  %v1323_v47 = vadd.s32 %v1322_v43, %v1313_v21  ;;  %v14127_v20 = vshrl.u32 %v12068_v13, 16  ;;  %v2865_v26 = vpop.f32.mrf.mxu0  ;;  %3504 = vmatmul.f32.gmra.mxu2 %v14107_v22 }
 0x194   : > { %v1459_v63 = vand.u32 65535, %v12109_v50  ;;  %v12179_v10 = vmul.f32 %v1062_v2, %v12006_v54  ;;  %v1270_v44 = vsel %vm1264_vm6, %v1267_v5, %v1269_v35  ;;  %v12186_v27 = vmul.u32 %v1460_v49, %v12073_v53 }
 0x195   : > { %v1442_v55 = vmul.u32 %v14127_v20, %v12082_v19  ;;  %v2916_v37 = vadd.f32 %v2915_v46, %v2857_v34  ;;  %vm1326_vm1 = vc.u32 %v12156_v6, %v12172_v42  ;;  %v1445_v13 = vshll.u32 %v12160_v24, 16 }
 0x196   : > { %14128 = vst [vmem:[#allocation35_spill] sm:$0xff] %v12179_v10  ;;  %v1066_v31 = vand.u32 3, %v1065_v25  ;;  %v1199_v33 = vsel %vm1078_vm10, %v1198_v39, %v1197_v40  ;;  %v1327_v54 = vadd.s32 1, %v1323_v47  ;;  %v1448_v9 = vsel %vm12163_vm11, 1, %v14014_v23  ;;  %3458 = vmatmul.f32.gmra.mxu1 %v11407_v12 }
 0x197   : > { %v2956_v17 = vadd.f32 %v2955_v18, %v2916_v37  ;;  %v12196_v41 = vadd.f32 1.0, %v1054_v36  ;;  %v1324_v14 = vmul.u32 %v12051_v28, %v1270_v44  ;;  %vm1451_vm12 = vc.u32 %v1449_v52, %v1445_v13  ;;  %v2919_v36 = vpop.f32.mrf.mxu1 }
 0x198   : > { %v1402_v34 = vshrl.u32 %v14106_v8, %v11881_v56  ;;  %v13963_v3 = vxor.u32 2147483648, %v12179_v10  ;;  %v14130_v40 = vand.u32 2147483647, %v14124_v51  ;;  %v1328_v2 = vsel %vm1326_vm1, %v1327_v54, %v1323_v47  ;;  %v3005_v21 = vpop.f32.mrf.mxu3  ;;  %v2960_v47 = vpop.f32.mrf.mxu2 }
 0x199   : > { %14129 = vst [vmem:[#allocation40_spill] sm:$0xff] %v12196_v41  ;;  %v12209_v5 = vadd.f32 %v2999_v16, %v2956_v17  ;;  %v1329_v56 = vadd.s32 %v1328_v2, %v1324_v14  ;;  %v1450_v8 = vadd.s32 %v1448_v9, %v1442_v55  ;;  %v1423_v35 = vsel %vm1421_vm4, %v11948_v11, 2102212464  ;;  %3412 = vmatmul.f32.gmra.mxu0 %v11490_v0 }
 0x19a   : > { %vm12205_vm13 = vcmp.le.f32.partialorder %v14130_v40, 0.7853982  ;;  %v1452_v43 = vsel %vm1451_vm12, 1, %v14014_v23  ;;  %v12223_v48 = vmul.u32 %v1459_v63, %v12082_v19  ;;  %v1465_v16 = vshll.u32 %v12186_v27, 16 }
 0x19b   : > { %v12214_v28 = vsel %vm12205_vm13, %v14124_v51, %v1199_v33  ;;  %vm1068_vm6 = vcmp.eq.s32.totalorder %v1066_v31, 0  ;;  %v13962_v25 = vxor.u32 2147483648, %v12196_v41  ;;  %v1330_v39 = vadd.s32 536870912, %v1329_v56  ;;  %v2873_v33 = vpop.f32.mrf.mxu0 }
 0x19c   : > { %v1461_v11 = vmul.u32 %v1459_v63, %v12073_v53  ;;  %v1464_v52 = vmul.u32 %v1460_v49, %v12082_v19  ;;  %vm1067_vm4 = vcmp.lt.s32.totalorder %v1066_v31, 2  ;;  %v1070_v20 = vsel %vm1068_vm6, %v12196_v41, %v13963_v3  ;;  %v14144_v3 = vld [vmem:[#allocation34_spill] sm:$0xff] }
 0x19d   : > { %v12237_v55 = vmul.f32 %v12214_v28, %v12214_v28  ;;  %v2920_v46 = vadd.f32 %v2919_v36, %v2865_v26  ;;  %v12239_v18 = vshrl.u32 %v1330_v39, 30  ;;  %v1454_v44 = vadd.s32 %v1452_v43, %v1450_v8  ;;  %v14133_v8 = vld [vmem:[#allocation32_spill] sm:$0xff] }
 0x19e   : > { %vm1469_vm7 = vc.u32 %v1461_v11, %v1465_v16  ;;  %vm1071_vm0 = vcmp.eq.s32.totalorder %v1066_v31, 2  ;;  %v1467_v53 = vshll.u32 %v12223_v48, 16  ;;  %v1471_v50 = vadd.s32 %v1465_v16, %v1461_v11  ;;  %3462 = vmatmul.f32.gmra.mxu1 %v11412_v32  ;;  %v14134_v43 = vld [vmem:[#allocation24_spill] sm:$0xff]  ;;  %v14135_v16 = vld [vmem:[#allocation39_spill] sm:$0xff] }
 0x19f   : > { %v1470_v19 = vsel %vm1469_vm7, 1, %v14014_v23  ;;  %v2961_v49 = vadd.f32 %v2960_v47, %v2920_v46  ;;  %v1073_v63 = vsel %vm1071_vm0, %v13962_v25, %v12179_v10  ;;  %v1332_v37 = vshll.u32 %v12239_v18, 30  ;;  %3556 = vmatmul.f32.gmra.mxu3 %v14135_v16  ;;  %v14136_v39 = vld [vmem:[#allocation36_spill] sm:$0xff] }
 0x1a0   : > { %v1444_v13 = vshrl.u32 %v12116_v60, 16  ;;  %v1074_v54 = vsel %vm1067_vm4, %v1070_v20, %v1073_v63  ;;  %v1212_v9 = vmul.f32 -0.00019511016, %v12237_v55  ;;  %v1472_v17 = vadd.s32 %v1470_v19, %v1464_v52  ;;  %3509 = vmatmul.f32.gmra.mxu2 %v14136_v39  ;;  %v3011_v11 = vpop.f32.mrf.mxu3  ;;  %v2923_v20 = vpop.f32.mrf.mxu1 }
 0x1a1   : > { %vm1473_vm11 = vc.u32 %v1471_v50, %v1467_v53  ;;  %v12251_v14 = vadd.f32 %v3005_v21, %v2961_v49  ;;  %v12253_v26 = vsub.s32 %v1329_v56, %v1332_v37  ;;  %v1422_v60 = vsel %vm1418_vm8, %v1402_v34, %v14133_v8  ;;  %v14137_v21 = vld [vmem:[#allocation41_spill] sm:$0xff]  ;;  %v2965_v34 = vpop.f32.mrf.mxu2 }
 0x1a2   : > { %v1455_v40 = vadd.s32 %v1454_v44, %v1444_v13  ;;  %v1474_v2 = vsel %vm1473_vm11, 1, %v14014_v23  ;;  %v1424_v31 = vsel %vm1420_vm15, %v14134_v43, %v1423_v35  ;;  %3420 = vmatmul.f32.gmra.mxu0 %v14137_v21  ;;  %vm1064_vm1 = vweird.f32 %v14108_v15 }
 0x1a3   : > { %vm1334_vm12 = vcmp.lt.s32.totalorder %v12253_v26, 0  ;;  %v1335_v23 = vsub.s32 0, %v12253_v26  ;;  %v1446_v56 = vshrl.u32 %v12160_v24, 16  ;;  %v12271_v52 = vsel %vm1064_vm1, nan, %v1074_v54 }
 0x1a4   : > { %14138 = vst [vmem:[#allocation29_spill] sm:$0xff] %v12271_v52  ;;  %v1213_v35 = vadd.f32 0.008332121, %v1212_v9  ;;  %v1466_v36 = vshrl.u32 %v12186_v27, 16  ;;  %v1476_v47 = vadd.s32 %v1474_v2, %v1472_v17  ;;  %v1205_v46 = vmul.f32 -0.001358992, %v12237_v55  ;;  %v2881_v9 = vpop.f32.mrf.mxu0 }
 0x1a5   : > { %v1336_v44 = vsel %vm1334_vm12, %v1335_v23, %v12253_v26  ;;  %v12276_v19 = vadd.s32 %v1455_v40, %v1446_v56  ;;  %v2924_v49 = vadd.f32 %v2923_v20, %v2873_v33  ;;  %v1468_v24 = vshrl.u32 %v12223_v48, 16  ;;  %v14139_v2 = vld [vmem:[#allocation33_spill] sm:$0xff] }
 0x1a6   : > { %v1337_v63 = vclz %v1336_v44  ;;  %v1477_v37 = vadd.s32 %v1476_v47, %v1466_v36  ;;  %v1425_v13 = vsel %vm1419_vm2, %v1422_v60, %v1424_v31  ;;  %v12282_v54 = vand.u32 4294901760, %v12271_v52  ;;  %3466 = vmatmul.f32.gmra.mxu1 %v14139_v2  ;;  %v14142_v31 = vld [vmem:[#allocation42_spill] sm:$0xff] }
 0x1a7   : > { %v12284_v27 = vadd.s32 %v1471_v50, %v1467_v53  ;;  %v2966_v17 = vadd.f32 %v2965_v34, %v2924_v49  ;;  %v1214_v40 = vmul.f32 %v1213_v35, %v12237_v55  ;;  %v1206_v43 = vadd.f32 0.041655596, %v1205_v46  ;;  %3562 = vmatmul.f32.gmra.mxu3 %v14119_v4  ;;  %v14141_v50 = vld [vmem:[#allocation30_spill] sm:$0xff]  ;;  %v14143_v49 = vld [vmem:[#allocation17_spill] sm:$0xff] }
 0x1a8   : > { %v10536_v8 = vadd.s32 4294967294, %v1337_v63  ;;  %v1478_v33 = vadd.s32 %v1477_v37, %v1468_v24  ;;  %3514 = vmatmul.f32.gmra.mxu2 %v14140_v61  ;;  %v1479_v60 = vmul.u32 %v14141_v50, %v1425_v13  ;;  %v3017_v23 = vpop.f32.mrf.mxu3  ;;  %v12298_v56 = vsub.f32 %v12271_v52, %v12282_v54  ;;  %v2927_v44 = vpop.f32.mrf.mxu1  ;;  %v14145_v52 = vld [vmem:[#allocation22_spill] sm:$0xff] }
 0x1a9   : > { %vm1481_vm8 = vc.u32 %v12276_v19, %v12284_v27  ;;  %v12290_v48 = vadd.f32 %v3011_v11, %v2966_v17  ;;  %v1325_v34 = vadd.s32 %v12172_v42, %v12156_v6  ;;  %v2970_v35 = vpop.f32.mrf.mxu2  ;;  %v1215_v36 = vadd.f32 -0.16666654, %v1214_v40 }
 0x1aa   : > { %vm10537_vm15 = vcmp.lt.s32.totalorder %v10536_v8, 0  ;;  %v1482_v53 = vadd.s32 1, %v1478_v33  ;;  %3428 = vmatmul.f32.gmra.mxu0 %v14142_v31  ;;  %v1200_v63 = vsub.s32 4, %v14143_v49  ;;  %v1207_v24 = vmul.f32 %v1206_v43, %v12237_v55 }
 0x1ab   : > { %v1340_v11 = vsel %vm10537_vm15, 0, %v10536_v8  ;;  %v2928_v13 = vadd.f32 %v2927_v44, %v2881_v9  ;;  %v13970_v42 = vand.u32 4294901760, %v12298_v56  ;;  %v1685_v41 = vand.u32 3, %v14145_v52 }
 0x1ac   : > { %v1341_v47 = vsub.s32 32, %v1340_v11  ;;  %v1345_v20 = vsub.s32 4294967266, %v1340_v11  ;;  %v1483_v46 = vsel %vm1481_vm8, %v1482_v53, %v1478_v33  ;;  %v1342_v17 = vshll.u32 %v12253_v26, %v1340_v11  ;;  %v2889_v8 = vpop.f32.mrf.mxu0 }
 0x1ad   : > { %v1484_v37 = vadd.s32 %v1483_v46, %v1479_v60  ;;  %v2971_v25 = vadd.f32 %v2970_v35, %v2928_v13  ;;  %v1216_v33 = vmul.f32 %v1215_v36, %v12237_v55  ;;  %v1201_v9 = vsel %vm1078_vm10, %v1200_v63, %v14143_v49 }
 0x1ae   : > { %v1343_v50 = vshrl.u32 %v1325_v34, %v1341_v47  ;;  %v1346_v6 = vadd.s32 127, %v1345_v20  ;;  %3470 = vmatmul.f32.gmra.mxu1 %v14144_v3  ;;  %v1208_v60 = vadd.f32 -0.4999988, %v1207_v24  ;;  %v3990_v52 = vsub.f32 %v12298_v56, %v13970_v42 }
 0x1af   : > { %v1485_v40 = vadd.s32 536870912, %v1484_v37  ;;  %v12317_v43 = vadd.f32 %v3017_v23, %v2971_v25  ;;  %3724 = vmatmul.f32.vlgmr.msra.gmra.mxu3 %v11234_v30  ;;  %v12331_v35 = vsel %vm12205_vm13, 0, %v1201_v9  ;;  %vm1687_vm2 = vcmp.eq.s32.totalorder %v1685_v41, 0 }
 0x1b0   : > { %v1344_v53 = vor.u32 %v1343_v50, %v1342_v17  ;;  %v1347_v15 = vshll.u32 %v1346_v6, 23  ;;  %3666 = vmatmul.f32.vlgmr.msra.gmra.mxu2 %v14121_v29  ;;  %4074 = vmatpush.msra.mxu3 %v12282_v54  ;;  %v3023_v23 = vpop.f32.mrf.mxu3  ;;  %14146 = vst [vmem:[#allocation32_spill] sm:$0xff] %v12331_v35  ;;  %v2931_v20 = vpop.f32.mrf.mxu1  ;;  %vm1690_vm10 = vcmp.eq.s32.totalorder %v1685_v41, 2  ;;  %v1209_v49 = vmul.f32 %v1208_v60, %v12237_v55  ;;  %v14147_v6 = vld [vmem:[#allocation27_spill] sm:$0xff]  ;;  %v14152_v60 = vld [vmem:[#allocation12_spill] sm:$0xff] }
 0x1b1   : > { %v12315_v26 = vshrl.u32 %v1485_v40, 30  ;;  %4031 = vmatpush.msra.mxu2 %v12298_v56  ;;  %v2975_v25 = vpop.f32.mrf.mxu2  ;;  %v2932_v44 = vadd.f32 %v2931_v20, %v2889_v8  ;;  %v3991_v24 = vand.u32 4294901760, %v3990_v52  ;;  %v1220_v13 = vadd.s32 3, %v12331_v35 }
 0x1b2   : > { %v1348_v34 = vor.u32 4788187, %v1347_v15  ;;  %3586 = vmatmul.f32.vlgmr.msra.gmra.mxu0 %v11234_v30  ;;  %v1217_v15 = vadd.f32 1.0, %v1216_v33  ;;  %v1351_v47 = vcvt.s32.f32 %v1344_v53  ;;  %v14148_v40 = vxor.u32 2147483648, %v14147_v6 }
 0x1b3   : > { %v1487_v11 = vshll.u32 %v12315_v26, 30  ;;  %3930 = vmatpush.msra.mxu0 %v12282_v54  ;;  %v2976_v50 = vadd.f32 %v2975_v25, %v2932_v44  ;;  %vm1686_vm13 = vcmp.lt.s32.totalorder %v1685_v41, 2  ;;  %vm1233_vm4 = vcmp.lt.s32.totalorder %v14152_v60, 0 }
 0x1b4   : > { %v1349_v36 = vand.u32 2147483647, %v1348_v34  ;;  %v3047_v17 = vpop.f32.mrf.mxu0  ;;  %v12344_v8 = vmul.f32 %v1217_v15, %v12214_v28  ;;  %v1221_v15 = vand.u32 3, %v1220_v13  ;;  %v14157_v13 = vld [vmem:[#allocation28_spill] sm:$0xff]  ;;  %vm1219_vm8 = vweird.f32 %v14124_v51 }
 0x1b5   : > { %v12333_v46 = vsub.s32 %v1484_v37, %v1487_v11  ;;  %v14149_v37 = vld [vmem:[#allocation25_spill] sm:$0xff]  ;;  %v12351_v52 = vadd.f32 %v3023_v23, %v2976_v50  ;;  %v12355_v11 = vadd.f32 1.0, %v1209_v49  ;;  %v2789_v50 = vmul.f32 %v14157_v13, %v14157_v13 }
 0x1b6   : > { %v1352_v63 = vmul.f32 %v1351_v47, %v1349_v36  ;;  %3624 = vmatmul.f32.vlgmr.msra.gmra.mxu1 %v11234_v30  ;;  %v1689_v33 = vsel %vm1687_vm2, %v14149_v37, %v14148_v40  ;;  %14150 = vst [vmem:[#allocation24_spill] sm:$0xff] %v12344_v8  ;;  %v14151_v53 = vxor.u32 2147483648, %v14149_v37  ;;  %v14154_v36 = vand.u32 2147483647, %v14152_v60 }
 0x1b7   : > { %vm1489_vm6 = vcmp.lt.s32.totalorder %v12333_v46, 0  ;;  %v1490_v58 = vsub.s32 0, %v12333_v46  ;;  %3992 = vmatpush.msra.mxu1 %v3991_v24  ;;  %3728 = vmatmul.f32.gmra.mxu3 %v11407_v12  ;;  %14153 = vst [vmem:[#allocation39_spill] sm:$0xff] %v12355_v11  ;;  %v13969_v44 = vxor.u32 2147483648, %v12344_v8  ;;  %v13971_v37 = vxor.u32 2147483648, %v12355_v11 }
 0x1b8   : > { %v1353_v55 = vxor.u32 2147483648, %v1352_v63  ;;  %v1692_v9 = vsel %vm1690_vm10, %v14151_v53, %v14147_v6  ;;  %3674 = vmatmul.f32.gmra.mxu2 %v11451_v62  ;;  %vm12362_vm7 = vcmp.le.f32.partialorder %v14154_v36, 0.7853982  ;;  %v3185_v20 = vpop.f32.mrf.mxu3  ;;  %v3085_v24 = vpop.f32.mrf.mxu1  ;;  %vm1223_vm11 = vcmp.eq.s32.totalorder %v1221_v15, 0 }
 0x1b9   : > { %v1491_v34 = vsel %vm1489_vm6, %v1490_v58, %v12333_v46  ;;  %v1693_v25 = vsel %vm1686_vm13, %v1689_v33, %v1692_v9  ;;  %v3127_v23 = vpop.f32.mrf.mxu2  ;;  %v1225_v9 = vsel %vm1223_vm11, %v12355_v11, %v13969_v44  ;;  %vm1222_vm12 = vcmp.lt.s32.totalorder %v1221_v15, 2 }
 0x1ba   : > { %v1354_v28 = vsel %vm1233_vm4, %v1353_v55, %v1352_v63  ;;  %v1492_v41 = vclz %v1491_v34  ;;  %3590 = vmatmul.f32.gmra.mxu0 %v11407_v12  ;;  %v12372_v58 = vadd.f32 %v3185_v20, %v3127_v23  ;;  %v12378_v40 = vsel %vm444_vm5, nan, %v1693_v25 }
 0x1bb   : > { %v12370_v49 = vsel %vm12362_vm7, %v14152_v60, %v1354_v28  ;;  %v1480_v34 = vadd.s32 %v12284_v27, %v12276_v19  ;;  %v2797_v25 = vadd.f32 %v2789_v50, %v2789_v50  ;;  %vm1226_vm5 = vcmp.eq.s32.totalorder %v1221_v15, 2 }
 0x1bc   : > { %v10539_v63 = vadd.s32 4294967294, %v1492_v41  ;;  %v12383_v33 = vmul.f32 %v12370_v49, %v12370_v49  ;;  %v3051_v53 = vpop.f32.mrf.mxu0  ;;  %v2773_v41 = vmul.f32 %v12378_v40, %v14157_v13  ;;  %v3048_v23 = vadd.f32 %v3047_v17, %v12209_v5 }
 0x1bd   : > { %v1228_v20 = vsel %vm1226_vm5, %v13971_v37, %v12344_v8  ;;  %v3052_v5 = vadd.f32 %v3051_v53, %v12251_v14  ;;  %v1510_v8 = vsub.s32 4, %v12315_v26 }
 0x1be   : > { %vm10540_vm0 = vcmp.lt.s32.totalorder %v10539_v63, 0  ;;  %3628 = vmatmul.f32.gmra.mxu1 %v11407_v12  ;;  %v1229_v19 = vsel %vm1222_vm12, %v1225_v9, %v1228_v20  ;;  %v1367_v27 = vmul.f32 -0.00019511016, %v12383_v33  ;;  %v3086_v17 = vadd.f32 %v3085_v24, %v3048_v23 }
 0x1bf   : > { %v1495_v55 = vsel %vm10540_vm0, 0, %v10539_v63  ;;  %3732 = vmatmul.f32.gmra.mxu3 %v11412_v32  ;;  %v12408_v9 = vsub.f32 1.0, %v2797_v25  ;;  %vm1374_vm0 = vweird.f32 %v14152_v60 }
 0x1c0   : > { %v1496_v28 = vsub.s32 32, %v1495_v55  ;;  %v1500_v36 = vsub.s32 4294967266, %v1495_v55  ;;  %3682 = vmatmul.f32.gmra.mxu2 %v11490_v0  ;;  %v1497_v13 = vshll.u32 %v12333_v46, %v1495_v55  ;;  %v3189_v44 = vpop.f32.mrf.mxu3  ;;  %v3089_v42 = vpop.f32.mrf.mxu1  ;;  %v12412_v46 = vsel %vm1219_vm8, nan, %v1229_v19 }
 0x1c1   : > { %v3135_v6 = vpop.f32.mrf.mxu2  ;;  %v3090_v20 = vadd.f32 %v3089_v42, %v3052_v5  ;;  %14159 = vst [vmem:[#allocation36_spill] sm:$0xff] %v12412_v46  ;;  %v1368_v14 = vadd.f32 0.008332121, %v1367_v27  ;;  %v1360_v42 = vmul.f32 -0.001358992, %v12383_v33 }
 0x1c2   : > { %v1498_v63 = vshrl.u32 %v1480_v34, %v1496_v28  ;;  %3594 = vmatmul.f32.gmra.mxu0 %v11412_v32  ;;  %v1501_v50 = vadd.s32 127, %v1500_v36  ;;  %v12403_v15 = vadd.f32 %v3189_v44, %v3135_v6  ;;  %v12406_v28 = vadd.f32 %v2773_v41, %v2773_v41  ;;  %v14161_v6 = vld [vmem:[#allocation13_spill] sm:$0xff] }
 0x1c3   : > { %v6678_v44 = vmul.f32 %v3090_v20, %v12408_v9  ;;  %v12418_v36 = vand.u32 4294901760, %v12412_v46  ;;  %vm1388_vm15 = vcmp.lt.s32.totalorder %v14161_v6, 0  ;;  %v1355_v20 = vsub.s32 4, %v12239_v18 }
 0x1c4   : > { %v1499_v37 = vor.u32 %v1498_v63, %v1497_v13  ;;  %v1502_v34 = vshll.u32 %v1501_v50, 23  ;;  %v6670_v55 = vmul.f32 %v3086_v17, %v12406_v28  ;;  %v3055_v53 = vpop.f32.mrf.mxu0  ;;  %v1369_v63 = vmul.f32 %v1368_v14, %v12383_v33 }
 0x1c5   : > { %v1511_v47 = vsel %vm1388_vm15, %v1510_v8, %v12315_v26  ;;  %v14168_v26 = vld [vmem:[#allocation26_spill] sm:$0xff] }
 0x1c6   : > { %v1503_v24 = vor.u32 4788187, %v1502_v34  ;;  %3632 = vmatmul.f32.gmra.mxu1 %v11412_v32  ;;  %v1506_v25 = vcvt.s32.f32 %v1499_v37  ;;  %v12420_v23 = vadd.f32 %v6678_v44, %v6670_v55  ;;  %v12431_v37 = vsub.f32 %v12412_v46, %v12418_v36 }
 0x1c7   : > { %3736 = vmatmul.f32.gmra.mxu3 %v14139_v2  ;;  %v1361_v34 = vadd.f32 0.041655596, %v1360_v42  ;;  %v14162_v44 = vand.u32 2147483647, %v14161_v6  ;;  %v1839_v8 = vand.u32 3, %v14168_v26 }
 0x1c8   : > { %v1504_v41 = vand.u32 2147483647, %v1503_v24  ;;  %14160 = vst [vmem:[#allocation41_spill] sm:$0xff] %v12420_v23  ;;  %3690 = vmatmul.f32.gmra.mxu2 %v14137_v21  ;;  %v3193_v13 = vpop.f32.mrf.mxu3  ;;  %v3093_v50 = vpop.f32.mrf.mxu1  ;;  %v1370_v24 = vadd.f32 -0.16666654, %v1369_v63  ;;  %v3056_v63 = vadd.f32 %v3055_v53, %v12290_v48 }
 0x1c9   : > { %v3143_v27 = vpop.f32.mrf.mxu2  ;;  %vm12440_vm2 = vcmp.le.f32.partialorder %v14162_v44, 0.7853982  ;;  %vm1841_vm10 = vcmp.eq.s32.totalorder %v1839_v8, 0  ;;  %vm1840_vm6 = vcmp.lt.s32.totalorder %v1839_v8, 2  ;;  %vm1844_vm13 = vcmp.eq.s32.totalorder %v1839_v8, 2 }
 0x1ca   : > { %3598 = vmatmul.f32.gmra.mxu0 %v14139_v2  ;;  %v1507_v19 = vmul.f32 %v1506_v25, %v1504_v41  ;;  %v12427_v5 = vadd.f32 %v3193_v13, %v3143_v27  ;;  %v1356_v13 = vsel %vm1233_vm4, %v1355_v20, %v12239_v18  ;;  %v14169_v41 = vld [vmem:[#allocation14_spill] sm:$0xff] }
 0x1cc   : > { %v1508_v17 = vxor.u32 2147483648, %v1507_v19  ;;  %v3059_v55 = vpop.f32.mrf.mxu0 }
 0x1cd   : > { %v3060_v44 = vadd.f32 %v3059_v55, %v12317_v43  ;;  %v1358_v43 = vsel %vm12362_vm7, 0, %v1356_v13 }
 0x1ce   : > { %v1509_v14 = vsel %vm1388_vm15, %v1508_v17, %v1507_v19  ;;  %3636 = vmatmul.f32.gmra.mxu1 %v14139_v2  ;;  %v1362_v19 = vmul.f32 %v1361_v34, %v12383_v33  ;;  %v1371_v17 = vmul.f32 %v1370_v24, %v12383_v33  ;;  %v14165_v34 = vand.u32 4294901760, %v12431_v37 }
 0x1cf   : > { %v1512_v42 = vsel %vm12440_vm2, %v14161_v6, %v1509_v14  ;;  %3740 = vmatmul.f32.gmra.mxu3 %v14144_v3  ;;  %v3094_v14 = vadd.f32 %v3093_v50, %v3056_v63 }
 0x1d0   : > { %3698 = vmatmul.f32.gmra.mxu2 %v14142_v31  ;;  %v1514_v27 = vmul.f32 %v1512_v42, %v1512_v42  ;;  %v3197_v48 = vpop.f32.mrf.mxu3  ;;  %v3097_v51 = vpop.f32.mrf.mxu1  ;;  %v4260_v11 = vsub.f32 %v12431_v37, %v14165_v34  ;;  %v1363_v18 = vadd.f32 -0.4999988, %v1362_v19  ;;  %v1372_v50 = vadd.f32 1.0, %v1371_v17 }
 0x1d1   : > { %v3151_v25 = vpop.f32.mrf.mxu2  ;;  %v3098_v35 = vadd.f32 %v3097_v51, %v3060_v44  ;;  %v6718_v55 = vmul.f32 %v3094_v14, %v12408_v9 }
 0x1d2   : > { %3602 = vmatmul.f32.gmra.mxu0 %v14144_v3  ;;  %v1515_v53 = vmul.f32 -0.001358992, %v1514_v27  ;;  %v1522_v23 = vmul.f32 -0.00019511016, %v1514_v27  ;;  %v12458_v46 = vadd.f32 %v3197_v48, %v3151_v25  ;;  %v4261_v10 = vand.u32 4294901760, %v4260_v11 }
 0x1d3   : > { %v6726_v25 = vmul.f32 %v3098_v35, %v12406_v28  ;;  %v1364_v51 = vmul.f32 %v1363_v18, %v12383_v33  ;;  %v1375_v35 = vadd.s32 3, %v1358_v43  ;;  %v14167_v11 = vand.u32 4294901760, %v12298_v56 }
 0x1d4   : > { %v1516_v20 = vadd.f32 0.041655596, %v1515_v53  ;;  %v1523_v24 = vadd.f32 0.008332121, %v1522_v23  ;;  %v12467_v63 = vpop.f32.mrf.mxu0  ;;  %v1373_v44 = vmul.f32 %v1372_v50, %v12370_v49  ;;  %v14170_v50 = vxor.u32 2147483648, %v14169_v41 }
 0x1d5   : > { %v12471_v59 = vsub.f32 %v6718_v55, %v6726_v25  ;;  %v1365_v18 = vadd.f32 1.0, %v1364_v51  ;;  %v1376_v56 = vand.u32 3, %v1375_v35 }
 0x1d6   : > { %3640 = vmatmul.f32.gmra.mxu1 %v14144_v3  ;;  %v1517_v48 = vmul.f32 %v1516_v20, %v1514_v27  ;;  %v1524_v34 = vmul.f32 %v1523_v24, %v1514_v27  ;;  %v1379_v25 = vxor.u32 2147483648, %v1373_v44 }
 0x1d7   : > { %14166 = vst [vmem:[#allocation33_spill] sm:$0xff] %v12471_v59  ;;  %3894 = vmatmul.f32.vlgmr.msrb.gmra.mxu3 %v11234_v30  ;;  %vm1378_vm4 = vcmp.eq.s32.totalorder %v1376_v56, 0  ;;  %vm1381_vm7 = vcmp.eq.s32.totalorder %v1376_v56, 2  ;;  %vm1377_vm11 = vcmp.lt.s32.totalorder %v1376_v56, 2 }
 0x1d8   : > { %3856 = vmatmul.f32.vlgmr.msrb.gmra.mxu2 %v11234_v30  ;;  %v1525_v23 = vadd.f32 -0.16666654, %v1524_v34  ;;  %4262 = vmatpush.msrb.mxu3 %v4261_v10  ;;  %v1518_v19 = vadd.f32 -0.4999988, %v1517_v48  ;;  %v3201_v17 = vpop.f32.mrf.mxu3  ;;  %v12484_v14 = vpop.f32.mrf.mxu1  ;;  %v1513_v10 = vsel %vm12440_vm2, 0, %v1511_v47  ;;  %v14171_v34 = vld [vmem:[#allocation38_spill] sm:$0xff] }
 0x1d9   : > { %4200 = vmatpush.msrb.mxu2 %v12418_v36  ;;  %v3159_v13 = vpop.f32.mrf.mxu2  ;;  %v1530_v48 = vadd.s32 3, %v1513_v10  ;;  %v1843_v51 = vsel %vm1841_vm10, %v14171_v34, %v14170_v50  ;;  %v14172_v35 = vxor.u32 2147483648, %v14171_v34 }
 0x1da   : > { %3764 = vmatmul.f32.vlgmr.msrb.gmra.mxu0 %v11266_v57  ;;  %v1526_v33 = vmul.f32 %v1525_v23, %v1514_v27  ;;  %v12486_v53 = vadd.f32 %v3201_v17, %v3159_v13  ;;  %v1519_v24 = vmul.f32 %v1518_v19, %v1514_v27  ;;  %v1382_v27 = vxor.u32 2147483648, %v1365_v18 }
 0x1db   : > { %4124 = vmatpush.msrb.mxu0 %v14167_v11  ;;  %v2609_v23 = vand.u32 3, %v1358_v43  ;;  %v1846_v19 = vsel %vm1844_vm13, %v14172_v35, %v14169_v41  ;;  %v1380_v13 = vsel %vm1378_vm4, %v1365_v18, %v1379_v25  ;;  %v1531_v17 = vand.u32 3, %v1530_v48 }
 0x1dc   : > { %v1527_v20 = vadd.f32 1.0, %v1526_v33  ;;  %v3225_v55 = vpop.f32.mrf.mxu0  ;;  %v1520_v47 = vadd.f32 1.0, %v1519_v24  ;;  %v1847_v26 = vsel %vm1840_vm6, %v1843_v51, %v1846_v19  ;;  %v1383_v43 = vsel %vm1381_vm7, %v1382_v27, %v1373_v44  ;;  %v14174_v51 = vld [vmem:[#allocation20_spill] sm:$0xff] }
 0x1dd   : > { %v1384_v8 = vsel %vm1377_vm11, %v1380_v13, %v1383_v43  ;;  %vm2611_vm5 = vcmp.eq.s32.totalorder %v2609_v23, 0  ;;  %v2763_v24 = vand.u32 3, %v1513_v10  ;;  %v12509_v35 = vsel %vm599_vm14, nan, %v1847_v26 }
 0x1de   : > { %3808 = vmatmul.f32.vlgmr.msrb.gmra.mxu1 %v14097_v1  ;;  %v12493_v49 = vmul.f32 %v1527_v20, %v1512_v42  ;;  %vm1533_vm12 = vcmp.eq.s32.totalorder %v1531_v17, 0  ;;  %v2613_v48 = vsel %vm2611_vm5, %v1365_v18, %v1379_v25  ;;  %vm2610_vm15 = vcmp.lt.s32.totalorder %v2609_v23, 2 }
 0x1df   : > { %4162 = vmatpush.msrb.mxu1 %v12282_v54  ;;  %3898 = vmatmul.f32.gmra.mxu3 %v11407_v12  ;;  %v3226_v54 = vadd.f32 %v3225_v55, %v12372_v58  ;;  %v1537_v58 = vxor.u32 2147483648, %v1520_v47  ;;  %vm2614_vm2 = vcmp.eq.s32.totalorder %v2609_v23, 2  ;;  %v12518_v10 = vsel %vm1374_vm0, nan, %v1384_v8 }
 0x1e0   : > { %3860 = vmatmul.f32.gmra.mxu2 %v11407_v12  ;;  %v3355_v11 = vpop.f32.mrf.mxu3  ;;  %v3269_v33 = vpop.f32.mrf.mxu1  ;;  %v1534_v20 = vxor.u32 2147483648, %v12493_v49  ;;  %vm1536_vm14 = vcmp.eq.s32.totalorder %v1531_v17, 2  ;;  %vm1532_vm10 = vcmp.lt.s32.totalorder %v1531_v17, 2  ;;  %vm2765_vm6 = vcmp.eq.s32.totalorder %v2763_v24, 0 }
 0x1e1   : > { %v3317_v42 = vpop.f32.mrf.mxu2  ;;  %v3270_v50 = vadd.f32 %v3269_v33, %v3226_v54  ;;  %v2790_v54 = vmul.f32 %v14174_v51, %v14174_v51  ;;  %v1538_v18 = vsel %vm1536_vm14, %v1537_v58, %v12493_v49  ;;  %vm2768_vm13 = vcmp.eq.s32.totalorder %v2763_v24, 2 }
 0x1e2   : > { %3769 = vmatmul.f32.gmra.mxu0 %v14102_v38  ;;  %v1535_v19 = vsel %vm1533_vm12, %v1520_v47, %v1534_v20  ;;  %v2767_v26 = vsel %vm2765_vm6, %v1520_v47, %v1534_v20  ;;  %vm1529_vm4 = vweird.f32 %v14161_v6  ;;  %vm2764_vm7 = vcmp.lt.s32.totalorder %v2763_v24, 2 }
 0x1e3   : > { %v3318_v34 = vadd.f32 %v3317_v42, %v3270_v50  ;;  %v2616_v42 = vsel %vm2614_vm2, %v1382_v27, %v1373_v44  ;;  %v1539_v13 = vsel %vm1532_vm10, %v1535_v19, %v1538_v18  ;;  %v2774_v50 = vmul.f32 %v12509_v35, %v14174_v51 }
 0x1e4   : > { %v3230_v55 = vpop.f32.mrf.mxu0  ;;  %v2617_v25 = vsel %vm2610_vm15, %v2613_v48, %v2616_v42  ;;  %v2798_v8 = vadd.f32 %v2790_v54, %v2790_v54  ;;  %v12535_v60 = vsel %vm1529_vm4, nan, %v1539_v13  ;;  %vm14195_vm14 = vcmask 1043456  }
 0x1e5   : > { %v3356_v56 = vadd.f32 %v3355_v11, %v3318_v34  ;;  %v3231_v23 = vadd.f32 %v3230_v55, %v12403_v15  ;;  %v12525_v33 = vsel %vm1374_vm0, nan, %v2617_v25  ;;  %v2770_v15 = vsel %vm2768_vm13, %v1537_v58, %v12493_v49 }
 0x1e6   : > { %3814 = vmatmul.f32.gmra.mxu1 %v14105_v45  ;;  %v12531_v17 = vmul.f32 %v12525_v33, %v12518_v10  ;;  %v2771_v55 = vsel %vm2764_vm7, %v2767_v26, %v2770_v15  ;;  %v12540_v41 = vadd.f32 %v2774_v50, %v2774_v50  ;;  %v12542_v48 = vsub.f32 1.0, %v2798_v8 }
 0x1e7   : > { %3902 = vmatmul.f32.gmra.mxu3 %v11412_v32  ;;  %v12538_v34 = vsel %vm1529_vm4, nan, %v2771_v55  ;;  %vm10264_vm0 = vcmask 1041408  }
 0x1e8   : > { %3864 = vmatmul.f32.gmra.mxu2 %v11412_v32  ;;  %v3359_v11 = vpop.f32.mrf.mxu3  ;;  %v12548_v6 = vmul.f32 %v12538_v34, %v12535_v60  ;;  %v6671_v49 = vmul.f32 %v3356_v56, %v12540_v41 }
 0x1e9   : > { %v3275_v44 = vpop.f32.mrf.mxu1  ;;  %v3321_v27 = vpop.f32.mrf.mxu2 }
 0x1ea   : > { %3774 = vmatmul.f32.gmra.mxu0 %v14107_v22  ;;  %v3276_v43 = vadd.f32 %v3275_v44, %v3231_v23 }
 0x1ec   : > { %v3322_v20 = vadd.f32 %v3321_v27, %v3276_v43 }
 0x1ee   : > { %v3235_v47 = vpop.f32.mrf.mxu0  ;;  %3820 = vmatmul.f32.gmra.mxu1 %v14112_v7  ;;  %v3360_v51 = vadd.f32 %v3359_v11, %v3322_v20  ;;  %v14175_v20 = vand.u32 4294901760, %v12431_v37 }
 0x1ef   : > { %3906 = vmatmul.f32.gmra.mxu3 %v14139_v2  ;;  %v3236_v58 = vadd.f32 %v3235_v47, %v12427_v5 }
 0x1f0   : > { %3868 = vmatmul.f32.gmra.mxu2 %v14139_v2  ;;  %v6679_v24 = vmul.f32 %v3360_v51, %v12542_v48  ;;  %v3363_v25 = vpop.f32.mrf.mxu3 }
 0x1f1   : > { %v3325_v19 = vpop.f32.mrf.mxu2 }
 0x1f2   : > { %3779 = vmatmul.f32.gmra.mxu0 %v14136_v39  ;;  %v3281_v54 = vpop.f32.mrf.mxu1  ;;  %v12554_v42 = vadd.f32 %v6679_v24, %v6671_v49 }
 0x1f3   : > { %v3282_v18 = vadd.f32 %v3281_v54, %v3236_v58 }
 0x1f5   : > { %v3326_v11 = vadd.f32 %v3325_v19, %v3282_v18 }
 0x1f6   : > { %v3240_v23 = vpop.f32.mrf.mxu0  ;;  %3826 = vmatmul.f32.gmra.mxu1 %v14135_v16 }
 0x1f7   : > { %v3364_v13 = vadd.f32 %v3363_v25, %v3326_v11  ;;  %3910 = vmatmul.f32.gmra.mxu3 %v14144_v3  ;;  %v3241_v5 = vadd.f32 %v3240_v23, %v12458_v46 }
 0x1f8   : > { %3872 = vmatmul.f32.gmra.mxu2 %v14144_v3  ;;  %v3367_v44 = vpop.f32.mrf.mxu3 }
 0x1f9   : > { %v3329_v26 = vpop.f32.mrf.mxu2  ;;  %v6719_v15 = vmul.f32 %v3364_v13, %v12542_v48 }
 0x1fa   : > { %3784 = vmatmul.f32.gmra.mxu0 %v14140_v61  ;;  %v3287_v56 = vpop.f32.mrf.mxu1 }
 0x1fb   : > { %v3288_v50 = vadd.f32 %v3287_v56, %v3241_v5 }
 0x1fd   : > { %v3330_v43 = vadd.f32 %v3329_v26, %v3288_v50 }
 0x1fe   : > { %v3245_v27 = vpop.f32.mrf.mxu0  ;;  %3832 = vmatmul.f32.gmra.mxu1 %v14119_v4 }
 0x1ff   : > { %v3368_v8 = vadd.f32 %v3367_v44, %v3330_v43  ;;  %4078 = vmatmul.f32.vlgmr.msra.gmra.mxu3 %v14097_v1  ;;  %v3246_v46 = vadd.f32 %v3245_v27, %v12486_v53  ;;  %v3064_v53 = vadd.f32 %v12467_v63, %v12351_v52 }
 0x200   : > { %4034 = vmatmul.f32.vlgmr.msra.gmra.mxu2 %v11266_v57  ;;  %4432 = vmatpush.msra.mxu3 %v12418_v36  ;;  %v3371_v24 = vpop.f32.mrf.mxu3 }
 0x201   : > { %v6727_v47 = vmul.f32 %v3368_v8, %v12540_v41  ;;  %4394 = vmatpush.msra.mxu2 %v14175_v20  ;;  %v3333_v51 = vpop.f32.mrf.mxu2 }
 0x202   : > { %3936 = vmatmul.f32.vlgmr.msra.gmra.mxu0 %v14121_v29 }
 0x203   : > { %4301 = vmatpush.msra.mxu0 %v12431_v37  ;;  %v3293_v55 = vpop.f32.mrf.mxu1  ;;  %v12572_v49 = vsub.f32 %v6719_v15, %v6727_v47  ;;  %v3102_v37 = vadd.f32 %v12484_v14, %v3064_v53 }
 0x204   : > { %v3294_v58 = vadd.f32 %v3293_v55, %v3246_v46  ;;  %v12598_v55 = vand.u32 4294901760, %v12518_v10 }
 0x205   : > { %14176 = vst [vmem:[#allocation37_spill] sm:$0xff] %v12572_v49 }
 0x206   : > { %v3397_v54 = vpop.f32.mrf.mxu0  ;;  %v3334_v19 = vadd.f32 %v3333_v51, %v3294_v58  ;;  %3994 = vmatmul.f32.vlgmr.msra.gmra.mxu1 %v11234_v30 }
 0x207   : > { %4344 = vmatpush.msra.mxu1 %v12418_v36  ;;  %4084 = vmatmul.f32.gmra.mxu3 %v14105_v45 }
 0x208   : > { %v3372_v18 = vadd.f32 %v3371_v24, %v3334_v19  ;;  %4039 = vmatmul.f32.gmra.mxu2 %v14102_v38  ;;  %v3539_v5 = vpop.f32.mrf.mxu3 }
 0x209   : > { %v3495_v11 = vpop.f32.mrf.mxu2 }
 0x20a   : > { %3944 = vmatmul.f32.gmra.mxu0 %v11451_v62  ;;  %v10284_v25 = vrot.slane %v3372_v18, 6 }
 0x20b   : > { %v3455_v23 = vpop.f32.mrf.mxu1 }
 0x20c   : > { %v12583_v13 = vsel %vm10264_vm0, %v3102_v37, %v10284_v25  ;;  %v3456_v36 = vadd.f32 %v3455_v23, %v3397_v54  ;;  %v12608_v54 = vsub.f32 %v12518_v10, %v12598_v55 }
 0x20e   : > { %v3405_v56 = vpop.f32.mrf.mxu0  ;;  %v3496_v52 = vadd.f32 %v3495_v11, %v3456_v36  ;;  %3998 = vmatmul.f32.gmra.mxu1 %v11407_v12  ;;  %v13984_v25 = vand.u32 4294901760, %v12608_v54 }
 0x20f   : > { %4090 = vmatmul.f32.gmra.mxu3 %v14112_v7 }
 0x210   : > { %v12586_v63 = vadd.f32 %v3539_v5, %v3496_v52  ;;  %4044 = vmatmul.f32.gmra.mxu2 %v14107_v22  ;;  %v3545_v44 = vpop.f32.mrf.mxu3  ;;  %v4530_v5 = vsub.f32 %v12608_v54, %v13984_v25 }
 0x211   : > { %v3500_v26 = vpop.f32.mrf.mxu2 }
 0x212   : > { %3952 = vmatmul.f32.gmra.mxu0 %v11490_v0 }
 0x213   : > { %v3459_v14 = vpop.f32.mrf.mxu1 }
 0x214   : > { %v3460_v50 = vadd.f32 %v3459_v14, %v3405_v56  ;;  %v14177_v56 = vld [vmem:[#allocation15_spill] sm:$0xff] }
 0x215   : > { %v1993_v52 = vand.u32 3, %v14177_v56 }
 0x216   : > { %v3413_v27 = vpop.f32.mrf.mxu0  ;;  %v3501_v43 = vadd.f32 %v3500_v26, %v3460_v50  ;;  %4002 = vmatmul.f32.gmra.mxu1 %v11412_v32 }
 0x217   : > { %4096 = vmatmul.f32.gmra.mxu3 %v14135_v16  ;;  %vm1995_vm11 = vcmp.eq.s32.totalorder %v1993_v52, 0  ;;  %vm1998_vm5 = vcmp.eq.s32.totalorder %v1993_v52, 2  ;;  %vm1994_vm12 = vcmp.lt.s32.totalorder %v1993_v52, 2 }
 0x218   : > { %v12592_v8 = vadd.f32 %v3545_v44, %v3501_v43  ;;  %4049 = vmatmul.f32.gmra.mxu2 %v14136_v39  ;;  %v3551_v20 = vpop.f32.mrf.mxu3 }
 0x219   : > { %v3505_v46 = vpop.f32.mrf.mxu2 }
 0x21a   : > { %3960 = vmatmul.f32.gmra.mxu0 %v14137_v21 }
 0x21b   : > { %v3463_v15 = vpop.f32.mrf.mxu1 }
 0x21c   : > { %v3464_v47 = vadd.f32 %v3463_v15, %v3413_v27  ;;  %v4531_v27 = vand.u32 4294901760, %v4530_v5  ;;  %v14182_v5 = vld [vmem:[#allocation16_spill] sm:$0xff] }
 0x21d   : > { %v2791_v56 = vmul.f32 %v14182_v5, %v14182_v5 }
 0x21e   : > { %v3506_v58 = vadd.f32 %v3505_v46, %v3464_v47  ;;  %4006 = vmatmul.f32.gmra.mxu1 %v14139_v2  ;;  %v14178_v46 = vld [vmem:[#allocation11_spill] sm:$0xff] }
 0x21f   : > { %v3421_v51 = vpop.f32.mrf.mxu0  ;;  %4102 = vmatmul.f32.gmra.mxu3 %v14119_v4  ;;  %v14179_v47 = vxor.u32 2147483648, %v14178_v46 }
 0x220   : > { %v12601_v24 = vadd.f32 %v3551_v20, %v3506_v58  ;;  %4054 = vmatmul.f32.gmra.mxu2 %v14140_v61  ;;  %v14180_v20 = vld [vmem:[#allocation19_spill] sm:$0xff] }
 0x222   : > { %3968 = vmatmul.f32.gmra.mxu0 %v14142_v31  ;;  %v3557_v37 = vpop.f32.mrf.mxu3 }
 0x223   : > { %v3467_v19 = vpop.f32.mrf.mxu1  ;;  %v3510_v53 = vpop.f32.mrf.mxu2 }
 0x224   : > { %v3468_v18 = vadd.f32 %v3467_v19, %v3421_v51  ;;  %v1997_v51 = vsel %vm1995_vm11, %v14180_v20, %v14179_v47  ;;  %v14181_v19 = vxor.u32 2147483648, %v14180_v20  ;;  %vm14211_vm11 = vcmask 64512  }
 0x226   : > { %v3511_v11 = vadd.f32 %v3510_v53, %v3468_v18  ;;  %4010 = vmatmul.f32.gmra.mxu1 %v14144_v3  ;;  %v2000_v53 = vsel %vm1998_vm5, %v14181_v19, %v14178_v46 }
 0x227   : > { %v3429_v23 = vpop.f32.mrf.mxu0  ;;  %4264 = vmatmul.f32.vlgmr.msrb.gmra.mxu3 %v11234_v30  ;;  %v2001_v18 = vsel %vm1994_vm12, %v1997_v51, %v2000_v53  ;;  %vm14217_vm12 = vmmov %vm14195_vm14 }
 0x228   : > { %v12612_v36 = vadd.f32 %v3557_v37, %v3511_v11  ;;  %4206 = vmatmul.f32.vlgmr.msrb.gmra.mxu2 %v14121_v29  ;;  %4614 = vmatpush.msrb.mxu3 %v12598_v55 }
 0x229   : > { %4571 = vmatpush.msrb.mxu2 %v12608_v54 }
 0x22a   : > { %4126 = vmatmul.f32.vlgmr.msrb.gmra.mxu0 %v11234_v30  ;;  %v3563_v44 = vpop.f32.mrf.mxu3 }
 0x22b   : > { %4470 = vmatpush.msrb.mxu0 %v12598_v55  ;;  %v3471_v14 = vpop.f32.mrf.mxu1  ;;  %v3515_v26 = vpop.f32.mrf.mxu2 }
 0x22c   : > { %v3472_v50 = vadd.f32 %v3471_v14, %v3429_v23 }
 0x22e   : > { %v3516_v15 = vadd.f32 %v3515_v26, %v3472_v50  ;;  %4164 = vmatmul.f32.vlgmr.msrb.gmra.mxu1 %v11234_v30  ;;  %v12640_v26 = vsel %vm754_vm9, nan, %v2001_v18 }
 0x22f   : > { %v3587_v43 = vpop.f32.mrf.mxu0  ;;  %4532 = vmatpush.msrb.mxu1 %v4531_v27  ;;  %4268 = vmatmul.f32.gmra.mxu3 %v11407_v12  ;;  %v2775_v27 = vmul.f32 %v12640_v26, %v14182_v5 }
 0x230   : > { %v12628_v58 = vadd.f32 %v3563_v44, %v3516_v15  ;;  %4214 = vmatmul.f32.gmra.mxu2 %v11451_v62  ;;  %v3588_v52 = vadd.f32 %v3587_v43, %v12586_v63  ;;  %v2799_v15 = vadd.f32 %v2791_v56, %v2791_v56 }
 0x231   : > { %v12652_v19 = vadd.f32 %v2775_v27, %v2775_v27 }
 0x232   : > { %4130 = vmatmul.f32.gmra.mxu0 %v11407_v12  ;;  %v3725_v11 = vpop.f32.mrf.mxu3  ;;  %v12654_v53 = vsub.f32 1.0, %v2799_v15 }
 0x233   : > { %v3625_v37 = vpop.f32.mrf.mxu1  ;;  %v3667_v23 = vpop.f32.mrf.mxu2 }
 0x234   : > { %v12642_v50 = vadd.f32 %v3725_v11, %v3667_v23  ;;  %v3626_v47 = vadd.f32 %v3625_v37, %v3588_v52 }
 0x236   : > { %4168 = vmatmul.f32.gmra.mxu1 %v11407_v12  ;;  %v6672_v23 = vmul.f32 %v3626_v47, %v12652_v19 }
 0x237   : > { %v3591_v44 = vpop.f32.mrf.mxu0  ;;  %4272 = vmatmul.f32.gmra.mxu3 %v11412_v32 }
 0x238   : > { %4222 = vmatmul.f32.gmra.mxu2 %v11490_v0  ;;  %v3592_v46 = vadd.f32 %v3591_v44, %v12592_v8  ;;  %v12662_v8 = vand.u32 4294901760, %v12535_v60 }
 0x23a   : > { %4134 = vmatmul.f32.gmra.mxu0 %v11412_v32  ;;  %v3729_v43 = vpop.f32.mrf.mxu3  ;;  %v12671_v44 = vsub.f32 %v12535_v60, %v12662_v8 }
 0x23b   : > { %v3629_v20 = vpop.f32.mrf.mxu1  ;;  %v3675_v51 = vpop.f32.mrf.mxu2 }
 0x23c   : > { %v3630_v63 = vadd.f32 %v3629_v20, %v3592_v46  ;;  %v12656_v18 = vadd.f32 %v3729_v43, %v3675_v51  ;;  %v13985_v46 = vand.u32 4294901760, %v12671_v44 }
 0x23e   : > { %v6680_v5 = vmul.f32 %v3630_v63, %v12654_v53  ;;  %4172 = vmatmul.f32.gmra.mxu1 %v11412_v32 }
 0x23f   : > { %v3595_v11 = vpop.f32.mrf.mxu0  ;;  %4276 = vmatmul.f32.gmra.mxu3 %v14139_v2 }
 0x240   : > { %v12664_v37 = vadd.f32 %v6680_v5, %v6672_v23  ;;  %4230 = vmatmul.f32.gmra.mxu2 %v14137_v21  ;;  %v3596_v47 = vadd.f32 %v3595_v11, %v12601_v24  ;;  %v4800_v23 = vsub.f32 %v12671_v44, %v13985_v46 }
 0x242   : > { %4138 = vmatmul.f32.gmra.mxu0 %v14139_v2  ;;  %v3733_v52 = vpop.f32.mrf.mxu3 }
 0x243   : > { %v3633_v56 = vpop.f32.mrf.mxu1  ;;  %v3683_v14 = vpop.f32.mrf.mxu2 }
 0x244   : > { %v12673_v27 = vadd.f32 %v3733_v52, %v3683_v14  ;;  %v3634_v51 = vadd.f32 %v3633_v56, %v3596_v47 }
 0x246   : > { %4176 = vmatmul.f32.gmra.mxu1 %v14139_v2  ;;  %v6720_v24 = vmul.f32 %v3634_v51, %v12654_v53 }
 0x247   : > { %v3599_v15 = vpop.f32.mrf.mxu0  ;;  %4280 = vmatmul.f32.gmra.mxu3 %v14144_v3 }
 0x248   : > { %4238 = vmatmul.f32.gmra.mxu2 %v14142_v31  ;;  %v3600_v20 = vadd.f32 %v3599_v15, %v12612_v36  ;;  %v4801_v36 = vand.u32 4294901760, %v4800_v23  ;;  %v14185_v15 = vand.u32 4294901760, %v12608_v54 }
 0x24a   : > { %4142 = vmatmul.f32.gmra.mxu0 %v14144_v3  ;;  %v3737_v14 = vpop.f32.mrf.mxu3 }
 0x24b   : > { %v3637_v63 = vpop.f32.mrf.mxu1  ;;  %v3691_v43 = vpop.f32.mrf.mxu2 }
 0x24c   : > { %v3638_v5 = vadd.f32 %v3637_v63, %v3600_v20  ;;  %v12685_v52 = vadd.f32 %v3737_v14, %v3691_v43  ;;  %v14186_v43 = vld [vmem:[#allocation18_spill] sm:$0xff] }
 0x24d   : > { %v2147_v23 = vand.u32 3, %v14186_v43 }
 0x24e   : > { %v6728_v25 = vmul.f32 %v3638_v5, %v12652_v19  ;;  %4180 = vmatmul.f32.gmra.mxu1 %v14144_v3 }
 0x24f   : > { %v12688_v11 = vpop.f32.mrf.mxu0  ;;  %4434 = vmatmul.f32.vlgmr.msra.gmra.mxu3 %v11234_v30  ;;  %vm2149_vm9 = vcmp.eq.s32.totalorder %v2147_v23, 0  ;;  %vm2152_vm15 = vcmp.eq.s32.totalorder %v2147_v23, 2  ;;  %vm2148_vm2 = vcmp.lt.s32.totalorder %v2147_v23, 2 }
 0x250   : > { %v12692_v56 = vsub.f32 %v6720_v24, %v6728_v25  ;;  %4396 = vmatmul.f32.vlgmr.msra.gmra.mxu2 %v11234_v30  ;;  %4802 = vmatpush.msra.mxu3 %v4801_v36  ;;  %v14187_v24 = vld [vmem:[#allocation43_spill] sm:$0xff] }
 0x251   : > { %4740 = vmatpush.msra.mxu2 %v12662_v8  ;;  %v14188_v36 = vxor.u32 2147483648, %v14187_v24 }
 0x252   : > { %14184 = vst [vmem:[#allocation30_spill] sm:$0xff] %v12692_v56  ;;  %4304 = vmatmul.f32.vlgmr.msra.gmra.mxu0 %v11266_v57  ;;  %v3741_v51 = vpop.f32.mrf.mxu3 }
 0x253   : > { %4664 = vmatpush.msra.mxu0 %v14185_v15  ;;  %v12700_v47 = vpop.f32.mrf.mxu1  ;;  %v3699_v20 = vpop.f32.mrf.mxu2  ;;  %v14189_v15 = vld [vmem:[#allocation23_spill] sm:$0xff] }
 0x254   : > { %v12702_v63 = vadd.f32 %v3741_v51, %v3699_v20  ;;  %v2151_v20 = vsel %vm2149_vm9, %v14189_v15, %v14188_v36 }
 0x256   : > { %4348 = vmatmul.f32.vlgmr.msra.gmra.mxu1 %v14097_v1 }
 0x257   : > { %v3765_v25 = vpop.f32.mrf.mxu0  ;;  %4702 = vmatpush.msra.mxu1 %v12598_v55  ;;  %4438 = vmatmul.f32.gmra.mxu3 %v11407_v12  ;;  %v14190_v55 = vxor.u32 2147483648, %v14189_v15 }
 0x258   : > { %4400 = vmatmul.f32.gmra.mxu2 %v11407_v12  ;;  %v3766_v54 = vadd.f32 %v3765_v25, %v12642_v50  ;;  %v14191_v25 = vld [vmem:[#allocation21_spill] sm:$0xff] }
 0x259   : > { %v2154_v46 = vsel %vm2152_vm15, %v14190_v55, %v14187_v24  ;;  %vm14222_vm15 = vmmov %vm14217_vm12 }
 0x25a   : > { %4309 = vmatmul.f32.gmra.mxu0 %v14102_v38  ;;  %v3895_v43 = vpop.f32.mrf.mxu3  ;;  %v2155_v59 = vsel %vm2148_vm2, %v2151_v20, %v2154_v46  ;;  %vm14226_vm2 = vmmov %vm14217_vm12 }
 0x25b   : > { %v3809_v5 = vpop.f32.mrf.mxu1  ;;  %v3857_v14 = vpop.f32.mrf.mxu2  ;;  %v12724_v23 = vsel %vm909_vm3, nan, %v2155_v59  ;;  %vm10266_vm3 = vcmask 1045508  }
 0x25c   : > { %v3810_v51 = vadd.f32 %v3809_v5, %v3766_v54  ;;  %v2792_v54 = vmul.f32 %v14191_v25, %v14191_v25 }
 0x25e   : > { %v3858_v49 = vadd.f32 %v3857_v14, %v3810_v51  ;;  %4354 = vmatmul.f32.gmra.mxu1 %v14105_v45  ;;  %v2800_v15 = vadd.f32 %v2792_v54, %v2792_v54 }
 0x25f   : > { %v3770_v56 = vpop.f32.mrf.mxu0  ;;  %4442 = vmatmul.f32.gmra.mxu3 %v11412_v32 }
 0x260   : > { %v3896_v50 = vadd.f32 %v3895_v43, %v3858_v49  ;;  %4404 = vmatmul.f32.gmra.mxu2 %v11412_v32  ;;  %v3771_v24 = vadd.f32 %v3770_v56, %v12656_v18  ;;  %v2776_v49 = vmul.f32 %v12724_v23, %v14191_v25  ;;  %v12733_v59 = vsub.f32 1.0, %v2800_v15 }
 0x262   : > { %4314 = vmatmul.f32.gmra.mxu0 %v14107_v22  ;;  %v3899_v20 = vpop.f32.mrf.mxu3  ;;  %v12731_v55 = vadd.f32 %v2776_v49, %v2776_v49 }
 0x263   : > { %v3815_v14 = vpop.f32.mrf.mxu1  ;;  %v3861_v46 = vpop.f32.mrf.mxu2 }
 0x264   : > { %v3816_v36 = vadd.f32 %v3815_v14, %v3771_v24  ;;  %v6673_v18 = vmul.f32 %v3896_v50, %v12731_v55 }
 0x266   : > { %v3862_v43 = vadd.f32 %v3861_v46, %v3816_v36  ;;  %4360 = vmatmul.f32.gmra.mxu1 %v14112_v7 }
 0x267   : > { %v3775_v51 = vpop.f32.mrf.mxu0  ;;  %4446 = vmatmul.f32.gmra.mxu3 %v14139_v2 }
 0x268   : > { %v3900_v5 = vadd.f32 %v3899_v20, %v3862_v43  ;;  %4408 = vmatmul.f32.gmra.mxu2 %v14139_v2  ;;  %v3776_v56 = vadd.f32 %v3775_v51, %v12673_v27 }
 0x26a   : > { %4319 = vmatmul.f32.gmra.mxu0 %v14136_v39  ;;  %v6681_v25 = vmul.f32 %v3900_v5, %v12733_v59  ;;  %v3903_v49 = vpop.f32.mrf.mxu3 }
 0x26b   : > { %v3821_v54 = vpop.f32.mrf.mxu1  ;;  %v3865_v24 = vpop.f32.mrf.mxu2 }
 0x26c   : > { %v12741_v14 = vadd.f32 %v6681_v25, %v6673_v18  ;;  %v3822_v46 = vadd.f32 %v3821_v54, %v3776_v56 }
 0x26e   : > { %v3866_v15 = vadd.f32 %v3865_v24, %v3822_v46  ;;  %4366 = vmatmul.f32.gmra.mxu1 %v14135_v16  ;;  %v14193_v46 = vand.u32 4294901760, %v12671_v44 }
 0x26f   : > { %v3780_v36 = vpop.f32.mrf.mxu0  ;;  %4450 = vmatmul.f32.gmra.mxu3 %v14144_v3 }
 0x270   : > { %v3904_v20 = vadd.f32 %v3903_v49, %v3866_v15  ;;  %4412 = vmatmul.f32.gmra.mxu2 %v14144_v3  ;;  %v3781_v27 = vadd.f32 %v3780_v36, %v12685_v52  ;;  %v3604_v15 = vadd.f32 %v12688_v11, %v12628_v58 }
 0x272   : > { %4324 = vmatmul.f32.gmra.mxu0 %v14140_v61  ;;  %v3907_v5 = vpop.f32.mrf.mxu3  ;;  %v6721_v54 = vmul.f32 %v3904_v20, %v12733_v59  ;;  %v3642_v20 = vadd.f32 %v12700_v47, %v3604_v15 }
 0x273   : > { %v3827_v50 = vpop.f32.mrf.mxu1  ;;  %v3869_v51 = vpop.f32.mrf.mxu2 }
 0x274   : > { %v3828_v43 = vadd.f32 %v3827_v50, %v3781_v27  ;;  %v10285_v58 = vrot.slane %v3642_v20, 4 }
 0x276   : > { %v3870_v56 = vadd.f32 %v3869_v51, %v3828_v43  ;;  %4372 = vmatmul.f32.gmra.mxu1 %v14119_v4 }
 0x277   : > { %v3785_v18 = vpop.f32.mrf.mxu0  ;;  %4618 = vmatmul.f32.vlgmr.msrb.gmra.mxu3 %v14097_v1 }
 0x278   : > { %v3908_v25 = vadd.f32 %v3907_v5, %v3870_v56  ;;  %4574 = vmatmul.f32.vlgmr.msrb.gmra.mxu2 %v11266_v57  ;;  %4972 = vmatpush.msrb.mxu3 %v12662_v8  ;;  %v3786_v52 = vadd.f32 %v3785_v18, %v12702_v63 }
 0x279   : > { %4934 = vmatpush.msrb.mxu2 %v14193_v46 }
 0x27a   : > { %4476 = vmatmul.f32.vlgmr.msrb.gmra.mxu0 %v14121_v29  ;;  %v6729_v24 = vmul.f32 %v3908_v25, %v12731_v55  ;;  %v3911_v51 = vpop.f32.mrf.mxu3 }
 0x27b   : > { %4841 = vmatpush.msrb.mxu0 %v12671_v44  ;;  %v3833_v49 = vpop.f32.mrf.mxu1  ;;  %v3873_v36 = vpop.f32.mrf.mxu2 }
 0x27c   : > { %v12761_v27 = vsub.f32 %v6721_v54, %v6729_v24  ;;  %v3834_v50 = vadd.f32 %v3833_v49, %v3786_v52 }
 0x27e   : > { %14194 = vst [vmem:[#allocation42_spill] sm:$0xff] %v12761_v27  ;;  %v3874_v63 = vadd.f32 %v3873_v36, %v3834_v50  ;;  %4534 = vmatmul.f32.vlgmr.msrb.gmra.mxu1 %v11234_v30 }
 0x27f   : > { %v3937_v43 = vpop.f32.mrf.mxu0  ;;  %4884 = vmatpush.msrb.mxu1 %v12662_v8  ;;  %4624 = vmatmul.f32.gmra.mxu3 %v14105_v45 }
 0x280   : > { %v3912_v5 = vadd.f32 %v3911_v51, %v3874_v63  ;;  %4579 = vmatmul.f32.gmra.mxu2 %v14102_v38 }
 0x282   : > { %4484 = vmatmul.f32.gmra.mxu0 %v11451_v62  ;;  %v10286_v44 = vrot.slane %v3912_v5, 2  ;;  %v4079_v25 = vpop.f32.mrf.mxu3 }
 0x283   : > { %v3995_v11 = vpop.f32.mrf.mxu1  ;;  %v4035_v18 = vpop.f32.mrf.mxu2 }
 0x284   : > { %v10291_v47 = vsel %vm10266_vm3, %v10285_v58, %v10286_v44  ;;  %v3996_v56 = vadd.f32 %v3995_v11, %v3937_v43  ;;  %v12787_v58 = vand.u32 4294901760, %v12378_v40 }
 0x285   : > { %v12772_v54 = vsel %vm14195_vm14, %v12583_v13, %v10291_v47  ;;  %vm10420_vm14 = vcmask 1040384  }
 0x286   : > { %v4036_v52 = vadd.f32 %v4035_v18, %v3996_v56  ;;  %4538 = vmatmul.f32.gmra.mxu1 %v11407_v12  ;;  %v12797_v47 = vsub.f32 %v12378_v40, %v12787_v58 }
 0x287   : > { %v3945_v8 = vpop.f32.mrf.mxu0  ;;  %4630 = vmatmul.f32.gmra.mxu3 %v14112_v7 }
 0x288   : > { %v12775_v24 = vadd.f32 %v4079_v25, %v4036_v52  ;;  %4584 = vmatmul.f32.gmra.mxu2 %v14107_v22 }
 0x28a   : > { %4492 = vmatmul.f32.gmra.mxu0 %v11490_v0  ;;  %v4085_v15 = vpop.f32.mrf.mxu3 }
 0x28b   : > { %v3999_v46 = vpop.f32.mrf.mxu1  ;;  %v4040_v49 = vpop.f32.mrf.mxu2 }
 0x28c   : > { %v4000_v36 = vadd.f32 %v3999_v46, %v3945_v8  ;;  %v13989_v46 = vand.u32 4294901760, %v12797_v47 }
 0x28e   : > { %v4041_v51 = vadd.f32 %v4040_v49, %v4000_v36  ;;  %4542 = vmatmul.f32.gmra.mxu1 %v11412_v32  ;;  %v5066_v40 = vsub.f32 %v12797_v47, %v13989_v46 }
 0x28f   : > { %v3953_v50 = vpop.f32.mrf.mxu0  ;;  %4636 = vmatmul.f32.gmra.mxu3 %v14135_v16 }
 0x290   : > { %v12781_v13 = vadd.f32 %v4085_v15, %v4041_v51  ;;  %4589 = vmatmul.f32.gmra.mxu2 %v14136_v39 }
 0x292   : > { %4500 = vmatmul.f32.gmra.mxu0 %v14137_v21  ;;  %v4091_v5 = vpop.f32.mrf.mxu3 }
 0x293   : > { %v4003_v20 = vpop.f32.mrf.mxu1  ;;  %v4045_v43 = vpop.f32.mrf.mxu2 }
 0x294   : > { %v4004_v63 = vadd.f32 %v4003_v20, %v3953_v50  ;;  %v14196_v50 = vld [vmem:[#allocation31_spill] sm:$0xff] }
 0x295   : > { %v2301_v51 = vand.u32 3, %v14196_v50 }
 0x296   : > { %v4046_v11 = vadd.f32 %v4045_v43, %v4004_v63  ;;  %4546 = vmatmul.f32.gmra.mxu1 %v14139_v2 }
 0x297   : > { %v3961_v44 = vpop.f32.mrf.mxu0  ;;  %4642 = vmatmul.f32.gmra.mxu3 %v14119_v4  ;;  %vm2303_vm10 = vcmp.eq.s32.totalorder %v2301_v51, 0  ;;  %vm2306_vm6 = vcmp.eq.s32.totalorder %v2301_v51, 2  ;;  %vm2302_vm13 = vcmp.lt.s32.totalorder %v2301_v51, 2 }
 0x298   : > { %v12790_v18 = vadd.f32 %v4091_v5, %v4046_v11  ;;  %4594 = vmatmul.f32.gmra.mxu2 %v14140_v61 }
 0x29a   : > { %4508 = vmatmul.f32.gmra.mxu0 %v14142_v31  ;;  %v4097_v52 = vpop.f32.mrf.mxu3 }
 0x29b   : > { %v4007_v56 = vpop.f32.mrf.mxu1  ;;  %v4050_v25 = vpop.f32.mrf.mxu2 }
 0x29c   : > { %v4008_v8 = vadd.f32 %v4007_v56, %v3961_v44  ;;  %v5067_v44 = vand.u32 4294901760, %v5066_v40  ;;  %v14197_v56 = vld [vmem:[#allocation35_spill] sm:$0xff] }
 0x29e   : > { %v4051_v36 = vadd.f32 %v4050_v25, %v4008_v8  ;;  %4550 = vmatmul.f32.gmra.mxu1 %v14144_v3  ;;  %v14198_v25 = vxor.u32 2147483648, %v14197_v56  ;;  %v14199_v8 = vld [vmem:[#allocation40_spill] sm:$0xff] }
 0x29f   : > { %v3969_v49 = vpop.f32.mrf.mxu0  ;;  %4804 = vmatmul.f32.vlgmr.msra.gmra.mxu3 %v11234_v30 }
 0x2a0   : > { %v12801_v15 = vadd.f32 %v4097_v52, %v4051_v36  ;;  %4746 = vmatmul.f32.vlgmr.msra.gmra.mxu2 %v14121_v29  ;;  %5132 = vmatpush.msra.mxu3 %v12787_v58  ;;  %v2305_v52 = vsel %vm2303_vm10, %v14199_v8, %v14198_v25  ;;  %vm10422_vm10 = vcmask 1042434  }
 0x2a1   : > { %5099 = vmatpush.msra.mxu2 %v12797_v47 }
 0x2a2   : > { %4666 = vmatmul.f32.vlgmr.msra.gmra.mxu0 %v11234_v30  ;;  %v4103_v5 = vpop.f32.mrf.mxu3 }
 0x2a3   : > { %5022 = vmatpush.msra.mxu0 %v12787_v58  ;;  %v4011_v20 = vpop.f32.mrf.mxu1  ;;  %v4055_v43 = vpop.f32.mrf.mxu2 }
 0x2a4   : > { %v4012_v63 = vadd.f32 %v4011_v20, %v3969_v49  ;;  %v14200_v49 = vxor.u32 2147483648, %v14199_v8 }
 0x2a6   : > { %v4056_v11 = vadd.f32 %v4055_v43, %v4012_v63  ;;  %4704 = vmatmul.f32.vlgmr.msra.gmra.mxu1 %v11234_v30  ;;  %v2308_v40 = vsel %vm2306_vm6, %v14200_v49, %v14197_v56  ;;  %vm10427_vm6 = vcmask 1046534  }
 0x2a7   : > { %v4127_v29 = vpop.f32.mrf.mxu0  ;;  %5068 = vmatpush.msra.mxu1 %v5067_v44  ;;  %4808 = vmatmul.f32.gmra.mxu3 %v11407_v12  ;;  %v2309_v50 = vsel %vm2302_vm13, %v2305_v52, %v2308_v40  ;;  %v14201_v44 = vld [vmem:[#allocation29_spill] sm:$0xff]  ;;  %vm14228_vm13 = vmmov %vm14226_vm2 }
 0x2a8   : > { %v12817_v36 = vadd.f32 %v4103_v5, %v4056_v11  ;;  %4754 = vmatmul.f32.gmra.mxu2 %v11451_v62  ;;  %v2793_v5 = vmul.f32 %v14201_v44, %v14201_v44  ;;  %v12829_v25 = vsel %vm1064_vm1, nan, %v2309_v50  ;;  %v4128_v51 = vadd.f32 %v4127_v29, %v12775_v24 }
 0x2a9   : > { %v2777_v56 = vmul.f32 %v12829_v25, %v14201_v44 }
 0x2aa   : > { %4670 = vmatmul.f32.gmra.mxu0 %v11407_v12  ;;  %v4265_v63 = vpop.f32.mrf.mxu3  ;;  %v2801_v8 = vadd.f32 %v2793_v5, %v2793_v5 }
 0x2ab   : > { %v4165_v20 = vpop.f32.mrf.mxu1  ;;  %v4207_v43 = vpop.f32.mrf.mxu2 }
 0x2ac   : > { %v12831_v62 = vadd.f32 %v4265_v63, %v4207_v43  ;;  %v4166_v49 = vadd.f32 %v4165_v20, %v4128_v51  ;;  %v12841_v43 = vadd.f32 %v2777_v56, %v2777_v56  ;;  %v12843_v63 = vsub.f32 1.0, %v2801_v8 }
 0x2ae   : > { %4708 = vmatmul.f32.gmra.mxu1 %v11407_v12  ;;  %v6674_v44 = vmul.f32 %v4166_v49, %v12841_v43 }
 0x2af   : > { %v4131_v46 = vpop.f32.mrf.mxu0  ;;  %4812 = vmatmul.f32.gmra.mxu3 %v11412_v32 }
 0x2b0   : > { %4762 = vmatmul.f32.gmra.mxu2 %v11490_v0  ;;  %v4132_v52 = vadd.f32 %v4131_v46, %v12781_v13  ;;  %v12851_v13 = vand.u32 4294901760, %v12509_v35 }
 0x2b2   : > { %4674 = vmatmul.f32.gmra.mxu0 %v11412_v32  ;;  %v4269_v29 = vpop.f32.mrf.mxu3  ;;  %v12860_v51 = vsub.f32 %v12509_v35, %v12851_v13 }
 0x2b3   : > { %v4169_v40 = vpop.f32.mrf.mxu1  ;;  %v4215_v50 = vpop.f32.mrf.mxu2 }
 0x2b4   : > { %v4170_v24 = vadd.f32 %v4169_v40, %v4132_v52  ;;  %v12845_v11 = vadd.f32 %v4269_v29, %v4215_v50  ;;  %v5273_v49 = vand.u32 4294901760, %v12860_v51 }
 0x2b6   : > { %v6682_v0 = vmul.f32 %v4170_v24, %v12843_v63  ;;  %4712 = vmatmul.f32.gmra.mxu1 %v11412_v32  ;;  %v5274_v29 = vsub.f32 %v12860_v51, %v5273_v49 }
 0x2b7   : > { %v4135_v27 = vpop.f32.mrf.mxu0  ;;  %4816 = vmatmul.f32.gmra.mxu3 %v14139_v2 }
 0x2b8   : > { %v12853_v46 = vadd.f32 %v6682_v0, %v6674_v44  ;;  %4770 = vmatmul.f32.gmra.mxu2 %v14137_v21  ;;  %v4136_v40 = vadd.f32 %v4135_v27, %v12790_v18 }
 0x2ba   : > { %4678 = vmatmul.f32.gmra.mxu0 %v14139_v2  ;;  %v4273_v56 = vpop.f32.mrf.mxu3 }
 0x2bb   : > { %v4173_v20 = vpop.f32.mrf.mxu1  ;;  %v4223_v5 = vpop.f32.mrf.mxu2 }
 0x2bc   : > { %v12862_v8 = vadd.f32 %v4273_v56, %v4223_v5  ;;  %v4174_v35 = vadd.f32 %v4173_v20, %v4136_v40  ;;  %v14203_v56 = vand.u32 4294901760, %v12797_v47 }
 0x2be   : > { %4716 = vmatmul.f32.gmra.mxu1 %v14139_v2  ;;  %v6722_v27 = vmul.f32 %v4174_v35, %v12843_v63 }
 0x2bf   : > { %v4139_v52 = vpop.f32.mrf.mxu0  ;;  %4820 = vmatmul.f32.gmra.mxu3 %v14144_v3 }
 0x2c0   : > { %4778 = vmatmul.f32.gmra.mxu2 %v14142_v31  ;;  %v4140_v21 = vadd.f32 %v4139_v52, %v12801_v15  ;;  %v5275_v15 = vand.u32 4294901760, %v5274_v29 }
 0x2c2   : > { %4682 = vmatmul.f32.gmra.mxu0 %v14144_v3  ;;  %v4277_v0 = vpop.f32.mrf.mxu3 }
 0x2c3   : > { %v4177_v50 = vpop.f32.mrf.mxu1  ;;  %v4231_v24 = vpop.f32.mrf.mxu2 }
 0x2c4   : > { %v4178_v44 = vadd.f32 %v4177_v50, %v4140_v21  ;;  %v12874_v5 = vadd.f32 %v4277_v0, %v4231_v24  ;;  %v14204_v24 = vld [vmem:[#allocation32_spill] sm:$0xff] }
 0x2c5   : > { %v2455_v29 = vand.u32 3, %v14204_v24  ;;  %v4994_v24 = vld [vmem:[%s13834_s2] sm:$0xff] }
 0x2c6   : > { %v6730_v31 = vmul.f32 %v4178_v44, %v12841_v43  ;;  %4720 = vmatmul.f32.gmra.mxu1 %v14144_v3  ;;  %v14205_v44 = vld [vmem:[#allocation24_spill] sm:$0xff] }
 0x2c7   : > { %v12877_v18 = vpop.f32.mrf.mxu0  ;;  %4974 = vmatmul.f32.vlgmr.msrb.gmra.mxu3 %v11234_v30  ;;  %vm2457_vm1 = vcmp.eq.s32.totalorder %v2455_v29, 0  ;;  %v14206_v0 = vxor.u32 2147483648, %v14205_v44  ;;  %vm2460_vm4 = vcmp.eq.s32.totalorder %v2455_v29, 2  ;;  %vm2456_vm7 = vcmp.lt.s32.totalorder %v2455_v29, 2 }
 0x2c8   : > { %v12881_v20 = vsub.f32 %v6722_v27, %v6730_v31  ;;  %4936 = vmatmul.f32.vlgmr.msrb.gmra.mxu2 %v11234_v30  ;;  %5276 = vmatpush.msrb.mxu3 %v5275_v15  ;;  %v14207_v27 = vld [vmem:[#allocation39_spill] sm:$0xff] }
 0x2c9   : > { %5230 = vmatpush.msrb.mxu2 %v12851_v13  ;;  %v2459_v31 = vsel %vm2457_vm1, %v14207_v27, %v14206_v0 }
 0x2ca   : > { %4844 = vmatmul.f32.vlgmr.msrb.gmra.mxu0 %v11266_v57  ;;  %v4281_v21 = vpop.f32.mrf.mxu3 }
 0x2cb   : > { %5170 = vmatpush.msrb.mxu0 %v14203_v56  ;;  %v12889_v52 = vpop.f32.mrf.mxu1  ;;  %v4239_v40 = vpop.f32.mrf.mxu2 }
 0x2cc   : > { %v12891_v35 = vadd.f32 %v4281_v21, %v4239_v40  ;;  %v14209_v21 = vld [vmem:[#allocation36_spill] sm:$0xff] }
 0x2ce   : > { %4888 = vmatmul.f32.vlgmr.msrb.gmra.mxu1 %v14097_v1 }
 0x2cf   : > { %v4305_v50 = vpop.f32.mrf.mxu0  ;;  %5200 = vmatpush.msrb.mxu1 %v12787_v58  ;;  %4978 = vmatmul.f32.gmra.mxu3 %v11407_v12  ;;  %v14208_v58 = vxor.u32 2147483648, %v14207_v27 }
 0x2d0   : > { %4940 = vmatmul.f32.gmra.mxu2 %v11407_v12  ;;  %v4306_v30 = vadd.f32 %v4305_v50, %v12831_v62  ;;  %v2794_v50 = vmul.f32 %v14209_v21, %v14209_v21 }
 0x2d1   : > { %v2462_v56 = vsel %vm2460_vm4, %v14208_v58, %v14205_v44 }
 0x2d2   : > { %4849 = vmatmul.f32.gmra.mxu0 %v14102_v38  ;;  %v4435_v15 = vpop.f32.mrf.mxu3  ;;  %v2463_v38 = vsel %vm2456_vm7, %v2459_v31, %v2462_v56  ;;  %v2802_v27 = vadd.f32 %v2794_v50, %v2794_v50 }
 0x2d3   : > { %v4349_v57 = vpop.f32.mrf.mxu1  ;;  %v4397_v47 = vpop.f32.mrf.mxu2 }
 0x2d4   : > { %v4350_v1 = vadd.f32 %v4349_v57, %v4306_v30  ;;  %v12916_v30 = vsel %vm1219_vm8, nan, %v2463_v38  ;;  %v4998_v57 = vsel %vm14211_vm11, %v4994_v24, 0  ;;  %v12931_v56 = vsub.f32 1.0, %v2802_v27  ;;  %vm14212_vm8 = vmmov %vm14211_vm11 }
 0x2d5   : > { %vm14213_vm5 = vmmov %vm14212_vm8 }
 0x2d6   : > { %v4398_v40 = vadd.f32 %v4397_v47, %v4350_v1  ;;  %4894 = vmatmul.f32.gmra.mxu1 %v14105_v45  ;;  %v12923_v1 = vand.u32 4294901760, %v4998_v57  ;;  %vm14219_vm9 = vmmov %vm14213_vm5 }
 0x2d7   : > { %v4310_v12 = vpop.f32.mrf.mxu0  ;;  %4982 = vmatmul.f32.gmra.mxu3 %v11412_v32 }
 0x2d8   : > { %v4436_v62 = vadd.f32 %v4435_v15, %v4398_v40  ;;  %4944 = vmatmul.f32.gmra.mxu2 %v11412_v32  ;;  %v4311_v45 = vadd.f32 %v4310_v12, %v12845_v11  ;;  %v2778_v32 = vmul.f32 %v12916_v30, %v14209_v21  ;;  %v12937_v40 = vsub.f32 %v4998_v57, %v12923_v1 }
 0x2da   : > { %4854 = vmatmul.f32.gmra.mxu0 %v14107_v22  ;;  %v4439_v31 = vpop.f32.mrf.mxu3  ;;  %v4995_v22 = vld [vmem:[%s13834_s2 + $0x8] sm:$0xff]  ;;  %v12929_v11 = vadd.f32 %v2778_v32, %v2778_v32 }
 0x2db   : > { %v4355_v47 = vpop.f32.mrf.mxu1  ;;  %v4401_v44 = vpop.f32.mrf.mxu2  ;;  %v5001_v50 = vsel %vm14212_vm8, %v4995_v22, 0 }
 0x2dc   : > { %v4356_v0 = vadd.f32 %v4355_v47, %v4311_v45 }
 0x2de   : > { %v4402_v58 = vadd.f32 %v4401_v44, %v4356_v0  ;;  %4900 = vmatmul.f32.gmra.mxu1 %v14112_v7  ;;  %v6675_v7 = vmul.f32 %v4436_v62, %v12929_v11 }
 0x2df   : > { %v4315_v15 = vpop.f32.mrf.mxu0  ;;  %4986 = vmatmul.f32.gmra.mxu3 %v14139_v2 }
 0x2e0   : > { %v4440_v12 = vadd.f32 %v4439_v31, %v4402_v58  ;;  %4948 = vmatmul.f32.gmra.mxu2 %v14139_v2  ;;  %v4316_v38 = vadd.f32 %v4315_v15, %v12862_v8  ;;  %v12946_v2 = vand.u32 4294901760, %v12937_v40  ;;  %v4996_v8 = vld [vmem:[%s13834_s2 + $0x10] sm:$0xff] }
 0x2e2   : > { %4859 = vmatmul.f32.gmra.mxu0 %v14136_v39  ;;  %v6683_v21 = vmul.f32 %v4440_v12, %v12931_v56  ;;  %v4443_v44 = vpop.f32.mrf.mxu3  ;;  %v12948_v39 = vand.u32 4294901760, %v5001_v50  ;;  %v5026_v0 = vsub.f32 %v12937_v40, %v12946_v2 }
 0x2e3   : > { %v4361_v24 = vpop.f32.mrf.mxu1  ;;  %v4405_v29 = vpop.f32.mrf.mxu2 }
 0x2e4   : > { %v12943_v45 = vadd.f32 %v6683_v21, %v6675_v7  ;;  %v4362_v47 = vadd.f32 %v4361_v24, %v4316_v38  ;;  %v12960_v27 = vsub.f32 %v5001_v50, %v12948_v39  ;;  %v12964_v7 = vand.u32 4294901760, %v5026_v0 }
 0x2e6   : > { %v4406_v32 = vadd.f32 %v4405_v29, %v4362_v47  ;;  %4906 = vmatmul.f32.gmra.mxu1 %v14135_v16  ;;  %v5004_v16 = vsel %vm14213_vm5, %v4996_v8, 0 }
 0x2e7   : > { %v4320_v57 = vpop.f32.mrf.mxu0  ;;  %4990 = vmatmul.f32.gmra.mxu3 %v14144_v3 }
 0x2e8   : > { %v4444_v62 = vadd.f32 %v4443_v44, %v4406_v32  ;;  %4952 = vmatmul.f32.gmra.mxu2 %v14144_v3  ;;  %v4321_v31 = vadd.f32 %v4320_v57, %v12874_v5  ;;  %v12967_v3 = vand.u32 4294901760, %v12960_v27 }
 0x2ea   : > { %4864 = vmatmul.f32.gmra.mxu0 %v14140_v61  ;;  %v4447_v12 = vpop.f32.mrf.mxu3  ;;  %v12969_v61 = vand.u32 4294901760, %v5004_v16  ;;  %v5034_v5 = vsub.f32 %v12960_v27, %v12967_v3  ;;  %v6723_v29 = vmul.f32 %v4444_v62, %v12931_v56 }
 0x2eb   : > { %v4367_v15 = vpop.f32.mrf.mxu1  ;;  %v4409_v58 = vpop.f32.mrf.mxu2 }
 0x2ec   : > { %v4368_v22 = vadd.f32 %v4367_v15, %v4321_v31  ;;  %v12979_v24 = vsub.f32 %v5004_v16, %v12969_v61  ;;  %v12989_v31 = vand.u32 4294901760, %v5034_v5 }
 0x2ee   : > { %v4410_v21 = vadd.f32 %v4409_v58, %v4368_v22  ;;  %4912 = vmatmul.f32.gmra.mxu1 %v14119_v4  ;;  %v12992_v16 = vand.u32 4294901760, %v12979_v24 }
 0x2ef   : > { %v4325_v38 = vpop.f32.mrf.mxu0  ;;  %5136 = vmatmul.f32.vlgmr.msra.gmra.mxu3 %v12946_v2 }
 0x2f0   : > { %v4448_v50 = vadd.f32 %v4447_v12, %v4410_v21  ;;  %5102 = vmatmul.f32.vlgmr.msra.gmra.mxu2 %v12937_v40  ;;  %5408 = vmatpush.msra.mxu3 %v12851_v13  ;;  %v4326_v47 = vadd.f32 %v4325_v38, %v12891_v35  ;;  %v5042_v15 = vsub.f32 %v12979_v24, %v12992_v16 }
 0x2f1   : > { %5378 = vmatpush.msra.mxu2 %v5273_v49 }
 0x2f2   : > { %5028 = vmatmul.f32.vlgmr.msra.gmra.mxu0 %v12964_v7  ;;  %v6731_v4 = vmul.f32 %v4448_v50, %v12929_v11  ;;  %v4451_v0 = vpop.f32.mrf.mxu3  ;;  %v13010_v50 = vand.u32 4294901760, %v12640_v26 }
 0x2f3   : > { %5307 = vmatpush.msra.mxu0 %v12860_v51  ;;  %v4373_v44 = vpop.f32.mrf.mxu1  ;;  %v4413_v57 = vpop.f32.mrf.mxu2  ;;  %v4144_v51 = vadd.f32 %v12877_v18, %v12817_v36  ;;  %v13007_v18 = vand.u32 4294901760, %v5042_v15 }
 0x2f4   : > { %v12987_v32 = vsub.f32 %v6723_v29, %v6731_v4  ;;  %v4374_v8 = vadd.f32 %v4373_v44, %v4326_v47 }
 0x2f5   : > { %v4182_v58 = vadd.f32 %v12889_v52, %v4144_v51  ;;  %v5480_v52 = vsub.f32 %v12640_v26, %v13010_v50 }
 0x2f6   : > { %14214 = vst [vmem:[#allocation17_spill] sm:$0xff] %v12987_v32  ;;  %v4414_v35 = vadd.f32 %v4413_v57, %v4374_v8  ;;  %5070 = vmatmul.f32.vlgmr.msra.gmra.mxu1 %v12923_v1 }
 0x2f7   : > { %v4477_v62 = vpop.f32.mrf.mxu0  ;;  %5340 = vmatpush.msra.mxu1 %v12851_v13  ;;  %5142 = vmatmul.f32.gmra.mxu3 %v12967_v3 }
 0x2f8   : > { %v4452_v49 = vadd.f32 %v4451_v0, %v4414_v35  ;;  %5107 = vmatmul.f32.gmra.mxu2 %v12960_v27  ;;  %v5481_v0 = vand.u32 4294901760, %v5480_v52 }
 0x2fa   : > { %5036 = vmatmul.f32.gmra.mxu0 %v12989_v31  ;;  %v10287_v22 = vrot.slane %v4452_v49, 6  ;;  %v4619_v36 = vpop.f32.mrf.mxu3  ;;  %v5482_v26 = vsub.f32 %v5480_v52, %v5481_v0 }
 0x2fb   : > { %v4535_v12 = vpop.f32.mrf.mxu1  ;;  %v4575_v38 = vpop.f32.mrf.mxu2 }
 0x2fc   : > { %v13005_v13 = vsel %vm10264_vm0, %v4182_v58, %v10287_v22  ;;  %v4536_v21 = vadd.f32 %v4535_v12, %v4477_v62  ;;  %v5483_v12 = vand.u32 4294901760, %v5482_v26 }
 0x2fe   : > { %v4576_v29 = vadd.f32 %v4575_v38, %v4536_v21  ;;  %5074 = vmatmul.f32.gmra.mxu1 %v12948_v39 }
 0x2ff   : > { %v4485_v5 = vpop.f32.mrf.mxu0  ;;  %5148 = vmatmul.f32.gmra.mxu3 %v12992_v16 }
 0x300   : > { %v13013_v47 = vadd.f32 %v4619_v36, %v4576_v29  ;;  %5112 = vmatmul.f32.gmra.mxu2 %v12979_v24  ;;  %v13030_v36 = vand.u32 4294901760, %v12724_v23 }
 0x302   : > { %5044 = vmatmul.f32.gmra.mxu0 %v13007_v18  ;;  %v4625_v8 = vpop.f32.mrf.mxu3 }
 0x303   : > { %v4539_v4 = vpop.f32.mrf.mxu1  ;;  %v4580_v44 = vpop.f32.mrf.mxu2 }
 0x304   : > { %v4540_v57 = vadd.f32 %v4539_v4, %v4485_v5  ;;  %v13039_v4 = vsub.f32 %v12724_v23, %v13030_v36 }
 0x306   : > { %v4581_v35 = vadd.f32 %v4580_v44, %v4540_v57  ;;  %5078 = vmatmul.f32.gmra.mxu1 %v12969_v61 }
 0x307   : > { %v4493_v62 = vpop.f32.mrf.mxu0  ;;  %5278 = vmatmul.f32.vlgmr.msrb.gmra.mxu3 %v12923_v1 }
 0x308   : > { %v13021_v51 = vadd.f32 %v4625_v8, %v4581_v35  ;;  %5236 = vmatmul.f32.vlgmr.msrb.gmra.mxu2 %v12964_v7  ;;  %5548 = vmatpush.msrb.mxu3 %v13010_v50  ;;  %v5689_v35 = vand.u32 4294901760, %v13039_v4 }
 0x309   : > { %5515 = vmatpush.msrb.mxu2 %v5480_v52 }
 0x30a   : > { %5172 = vmatmul.f32.vlgmr.msrb.gmra.mxu0 %v12923_v1  ;;  %v4631_v22 = vpop.f32.mrf.mxu3  ;;  %v5690_v23 = vsub.f32 %v13039_v4, %v5689_v35 }
 0x30b   : > { %5438 = vmatpush.msrb.mxu0 %v13010_v50  ;;  %v4543_v49 = vpop.f32.mrf.mxu1  ;;  %v4585_v15 = vpop.f32.mrf.mxu2 }
 0x30c   : > { %v4544_v58 = vadd.f32 %v4543_v49, %v4493_v62 }
 0x30e   : > { %v4586_v21 = vadd.f32 %v4585_v15, %v4544_v58  ;;  %5202 = vmatmul.f32.vlgmr.msrb.gmra.mxu1 %v12923_v1 }
 0x30f   : > { %v4501_v38 = vpop.f32.mrf.mxu0  ;;  %5484 = vmatpush.msrb.mxu1 %v5483_v12  ;;  %5282 = vmatmul.f32.gmra.mxu3 %v12948_v39 }
 0x310   : > { %v13032_v5 = vadd.f32 %v4631_v22, %v4586_v21  ;;  %5244 = vmatmul.f32.gmra.mxu2 %v12989_v31  ;;  %v5691_v21 = vand.u32 4294901760, %v5690_v23 }
 0x312   : > { %5176 = vmatmul.f32.gmra.mxu0 %v12948_v39  ;;  %v4637_v57 = vpop.f32.mrf.mxu3 }
 0x313   : > { %v4547_v29 = vpop.f32.mrf.mxu1  ;;  %v4590_v52 = vpop.f32.mrf.mxu2 }
 0x314   : > { %v4548_v44 = vadd.f32 %v4547_v29, %v4501_v38 }
 0x316   : > { %v4591_v62 = vadd.f32 %v4590_v52, %v4548_v44  ;;  %5206 = vmatmul.f32.gmra.mxu1 %v12948_v39 }
 0x317   : > { %v4509_v8 = vpop.f32.mrf.mxu0  ;;  %5286 = vmatmul.f32.gmra.mxu3 %v12969_v61 }
 0x318   : > { %v4638_v26 = vadd.f32 %v4637_v57, %v4591_v62  ;;  %5252 = vmatmul.f32.gmra.mxu2 %v13007_v18 }
 0x31a   : > { %5180 = vmatmul.f32.gmra.mxu0 %v12969_v61  ;;  %v4643_v22 = vpop.f32.mrf.mxu3 }
 0x31b   : > { %v4551_v49 = vpop.f32.mrf.mxu1  ;;  %v4595_v15 = vpop.f32.mrf.mxu2 }
 0x31c   : > { %v4552_v58 = vadd.f32 %v4551_v49, %v4509_v8  ;;  %v2795_v8 = vmul.f32 %v12518_v10, %v12518_v10 }
 0x31e   : > { %v4596_v38 = vadd.f32 %v4595_v15, %v4552_v58  ;;  %5210 = vmatmul.f32.gmra.mxu1 %v12969_v61 }
 0x31f   : > { %v4667_v12 = vpop.f32.mrf.mxu0  ;;  %5410 = vmatmul.f32.vlgmr.msra.gmra.mxu3 %v12923_v1 }
 0x320   : > { %v13050_v29 = vadd.f32 %v4643_v22, %v4596_v38  ;;  %5380 = vmatmul.f32.vlgmr.msra.gmra.mxu2 %v12923_v1  ;;  %5692 = vmatpush.msra.mxu3 %v5691_v21  ;;  %v4668_v15 = vadd.f32 %v4667_v12, %v13013_v47  ;;  %v13069_v38 = vadd.f32 %v12531_v17, %v12531_v17 }
 0x321   : > { %5646 = vmatpush.msra.mxu2 %v13030_v36 }
 0x322   : > { %5310 = vmatmul.f32.vlgmr.msra.gmra.mxu0 %v12937_v40  ;;  %v4805_v57 = vpop.f32.mrf.mxu3 }
 0x323   : > { %5586 = vmatpush.msra.mxu0 %v5481_v0  ;;  %v4705_v52 = vpop.f32.mrf.mxu1  ;;  %v4747_v44 = vpop.f32.mrf.mxu2  ;;  %v2803_v0 = vadd.f32 %v2795_v8, %v2795_v8 }
 0x324   : > { %v13058_v62 = vadd.f32 %v4805_v57, %v4747_v44  ;;  %v4706_v58 = vadd.f32 %v4705_v52, %v4668_v15 }
 0x325   : > { %v13071_v21 = vsub.f32 1.0, %v2803_v0 }
 0x326   : > { %5344 = vmatmul.f32.vlgmr.msra.gmra.mxu1 %v12946_v2  ;;  %v6676_v44 = vmul.f32 %v4706_v58, %v13069_v38 }
 0x327   : > { %v4671_v49 = vpop.f32.mrf.mxu0  ;;  %5616 = vmatpush.msra.mxu1 %v13010_v50  ;;  %5414 = vmatmul.f32.gmra.mxu3 %v12948_v39 }
 0x328   : > { %5384 = vmatmul.f32.gmra.mxu2 %v12948_v39  ;;  %v4672_v23 = vadd.f32 %v4671_v49, %v13021_v51 }
 0x32a   : > { %5315 = vmatmul.f32.gmra.mxu0 %v12960_v27  ;;  %v4809_v47 = vpop.f32.mrf.mxu3 }
 0x32b   : > { %v4709_v10 = vpop.f32.mrf.mxu1  ;;  %v4755_v22 = vpop.f32.mrf.mxu2 }
 0x32c   : > { %v4710_v50 = vadd.f32 %v4709_v10, %v4672_v23  ;;  %v13073_v12 = vadd.f32 %v4809_v47, %v4755_v22 }
 0x32e   : > { %v6684_v8 = vmul.f32 %v4710_v50, %v13071_v21  ;;  %5350 = vmatmul.f32.gmra.mxu1 %v12967_v3 }
 0x32f   : > { %v4675_v57 = vpop.f32.mrf.mxu0  ;;  %5418 = vmatmul.f32.gmra.mxu3 %v12969_v61 }
 0x330   : > { %v13078_v51 = vadd.f32 %v6684_v8, %v6676_v44  ;;  %5388 = vmatmul.f32.gmra.mxu2 %v12969_v61  ;;  %v4676_v23 = vadd.f32 %v4675_v57, %v13032_v5 }
 0x332   : > { %5320 = vmatmul.f32.gmra.mxu0 %v12979_v24  ;;  %v4813_v49 = vpop.f32.mrf.mxu3 }
 0x333   : > { %v4713_v17 = vpop.f32.mrf.mxu1  ;;  %v4763_v52 = vpop.f32.mrf.mxu2 }
 0x334   : > { %v13083_v15 = vadd.f32 %v4813_v49, %v4763_v52  ;;  %v4714_v10 = vadd.f32 %v4713_v17, %v4676_v23 }
 0x336   : > { %5356 = vmatmul.f32.gmra.mxu1 %v12992_v16  ;;  %v6724_v57 = vmul.f32 %v4714_v10, %v13071_v21 }
 0x337   : > { %v4679_v0 = vpop.f32.mrf.mxu0  ;;  %5552 = vmatmul.f32.vlgmr.msrb.gmra.mxu3 %v12946_v2 }
 0x338   : > { %5518 = vmatmul.f32.vlgmr.msrb.gmra.mxu2 %v12937_v40  ;;  %5824 = vmatpush.msrb.mxu3 %v13030_v36  ;;  %v4680_v58 = vadd.f32 %v4679_v0, %v4638_v26  ;;  %v13112_v0 = vand.u32 4294901760, %v12829_v25 }
 0x339   : > { %5794 = vmatpush.msrb.mxu2 %v5689_v35 }
 0x33a   : > { %5444 = vmatmul.f32.vlgmr.msrb.gmra.mxu0 %v12964_v7  ;;  %v4817_v44 = vpop.f32.mrf.mxu3 }
 0x33b   : > { %5723 = vmatpush.msrb.mxu0 %v13039_v4  ;;  %v4717_v22 = vpop.f32.mrf.mxu1  ;;  %v4771_v50 = vpop.f32.mrf.mxu2 }
 0x33c   : > { %v4718_v47 = vadd.f32 %v4717_v22, %v4680_v58  ;;  %v13094_v5 = vadd.f32 %v4817_v44, %v4771_v50 }
 0x33e   : > { %v6732_v52 = vmul.f32 %v4718_v47, %v13069_v38  ;;  %5486 = vmatmul.f32.vlgmr.msrb.gmra.mxu1 %v12923_v1 }
 0x33f   : > { %v13097_v8 = vpop.f32.mrf.mxu0  ;;  %5756 = vmatpush.msrb.mxu1 %v13030_v36  ;;  %5558 = vmatmul.f32.gmra.mxu3 %v12967_v3  ;;  %v13120_v36 = vsub.f32 %v12829_v25, %v13112_v0  ;;  %v2796_v25 = vmul.f32 %v12535_v60, %v12535_v60 }
 0x340   : > { %v13102_v26 = vsub.f32 %v6724_v57, %v6732_v52  ;;  %5523 = vmatmul.f32.gmra.mxu2 %v12960_v27 }
 0x341   : > { %v13992_v44 = vand.u32 4294901760, %v13120_v36 }
 0x342   : > { %14215 = vst [vmem:[#allocation34_spill] sm:$0xff] %v13102_v26  ;;  %5452 = vmatmul.f32.gmra.mxu0 %v12989_v31  ;;  %v4821_v17 = vpop.f32.mrf.mxu3  ;;  %v13139_v26 = vand.u32 4294901760, %v12916_v30 }
 0x343   : > { %v13107_v4 = vpop.f32.mrf.mxu1  ;;  %v4779_v35 = vpop.f32.mrf.mxu2 }
 0x344   : > { %v13109_v49 = vadd.f32 %v4821_v17, %v4779_v35 }
 0x346   : > { %5490 = vmatmul.f32.gmra.mxu1 %v12948_v39 }
 0x347   : > { %v4845_v23 = vpop.f32.mrf.mxu0  ;;  %5564 = vmatmul.f32.gmra.mxu3 %v12992_v16 }
 0x348   : > { %5528 = vmatmul.f32.gmra.mxu2 %v12979_v24  ;;  %v4846_v58 = vadd.f32 %v4845_v23, %v13058_v62  ;;  %v5898_v62 = vsub.f32 %v13120_v36, %v13992_v44 }
 0x34a   : > { %5460 = vmatmul.f32.gmra.mxu0 %v13007_v18  ;;  %v4975_v47 = vpop.f32.mrf.mxu3  ;;  %v5899_v60 = vand.u32 4294901760, %v5898_v62 }
 0x34b   : > { %v4889_v10 = vpop.f32.mrf.mxu1  ;;  %v4937_v22 = vpop.f32.mrf.mxu2 }
 0x34c   : > { %v4890_v50 = vadd.f32 %v4889_v10, %v4846_v58 }
 0x34e   : > { %v4938_v52 = vadd.f32 %v4937_v22, %v4890_v50  ;;  %5494 = vmatmul.f32.gmra.mxu1 %v12969_v61  ;;  %v2804_v22 = vadd.f32 %v2796_v25, %v2796_v25 }
 0x34f   : > { %v4850_v57 = vpop.f32.mrf.mxu0  ;;  %5694 = vmatmul.f32.vlgmr.msra.gmra.mxu3 %v12923_v1 }
 0x350   : > { %v4976_v35 = vadd.f32 %v4975_v47, %v4938_v52  ;;  %5652 = vmatmul.f32.vlgmr.msra.gmra.mxu2 %v12964_v7  ;;  %5964 = vmatpush.msra.mxu3 %v13112_v0  ;;  %v4851_v17 = vadd.f32 %v4850_v57, %v13073_v12  ;;  %v13143_v12 = vadd.f32 %v12548_v6, %v12548_v6  ;;  %v13145_v57 = vsub.f32 1.0, %v2804_v22 }
 0x351   : > { %5931 = vmatpush.msra.mxu2 %v13120_v36  ;;  %v13155_v6 = vsub.f32 %v12916_v30, %v13139_v26 }
 0x352   : > { %5588 = vmatmul.f32.vlgmr.msra.gmra.mxu0 %v12923_v1  ;;  %v4979_v50 = vpop.f32.mrf.mxu3  ;;  %v6677_v25 = vmul.f32 %v4976_v35, %v13143_v12 }
 0x353   : > { %5854 = vmatpush.msra.mxu0 %v13112_v0  ;;  %v4895_v23 = vpop.f32.mrf.mxu1  ;;  %v4941_v58 = vpop.f32.mrf.mxu2  ;;  %v6105_v35 = vand.u32 4294901760, %v13155_v6 }
 0x354   : > { %v4896_v10 = vadd.f32 %v4895_v23, %v4851_v17 }
 0x356   : > { %v4942_v52 = vadd.f32 %v4941_v58, %v4896_v10  ;;  %5618 = vmatmul.f32.vlgmr.msra.gmra.mxu1 %v12923_v1 }
 0x357   : > { %v4855_v47 = vpop.f32.mrf.mxu0  ;;  %5900 = vmatpush.msra.mxu1 %v5899_v60  ;;  %5698 = vmatmul.f32.gmra.mxu3 %v12948_v39 }
 0x358   : > { %v4980_v44 = vadd.f32 %v4979_v50, %v4942_v52  ;;  %5660 = vmatmul.f32.gmra.mxu2 %v12989_v31  ;;  %v4856_v62 = vadd.f32 %v4855_v47, %v13083_v15  ;;  %v6106_v47 = vsub.f32 %v13155_v6, %v6105_v35 }
 0x35a   : > { %5592 = vmatmul.f32.gmra.mxu0 %v12948_v39  ;;  %v6685_v17 = vmul.f32 %v4980_v44, %v13145_v57  ;;  %v4983_v50 = vpop.f32.mrf.mxu3 }
 0x35b   : > { %v4901_v23 = vpop.f32.mrf.mxu1  ;;  %v4945_v58 = vpop.f32.mrf.mxu2 }
 0x35c   : > { %v13157_v10 = vadd.f32 %v6685_v17, %v6677_v25  ;;  %v4902_v22 = vadd.f32 %v4901_v23, %v4856_v62 }
 0x35e   : > { %v4946_v52 = vadd.f32 %v4945_v58, %v4902_v22  ;;  %5622 = vmatmul.f32.gmra.mxu1 %v12948_v39  ;;  %v6107_v58 = vand.u32 4294901760, %v6106_v47 }
 0x35f   : > { %v4860_v60 = vpop.f32.mrf.mxu0  ;;  %5702 = vmatmul.f32.gmra.mxu3 %v12969_v61 }
 0x360   : > { %v4984_v32 = vadd.f32 %v4983_v50, %v4946_v52  ;;  %5668 = vmatmul.f32.gmra.mxu2 %v13007_v18  ;;  %v4861_v30 = vadd.f32 %v4860_v60, %v13094_v5  ;;  %v14216_v52 = vand.u32 4294901760, %v13120_v36 }
 0x362   : > { %5596 = vmatmul.f32.gmra.mxu0 %v12969_v61  ;;  %v4987_v62 = vpop.f32.mrf.mxu3  ;;  %v6725_v5 = vmul.f32 %v4984_v32, %v13145_v57 }
 0x363   : > { %v4907_v15 = vpop.f32.mrf.mxu1  ;;  %v4949_v44 = vpop.f32.mrf.mxu2 }
 0x364   : > { %v4908_v25 = vadd.f32 %v4907_v15, %v4861_v30 }
 0x366   : > { %v4950_v23 = vadd.f32 %v4949_v44, %v4908_v25  ;;  %5626 = vmatmul.f32.gmra.mxu1 %v12969_v61  ;;  %v4684_v44 = vadd.f32 %v13097_v8, %v13050_v29 }
 0x367   : > { %v4865_v17 = vpop.f32.mrf.mxu0  ;;  %5826 = vmatmul.f32.vlgmr.msrb.gmra.mxu3 %v12923_v1 }
 0x368   : > { %v4988_v22 = vadd.f32 %v4987_v62, %v4950_v23  ;;  %5796 = vmatmul.f32.vlgmr.msrb.gmra.mxu2 %v12923_v1  ;;  %6108 = vmatpush.msrb.mxu3 %v6107_v58  ;;  %v4866_v50 = vadd.f32 %v4865_v17, %v13109_v49  ;;  %v4722_v32 = vadd.f32 %v13107_v4, %v4684_v44 }
 0x369   : > { %6062 = vmatpush.msrb.mxu2 %v13139_v26 }
 0x36a   : > { %5726 = vmatmul.f32.vlgmr.msrb.gmra.mxu0 %v12937_v40  ;;  %v6733_v60 = vmul.f32 %v4988_v22, %v13143_v12  ;;  %v4991_v62 = vpop.f32.mrf.mxu3  ;;  %v10288_v29 = vrot.slane %v4722_v32, 4 }
 0x36b   : > { %6002 = vmatpush.msrb.mxu0 %v14216_v52  ;;  %v4913_v30 = vpop.f32.mrf.mxu1  ;;  %v4953_v15 = vpop.f32.mrf.mxu2 }
 0x36c   : > { %v13180_v47 = vsub.f32 %v6725_v5, %v6733_v60  ;;  %v4914_v25 = vadd.f32 %v4913_v30, %v4866_v50 }
 0x36e   : > { %v4954_v49 = vadd.f32 %v4953_v15, %v4914_v25  ;;  %5760 = vmatmul.f32.vlgmr.msrb.gmra.mxu1 %v12946_v2 }
 0x36f   : > { %v5029_v23 = vpop.f32.mrf.mxu0  ;;  %6032 = vmatpush.msrb.mxu1 %v13112_v0  ;;  %5830 = vmatmul.f32.gmra.mxu3 %v12948_v39 }
 0x370   : > { %v4992_v36 = vadd.f32 %v4991_v62, %v4954_v49  ;;  %5800 = vmatmul.f32.gmra.mxu2 %v12948_v39 }
 0x372   : > { %5731 = vmatmul.f32.gmra.mxu0 %v12960_v27  ;;  %v10289_v8 = vrot.slane %v4992_v36, 2  ;;  %v5137_v5 = vpop.f32.mrf.mxu3 }
 0x373   : > { %v5071_v17 = vpop.f32.mrf.mxu1  ;;  %v5103_v58 = vpop.f32.mrf.mxu2 }
 0x374   : > { %v10294_v22 = vsel %vm10266_vm3, %v10288_v29, %v10289_v8  ;;  %v5072_v4 = vadd.f32 %v5071_v17, %v5029_v23 }
 0x375   : > { %v13191_v50 = vsel %vm14217_vm12, %v13005_v13, %v10294_v22 }
 0x376   : > { %v5104_v60 = vadd.f32 %v5103_v58, %v5072_v4  ;;  %5766 = vmatmul.f32.gmra.mxu1 %v12967_v3 }
 0x377   : > { %v5037_v0 = vpop.f32.mrf.mxu0  ;;  %5834 = vmatmul.f32.gmra.mxu3 %v12969_v61 }
 0x378   : > { %v5138_v52 = vadd.f32 %v5137_v5, %v5104_v60  ;;  %5804 = vmatmul.f32.gmra.mxu2 %v12969_v61  ;;  %v13213_v5 = vand.u32 4294901760, %v12525_v33 }
 0x37a   : > { %5736 = vmatmul.f32.gmra.mxu0 %v12979_v24  ;;  %v5143_v25 = vpop.f32.mrf.mxu3 }
 0x37b   : > { %v5075_v30 = vpop.f32.mrf.mxu1  ;;  %v5108_v15 = vpop.f32.mrf.mxu2 }
 0x37c   : > { %v5076_v44 = vadd.f32 %v5075_v30, %v5037_v0 }
 0x37e   : > { %v5109_v32 = vadd.f32 %v5108_v15, %v5076_v44  ;;  %5772 = vmatmul.f32.gmra.mxu1 %v12992_v16 }
 0x37f   : > { %v5045_v62 = vpop.f32.mrf.mxu0  ;;  %5968 = vmatmul.f32.vlgmr.msra.gmra.mxu3 %v12946_v2 }
 0x380   : > { %v5144_v13 = vadd.f32 %v5143_v25, %v5109_v32  ;;  %5934 = vmatmul.f32.vlgmr.msra.gmra.mxu2 %v12937_v40  ;;  %6240 = vmatpush.msra.mxu3 %v13139_v26 }
 0x381   : > { %6210 = vmatpush.msra.mxu2 %v6105_v35 }
 0x382   : > { %5860 = vmatmul.f32.vlgmr.msra.gmra.mxu0 %v12964_v7  ;;  %v5149_v29 = vpop.f32.mrf.mxu3 }
 0x383   : > { %6139 = vmatpush.msra.mxu0 %v13155_v6  ;;  %v5079_v23 = vpop.f32.mrf.mxu1  ;;  %v5113_v49 = vpop.f32.mrf.mxu2 }
 0x384   : > { %v5080_v36 = vadd.f32 %v5079_v23, %v5045_v62 }
 0x386   : > { %v5114_v17 = vadd.f32 %v5113_v49, %v5080_v36  ;;  %5902 = vmatmul.f32.vlgmr.msra.gmra.mxu1 %v12923_v1 }
 0x387   : > { %v5173_v8 = vpop.f32.mrf.mxu0  ;;  %6172 = vmatpush.msra.mxu1 %v13139_v26  ;;  %5974 = vmatmul.f32.gmra.mxu3 %v12967_v3  ;;  %v13221_v26 = vsub.f32 %v12525_v33, %v13213_v5 }
 0x388   : > { %v13207_v58 = vadd.f32 %v5149_v29, %v5114_v17  ;;  %5939 = vmatmul.f32.gmra.mxu2 %v12960_v27  ;;  %v5174_v60 = vadd.f32 %v5173_v8, %v5138_v52 }
 0x389   : > { %v6313_v49 = vand.u32 4294901760, %v13221_v26 }
 0x38a   : > { %5868 = vmatmul.f32.gmra.mxu0 %v12989_v31  ;;  %v5279_v22 = vpop.f32.mrf.mxu3 }
 0x38b   : > { %v5203_v6 = vpop.f32.mrf.mxu1  ;;  %v5237_v35 = vpop.f32.mrf.mxu2  ;;  %v6314_v33 = vsub.f32 %v13221_v26, %v6313_v49 }
 0x38c   : > { %v5280_v4 = vadd.f32 %v5279_v22, %v5237_v35  ;;  %v5204_v15 = vadd.f32 %v5203_v6, %v5174_v60  ;;  %v13242_v22 = vand.u32 4294901760, %v12538_v34 }
 0x38d   : > { %v6315_v6 = vand.u32 4294901760, %v6314_v33 }
 0x38e   : > { %5906 = vmatmul.f32.gmra.mxu1 %v12948_v39  ;;  %v6694_v52 = vmul.f32 %v5204_v15, %v12406_v28 }
 0x38f   : > { %v5177_v0 = vpop.f32.mrf.mxu0  ;;  %5980 = vmatmul.f32.gmra.mxu3 %v12992_v16 }
 0x390   : > { %5944 = vmatmul.f32.gmra.mxu2 %v12979_v24  ;;  %v5178_v30 = vadd.f32 %v5177_v0, %v5144_v13 }
 0x392   : > { %5876 = vmatmul.f32.gmra.mxu0 %v13007_v18  ;;  %v5283_v32 = vpop.f32.mrf.mxu3 }
 0x393   : > { %v5207_v44 = vpop.f32.mrf.mxu1  ;;  %v5245_v25 = vpop.f32.mrf.mxu2 }
 0x394   : > { %v5208_v62 = vadd.f32 %v5207_v44, %v5178_v30  ;;  %v5284_v23 = vadd.f32 %v5283_v32, %v5245_v25  ;;  %v13249_v30 = vsub.f32 %v12538_v34, %v13242_v22 }
 0x396   : > { %v6702_v29 = vmul.f32 %v5208_v62, %v12408_v9  ;;  %5910 = vmatmul.f32.gmra.mxu1 %v12969_v61  ;;  %v6521_v32 = vand.u32 4294901760, %v13249_v30 }
 0x397   : > { %v13225_v36 = vpop.f32.mrf.mxu0  ;;  %6110 = vmatmul.f32.vlgmr.msrb.gmra.mxu3 %v12923_v1 }
 0x398   : > { %v13229_v8 = vadd.f32 %v6702_v29, %v6694_v52  ;;  %6068 = vmatmul.f32.vlgmr.msrb.gmra.mxu2 %v12964_v7  ;;  %6380 = vmatpush.msrb.mxu3 %v13213_v5  ;;  %v6522_v34 = vsub.f32 %v13249_v30, %v6521_v32 }
 0x399   : > { %6347 = vmatpush.msrb.mxu2 %v13221_v26 }
 0x39a   : > { %6004 = vmatmul.f32.vlgmr.msrb.gmra.mxu0 %v12923_v1  ;;  %v5287_v13 = vpop.f32.mrf.mxu3 }
 0x39b   : > { %6270 = vmatpush.msrb.mxu0 %v13213_v5  ;;  %v13238_v28 = vpop.f32.mrf.mxu1  ;;  %v5253_v9 = vpop.f32.mrf.mxu2 }
 0x39c   : > { %v5288_v17 = vadd.f32 %v5287_v13, %v5253_v9 }
 0x39e   : > { %6034 = vmatmul.f32.vlgmr.msrb.gmra.mxu1 %v12923_v1 }
 0x39f   : > { %v5311_v35 = vpop.f32.mrf.mxu0  ;;  %6316 = vmatpush.msrb.mxu1 %v6315_v6  ;;  %6114 = vmatmul.f32.gmra.mxu3 %v12948_v39 }
 0x3a0   : > { %6076 = vmatmul.f32.gmra.mxu2 %v12989_v31  ;;  %v5312_v0 = vadd.f32 %v5311_v35, %v5280_v4 }
 0x3a2   : > { %6008 = vmatmul.f32.gmra.mxu0 %v12948_v39  ;;  %v5411_v44 = vpop.f32.mrf.mxu3 }
 0x3a3   : > { %v5345_v60 = vpop.f32.mrf.mxu1  ;;  %v5381_v26 = vpop.f32.mrf.mxu2 }
 0x3a4   : > { %v5346_v15 = vadd.f32 %v5345_v60, %v5312_v0  ;;  %v6523_v0 = vand.u32 4294901760, %v6522_v34 }
 0x3a6   : > { %v5382_v62 = vadd.f32 %v5381_v26, %v5346_v15  ;;  %6038 = vmatmul.f32.gmra.mxu1 %v12948_v39 }
 0x3a7   : > { %v5316_v25 = vpop.f32.mrf.mxu0  ;;  %6118 = vmatmul.f32.gmra.mxu3 %v12969_v61 }
 0x3a8   : > { %v5412_v52 = vadd.f32 %v5411_v44, %v5382_v62  ;;  %6084 = vmatmul.f32.gmra.mxu2 %v13007_v18  ;;  %v5317_v4 = vadd.f32 %v5316_v25, %v5284_v23 }
 0x3aa   : > { %6012 = vmatmul.f32.gmra.mxu0 %v12969_v61  ;;  %v5415_v13 = vpop.f32.mrf.mxu3  ;;  %v6695_v23 = vmul.f32 %v5412_v52, %v12540_v41 }
 0x3ab   : > { %v5351_v29 = vpop.f32.mrf.mxu1  ;;  %v5385_v33 = vpop.f32.mrf.mxu2 }
 0x3ac   : > { %v5352_v9 = vadd.f32 %v5351_v29, %v5317_v4 }
 0x3ae   : > { %v5386_v35 = vadd.f32 %v5385_v33, %v5352_v9  ;;  %6042 = vmatmul.f32.gmra.mxu1 %v12969_v61 }
 0x3af   : > { %v5321_v6 = vpop.f32.mrf.mxu0  ;;  %6242 = vmatmul.f32.vlgmr.msra.gmra.mxu3 %v12923_v1 }
 0x3b0   : > { %v5416_v60 = vadd.f32 %v5415_v13, %v5386_v35  ;;  %6212 = vmatmul.f32.vlgmr.msra.gmra.mxu2 %v12923_v1  ;;  %6524 = vmatpush.msra.mxu3 %v6523_v0  ;;  %v5322_v26 = vadd.f32 %v5321_v6, %v5288_v17 }
 0x3b1   : > { %6478 = vmatpush.msra.mxu2 %v13242_v22 }
 0x3b2   : > { %6142 = vmatmul.f32.vlgmr.msra.gmra.mxu0 %v12937_v40  ;;  %v6703_v15 = vmul.f32 %v5416_v60, %v12542_v48  ;;  %v5419_v29 = vpop.f32.mrf.mxu3 }
 0x3b3   : > { %6418 = vmatpush.msra.mxu0 %v6313_v49  ;;  %v5357_v44 = vpop.f32.mrf.mxu1  ;;  %v5389_v25 = vpop.f32.mrf.mxu2 }
 0x3b4   : > { %v13264_v62 = vadd.f32 %v6703_v15, %v6695_v23  ;;  %v5358_v4 = vadd.f32 %v5357_v44, %v5322_v26 }
 0x3b6   : > { %v5390_v34 = vadd.f32 %v5389_v25, %v5358_v4  ;;  %6176 = vmatmul.f32.vlgmr.msra.gmra.mxu1 %v12946_v2 }
 0x3b7   : > { %v5445_v33 = vpop.f32.mrf.mxu0  ;;  %6448 = vmatpush.msra.mxu1 %v13213_v5  ;;  %6246 = vmatmul.f32.gmra.mxu3 %v12948_v39 }
 0x3b8   : > { %v13268_v9 = vadd.f32 %v5419_v29, %v5390_v34  ;;  %6216 = vmatmul.f32.gmra.mxu2 %v12948_v39 }
 0x3ba   : > { %6147 = vmatmul.f32.gmra.mxu0 %v12960_v27  ;;  %v5553_v17 = vpop.f32.mrf.mxu3 }
 0x3bb   : > { %v5487_v41 = vpop.f32.mrf.mxu1  ;;  %v5519_v48 = vpop.f32.mrf.mxu2 }
 0x3bc   : > { %v5488_v49 = vadd.f32 %v5487_v41, %v5445_v33 }
 0x3be   : > { %v5520_v13 = vadd.f32 %v5519_v48, %v5488_v49  ;;  %6182 = vmatmul.f32.gmra.mxu1 %v12967_v3 }
 0x3bf   : > { %v5453_v52 = vpop.f32.mrf.mxu0  ;;  %6250 = vmatmul.f32.gmra.mxu3 %v12969_v61 }
 0x3c0   : > { %v5554_v6 = vadd.f32 %v5553_v17, %v5520_v13  ;;  %6220 = vmatmul.f32.gmra.mxu2 %v12969_v61  ;;  %v14218_v17 = vld [vmem:[#allocation41_spill] sm:$0xff] }
 0x3c2   : > { %6152 = vmatmul.f32.gmra.mxu0 %v12979_v24  ;;  %v5559_v60 = vpop.f32.mrf.mxu3 }
 0x3c3   : > { %v5491_v5 = vpop.f32.mrf.mxu1  ;;  %v5524_v35 = vpop.f32.mrf.mxu2 }
 0x3c4   : > { %v5492_v0 = vadd.f32 %v5491_v5, %v5453_v52  ;;  %v13291_v52 = vand.u32 4294901760, %v14218_v17 }
 0x3c6   : > { %v5525_v26 = vadd.f32 %v5524_v35, %v5492_v0  ;;  %6188 = vmatmul.f32.gmra.mxu1 %v12992_v16 }
 0x3c7   : > { %v5461_v23 = vpop.f32.mrf.mxu0  ;;  %6384 = vmatmul.f32.vlgmr.msrb.gmra.mxu3 %v12946_v2 }
 0x3c8   : > { %v5560_v15 = vadd.f32 %v5559_v60, %v5525_v26  ;;  %6350 = vmatmul.f32.vlgmr.msrb.gmra.mxu2 %v12937_v40  ;;  %6656 = vmatpush.msrb.mxu3 %v13242_v22 }
 0x3c9   : > { %6626 = vmatpush.msrb.mxu2 %v6521_v32 }
 0x3ca   : > { %6276 = vmatmul.f32.vlgmr.msrb.gmra.mxu0 %v12964_v7  ;;  %v5565_v29 = vpop.f32.mrf.mxu3 }
 0x3cb   : > { %6555 = vmatpush.msrb.mxu0 %v13249_v30  ;;  %v5495_v44 = vpop.f32.mrf.mxu1  ;;  %v5529_v25 = vpop.f32.mrf.mxu2 }
 0x3cc   : > { %v5496_v4 = vadd.f32 %v5495_v44, %v5461_v23 }
 0x3ce   : > { %v5530_v34 = vadd.f32 %v5529_v25, %v5496_v4  ;;  %6318 = vmatmul.f32.vlgmr.msrb.gmra.mxu1 %v12923_v1 }
 0x3cf   : > { %v5589_v33 = vpop.f32.mrf.mxu0  ;;  %6588 = vmatpush.msrb.mxu1 %v13242_v22  ;;  %6390 = vmatmul.f32.gmra.mxu3 %v12967_v3  ;;  %v13299_v22 = vsub.f32 %v14218_v17, %v13291_v52 }
 0x3d0   : > { %v13285_v41 = vadd.f32 %v5565_v29, %v5530_v34  ;;  %6355 = vmatmul.f32.gmra.mxu2 %v12960_v27  ;;  %v5590_v5 = vadd.f32 %v5589_v33, %v5554_v6 }
 0x3d1   : > { %v6789_v4 = vand.u32 4294901760, %v13299_v22 }
 0x3d2   : > { %6284 = vmatmul.f32.gmra.mxu0 %v12989_v31  ;;  %v5695_v48 = vpop.f32.mrf.mxu3 }
 0x3d3   : > { %v5619_v30 = vpop.f32.mrf.mxu1  ;;  %v5653_v32 = vpop.f32.mrf.mxu2 }
 0x3d4   : > { %v5696_v49 = vadd.f32 %v5695_v48, %v5653_v32  ;;  %v5620_v0 = vadd.f32 %v5619_v30, %v5590_v5 }
 0x3d6   : > { %6322 = vmatmul.f32.gmra.mxu1 %v12948_v39  ;;  %v6696_v6 = vmul.f32 %v5620_v0, %v12652_v19 }
 0x3d7   : > { %v5593_v13 = vpop.f32.mrf.mxu0  ;;  %6396 = vmatmul.f32.gmra.mxu3 %v12992_v16 }
 0x3d8   : > { %6360 = vmatmul.f32.gmra.mxu2 %v12979_v24  ;;  %v5594_v35 = vadd.f32 %v5593_v13, %v5560_v15  ;;  %v6790_v15 = vsub.f32 %v13299_v22, %v6789_v4 }
 0x3da   : > { %6292 = vmatmul.f32.gmra.mxu0 %v13007_v18  ;;  %v5699_v44 = vpop.f32.mrf.mxu3  ;;  %v6791_v48 = vand.u32 4294901760, %v6790_v15 }
 0x3db   : > { %v5623_v60 = vpop.f32.mrf.mxu1  ;;  %v5661_v23 = vpop.f32.mrf.mxu2 }
 0x3dc   : > { %v5624_v26 = vadd.f32 %v5623_v60, %v5594_v35  ;;  %v5700_v25 = vadd.f32 %v5699_v44, %v5661_v23 }
 0x3de   : > { %v6704_v33 = vmul.f32 %v5624_v26, %v12654_v53  ;;  %6326 = vmatmul.f32.gmra.mxu1 %v12969_v61 }
 0x3df   : > { %v13303_v29 = vpop.f32.mrf.mxu0  ;;  %6526 = vmatmul.f32.vlgmr.msra.gmra.mxu3 %v12923_v1 }
 0x3e0   : > { %v13307_v34 = vadd.f32 %v6704_v33, %v6696_v6  ;;  %6484 = vmatmul.f32.vlgmr.msra.gmra.mxu2 %v12964_v7  ;;  %6838 = vmatpush.msra.mxu3 %v13291_v52  ;;  %v13320_v7 = vand.u32 4294901760, %v12554_v42 }
 0x3e1   : > { %6815 = vmatpush.msra.mxu2 %v13299_v22 }
 0x3e2   : > { %6420 = vmatmul.f32.vlgmr.msra.gmra.mxu0 %v12923_v1  ;;  %v5703_v30 = vpop.f32.mrf.mxu3  ;;  %v13327_v5 = vsub.f32 %v12554_v42, %v13320_v7 }
 0x3e3   : > { %6762 = vmatpush.msra.mxu0 %v13291_v52  ;;  %v13316_v19 = vpop.f32.mrf.mxu1  ;;  %v5669_v53 = vpop.f32.mrf.mxu2 }
 0x3e4   : > { %v5704_v32 = vadd.f32 %v5703_v30, %v5669_v53  ;;  %v6935_v44 = vand.u32 4294901760, %v13327_v5 }
 0x3e6   : > { %6450 = vmatmul.f32.vlgmr.msra.gmra.mxu1 %v12923_v1  ;;  %v6936_v33 = vsub.f32 %v13327_v5, %v6935_v44 }
 0x3e7   : > { %v5727_v17 = vpop.f32.mrf.mxu0  ;;  %6792 = vmatpush.msra.mxu1 %v6791_v48  ;;  %6530 = vmatmul.f32.gmra.mxu3 %v12948_v39 }
 0x3e8   : > { %6492 = vmatmul.f32.gmra.mxu2 %v12989_v31  ;;  %v5728_v13 = vadd.f32 %v5727_v17, %v5696_v49  ;;  %v6742_v17 = vld [vmem:[%s13836_s4] sm:$0xff] }
 0x3ea   : > { %6424 = vmatmul.f32.gmra.mxu0 %v12948_v39  ;;  %v5827_v60 = vpop.f32.mrf.mxu3 }
 0x3eb   : > { %v5761_v22 = vpop.f32.mrf.mxu1  ;;  %v5797_v35 = vpop.f32.mrf.mxu2 }
 0x3ec   : > { %v5762_v0 = vadd.f32 %v5761_v22, %v5728_v13 }
 0x3ee   : > { %v5798_v26 = vadd.f32 %v5797_v35, %v5762_v0  ;;  %6454 = vmatmul.f32.gmra.mxu1 %v12948_v39 }
 0x3ef   : > { %v5732_v23 = vpop.f32.mrf.mxu0  ;;  %6534 = vmatmul.f32.gmra.mxu3 %v12969_v61 }
 0x3f0   : > { %v5828_v6 = vadd.f32 %v5827_v60, %v5798_v26  ;;  %6500 = vmatmul.f32.gmra.mxu2 %v13007_v18  ;;  %v5733_v31 = vadd.f32 %v5732_v23, %v5700_v25  ;;  %v6937_v18 = vand.u32 4294901760, %v6936_v33  ;;  %v6744_v25 = vsel %vm14219_vm9, %v6742_v17, 0 }
 0x3f2   : > { %6428 = vmatmul.f32.gmra.mxu0 %v12969_v61  ;;  %v5831_v53 = vpop.f32.mrf.mxu3  ;;  %v6697_v22 = vmul.f32 %v5828_v6, %v12731_v55 }
 0x3f3   : > { %v5767_v42 = vpop.f32.mrf.mxu1  ;;  %v5801_v49 = vpop.f32.mrf.mxu2 }
 0x3f4   : > { %v5768_v15 = vadd.f32 %v5767_v42, %v5733_v31 }
 0x3f6   : > { %v5802_v48 = vadd.f32 %v5801_v49, %v5768_v15  ;;  %6458 = vmatmul.f32.gmra.mxu1 %v12969_v61 }
 0x3f7   : > { %v5737_v30 = vpop.f32.mrf.mxu0  ;;  %6658 = vmatmul.f32.vlgmr.msrb.gmra.mxu3 %v12923_v1 }
 0x3f8   : > { %v5832_v13 = vadd.f32 %v5831_v53, %v5802_v48  ;;  %6628 = vmatmul.f32.vlgmr.msrb.gmra.mxu2 %v12923_v1  ;;  %6938 = vmatpush.msrb.mxu3 %v6937_v18  ;;  %v5738_v35 = vadd.f32 %v5737_v30, %v5704_v32  ;;  %v13350_v1 = vand.u32 4294901760, %v6744_v25 }
 0x3f9   : > { %6908 = vmatpush.msrb.mxu2 %v13320_v7 }
 0x3fa   : > { %6558 = vmatmul.f32.vlgmr.msrb.gmra.mxu0 %v12937_v40  ;;  %v6705_v0 = vmul.f32 %v5832_v13, %v12733_v59  ;;  %v5835_v42 = vpop.f32.mrf.mxu3  ;;  %v13359_v59 = vsub.f32 %v6744_v25, %v13350_v1  ;;  %v7053_v13 = vand.u32 4294901760, %v12664_v37 }
 0x3fb   : > { %6864 = vmatpush.msrb.mxu0 %v6789_v4  ;;  %v5773_v60 = vpop.f32.mrf.mxu1  ;;  %v5805_v23 = vpop.f32.mrf.mxu2 }
 0x3fc   : > { %v13348_v26 = vadd.f32 %v6705_v0, %v6697_v22  ;;  %v5774_v31 = vadd.f32 %v5773_v60, %v5738_v35  ;;  %v13363_v15 = vand.u32 4294901760, %v13359_v59  ;;  %v13376_v22 = vand.u32 4294901760, %v12741_v14 }
 0x3fe   : > { %v5806_v49 = vadd.f32 %v5805_v23, %v5774_v31  ;;  %6592 = vmatmul.f32.vlgmr.msrb.gmra.mxu1 %v12946_v2 }
 0x3ff   : > { %v5861_v40 = vpop.f32.mrf.mxu0  ;;  %6886 = vmatpush.msrb.mxu1 %v13291_v52  ;;  %6662 = vmatmul.f32.gmra.mxu3 %v12948_v39 }
 0x400   : > { %v13354_v55 = vadd.f32 %v5835_v42, %v5806_v49  ;;  %6632 = vmatmul.f32.gmra.mxu2 %v12948_v39  ;;  %v6766_v39 = vsub.f32 %v13359_v59, %v13363_v15 }
 0x402   : > { %6563 = vmatmul.f32.gmra.mxu0 %v12960_v27  ;;  %v5969_v33 = vpop.f32.mrf.mxu3  ;;  %v13371_v18 = vand.u32 4294901760, %v6766_v39 }
 0x403   : > { %v5903_v4 = vpop.f32.mrf.mxu1  ;;  %v5935_v32 = vpop.f32.mrf.mxu2 }
 0x404   : > { %v5904_v6 = vadd.f32 %v5903_v4, %v5861_v40 }
 0x406   : > { %v5936_v52 = vadd.f32 %v5935_v32, %v5904_v6  ;;  %6598 = vmatmul.f32.gmra.mxu1 %v12967_v3 }
 0x407   : > { %v5869_v2 = vpop.f32.mrf.mxu0  ;;  %6666 = vmatmul.f32.gmra.mxu3 %v12969_v61 }
 0x408   : > { %v5970_v53 = vadd.f32 %v5969_v33, %v5936_v52  ;;  %6636 = vmatmul.f32.gmra.mxu2 %v12969_v61 }
 0x40a   : > { %6568 = vmatmul.f32.gmra.mxu0 %v12979_v24  ;;  %v5975_v17 = vpop.f32.mrf.mxu3  ;;  %v7080_v24 = vsub.f32 %v12664_v37, %v7053_v13 }
 0x40b   : > { %v5907_v27 = vpop.f32.mrf.mxu1  ;;  %v5940_v30 = vpop.f32.mrf.mxu2 }
 0x40c   : > { %v5908_v48 = vadd.f32 %v5907_v27, %v5869_v2  ;;  %v7081_v31 = vand.u32 4294901760, %v7080_v24 }
 0x40e   : > { %v5941_v3 = vadd.f32 %v5940_v30, %v5908_v48  ;;  %6604 = vmatmul.f32.gmra.mxu1 %v12992_v16  ;;  %v7226_v16 = vsub.f32 %v12741_v14, %v13376_v22  ;;  %v7082_v14 = vsub.f32 %v7080_v24, %v7081_v31 }
 0x40f   : > { %v5877_v25 = vpop.f32.mrf.mxu0  ;;  %6842 = vmatmul.f32.vlgmr.msra.gmra.mxu3 %v13363_v15 }
 0x410   : > { %v5976_v61 = vadd.f32 %v5975_v17, %v5941_v3  ;;  %6818 = vmatmul.f32.vlgmr.msra.gmra.mxu2 %v13359_v59  ;;  %7032 = vmatpush.msra.mxu3 %v13320_v7  ;;  %v7227_v37 = vand.u32 4294901760, %v7226_v16  ;;  %v7083_v33 = vand.u32 4294901760, %v7082_v14 }
 0x411   : > { %7010 = vmatpush.msra.mxu2 %v6935_v44 }
 0x412   : > { %6768 = vmatmul.f32.vlgmr.msra.gmra.mxu0 %v13371_v18  ;;  %v5981_v23 = vpop.f32.mrf.mxu3  ;;  %v7228_v4 = vsub.f32 %v7226_v16, %v7227_v37 }
 0x413   : > { %6961 = vmatpush.msra.mxu0 %v13327_v5  ;;  %v5911_v35 = vpop.f32.mrf.mxu1  ;;  %v5945_v0 = vpop.f32.mrf.mxu2 }
 0x414   : > { %v5912_v60 = vadd.f32 %v5911_v35, %v5877_v25  ;;  %v7229_v2 = vand.u32 4294901760, %v7228_v4 }
 0x416   : > { %v5946_v40 = vadd.f32 %v5945_v0, %v5912_v60  ;;  %6794 = vmatmul.f32.vlgmr.msra.gmra.mxu1 %v13350_v1 }
 0x417   : > { %v6005_v42 = vpop.f32.mrf.mxu0  ;;  %6984 = vmatpush.msra.mxu1 %v13320_v7  ;;  %6940 = vmatmul.f32.vlgmr.msrb.gmra.mxu3 %v13350_v1 }
 0x418   : > { %v13390_v49 = vadd.f32 %v5981_v23, %v5946_v40  ;;  %6914 = vmatmul.f32.vlgmr.msrb.gmra.mxu2 %v13371_v18  ;;  %7130 = vmatpush.msrb.mxu3 %v7053_v13  ;;  %v6006_v52 = vadd.f32 %v6005_v42, %v5970_v53 }
 0x419   : > { %7107 = vmatpush.msrb.mxu2 %v7080_v24  ;;  %v7345_v24 = vand.u32 4294901760, %v12853_v46 }
 0x41a   : > { %6866 = vmatmul.f32.vlgmr.msrb.gmra.mxu0 %v13350_v1  ;;  %v6111_v32 = vpop.f32.mrf.mxu3 }
 0x41b   : > { %7054 = vmatpush.msrb.mxu0 %v7053_v13  ;;  %v6035_v5 = vpop.f32.mrf.mxu1  ;;  %v6069_v44 = vpop.f32.mrf.mxu2 }
 0x41c   : > { %v6112_v6 = vadd.f32 %v6111_v32, %v6069_v44  ;;  %v6036_v27 = vadd.f32 %v6035_v5, %v6006_v52 }
 0x41e   : > { %6888 = vmatmul.f32.vlgmr.msrb.gmra.mxu1 %v13350_v1  ;;  %v6698_v53 = vmul.f32 %v6036_v27, %v12841_v43  ;;  %v7372_v43 = vsub.f32 %v12853_v46, %v7345_v24 }
 0x41f   : > { %v6009_v7 = vpop.f32.mrf.mxu0  ;;  %7084 = vmatpush.msrb.mxu1 %v7083_v33  ;;  %7034 = vmatmul.f32.vlgmr.msra.gmra.mxu3 %v13350_v1 }
 0x420   : > { %7012 = vmatmul.f32.vlgmr.msra.gmra.mxu2 %v13350_v1  ;;  %7230 = vmatpush.msra.mxu3 %v7229_v2  ;;  %v6010_v39 = vadd.f32 %v6009_v7, %v5976_v61  ;;  %v13407_v61 = vand.u32 4294901760, %v12943_v45  ;;  %v7373_v40 = vand.u32 4294901760, %v7372_v43 }
 0x421   : > { %7200 = vmatpush.msra.mxu2 %v13376_v22 }
 0x422   : > { %6964 = vmatmul.f32.vlgmr.msra.gmra.mxu0 %v13359_v59  ;;  %v6115_v25 = vpop.f32.mrf.mxu3  ;;  %v7374_v46 = vsub.f32 %v7372_v43, %v7373_v40 }
 0x423   : > { %7156 = vmatpush.msra.mxu0 %v7081_v31  ;;  %v6039_v30 = vpop.f32.mrf.mxu1  ;;  %v6077_v48 = vpop.f32.mrf.mxu2 }
 0x424   : > { %v6040_v17 = vadd.f32 %v6039_v30, %v6010_v39  ;;  %v6116_v3 = vadd.f32 %v6115_v25, %v6077_v48  ;;  %v7375_v33 = vand.u32 4294901760, %v7374_v46 }
 0x426   : > { %v6706_v0 = vmul.f32 %v6040_v17, %v12843_v63  ;;  %6988 = vmatmul.f32.vlgmr.msra.gmra.mxu1 %v13363_v15  ;;  %v7518_v63 = vsub.f32 %v12943_v45, %v13407_v61  ;;  %v13431_v17 = vand.u32 4294901760, %v13078_v51 }
 0x427   : > { %v13402_v35 = vpop.f32.mrf.mxu0  ;;  %7178 = vmatpush.msra.mxu1 %v7053_v13  ;;  %7134 = vmatmul.f32.vlgmr.msrb.gmra.mxu3 %v13363_v15 }
 0x428   : > { %v13409_v60 = vadd.f32 %v6706_v0, %v6698_v53  ;;  %7110 = vmatmul.f32.vlgmr.msrb.gmra.mxu2 %v13359_v59  ;;  %7324 = vmatpush.msrb.mxu3 %v13376_v22  ;;  %v7519_v5 = vand.u32 4294901760, %v7518_v63  ;;  %v13435_v0 = vand.u32 4294901760, %v13157_v10 }
 0x429   : > { %7302 = vmatpush.msrb.mxu2 %v7227_v37 }
 0x42a   : > { %7060 = vmatmul.f32.vlgmr.msrb.gmra.mxu0 %v13371_v18  ;;  %v6119_v31 = vpop.f32.mrf.mxu3  ;;  %v7520_v44 = vsub.f32 %v7518_v63, %v7519_v5 }
 0x42b   : > { %7253 = vmatpush.msrb.mxu0 %v7226_v16  ;;  %v13418_v23 = vpop.f32.mrf.mxu1  ;;  %v6085_v13 = vpop.f32.mrf.mxu2 }
 0x42c   : > { %v6120_v42 = vadd.f32 %v6119_v31, %v6085_v13  ;;  %v7521_v2 = vand.u32 4294901760, %v7520_v44 }
 0x42e   : > { %7086 = vmatmul.f32.vlgmr.msrb.gmra.mxu1 %v13350_v1 }
 0x42f   : > { %v6143_v14 = vpop.f32.mrf.mxu0  ;;  %7276 = vmatpush.msrb.mxu1 %v13376_v22  ;;  %7232 = vmatmul.f32.vlgmr.msra.gmra.mxu3 %v13350_v1 }
 0x430   : > { %7206 = vmatmul.f32.vlgmr.msra.gmra.mxu2 %v13371_v18  ;;  %7422 = vmatpush.msra.mxu3 %v7345_v24  ;;  %v6144_v45 = vadd.f32 %v6143_v14, %v6112_v6 }
 0x431   : > { %7399 = vmatpush.msra.mxu2 %v7372_v43 }
 0x432   : > { %7158 = vmatmul.f32.vlgmr.msra.gmra.mxu0 %v13350_v1  ;;  %v6243_v32 = vpop.f32.mrf.mxu3 }
 0x433   : > { %7346 = vmatpush.msra.mxu0 %v7345_v24  ;;  %v6177_v16 = vpop.f32.mrf.mxu1  ;;  %v6213_v37 = vpop.f32.mrf.mxu2 }
 0x434   : > { %v6178_v4 = vadd.f32 %v6177_v16, %v6144_v45 }
 0x436   : > { %v6214_v22 = vadd.f32 %v6213_v37, %v6178_v4  ;;  %7180 = vmatmul.f32.vlgmr.msra.gmra.mxu1 %v13350_v1 }
 0x437   : > { %v6148_v7 = vpop.f32.mrf.mxu0  ;;  %7376 = vmatpush.msra.mxu1 %v7375_v33  ;;  %7326 = vmatmul.f32.vlgmr.msrb.gmra.mxu3 %v13350_v1 }
 0x438   : > { %v6244_v52 = vadd.f32 %v6243_v32, %v6214_v22  ;;  %7304 = vmatmul.f32.vlgmr.msrb.gmra.mxu2 %v13350_v1  ;;  %7522 = vmatpush.msrb.mxu3 %v7521_v2  ;;  %v6149_v6 = vadd.f32 %v6148_v7, %v6116_v3  ;;  %v7664_v3 = vsub.f32 %v13078_v51, %v13431_v17 }
 0x439   : > { %7492 = vmatpush.msrb.mxu2 %v13407_v61 }
 0x43a   : > { %7256 = vmatmul.f32.vlgmr.msrb.gmra.mxu0 %v13359_v59  ;;  %v6247_v48 = vpop.f32.mrf.mxu3  ;;  %v6699_v13 = vmul.f32 %v6244_v52, %v12929_v11  ;;  %v7665_v44 = vand.u32 4294901760, %v7664_v3 }
 0x43b   : > { %7448 = vmatpush.msrb.mxu0 %v7373_v40  ;;  %v6183_v39 = vpop.f32.mrf.mxu1  ;;  %v6217_v27 = vpop.f32.mrf.mxu2 }
 0x43c   : > { %v6184_v30 = vadd.f32 %v6183_v39, %v6149_v6  ;;  %v7666_v51 = vsub.f32 %v7664_v3, %v7665_v44 }
 0x43e   : > { %v6218_v53 = vadd.f32 %v6217_v27, %v6184_v30  ;;  %7280 = vmatmul.f32.vlgmr.msrb.gmra.mxu1 %v13363_v15  ;;  %v7667_v33 = vand.u32 4294901760, %v7666_v51 }
 0x43f   : > { %v6153_v25 = vpop.f32.mrf.mxu0  ;;  %7470 = vmatpush.msrb.mxu1 %v7345_v24  ;;  %7426 = vmatmul.f32.vlgmr.msra.gmra.mxu3 %v13363_v15  ;;  %v7810_v24 = vsub.f32 %v13157_v10, %v13435_v0 }
 0x440   : > { %v6248_v43 = vadd.f32 %v6247_v48, %v6218_v53  ;;  %7402 = vmatmul.f32.vlgmr.msra.gmra.mxu2 %v13359_v59  ;;  %7616 = vmatpush.msra.mxu3 %v13407_v61  ;;  %v6154_v31 = vadd.f32 %v6153_v25, %v6120_v42  ;;  %v7929_v48 = vand.u32 4294901760, %v13229_v8 }
 0x441   : > { %7594 = vmatpush.msra.mxu2 %v7519_v5  ;;  %v7811_v11 = vand.u32 4294901760, %v7810_v24 }
 0x442   : > { %7352 = vmatmul.f32.vlgmr.msra.gmra.mxu0 %v13371_v18  ;;  %v6707_v40 = vmul.f32 %v6248_v43, %v12931_v56  ;;  %v6251_v37 = vpop.f32.mrf.mxu3  ;;  %v13466_v43 = vand.u32 4294901760, %v13264_v62 }
 0x443   : > { %7545 = vmatpush.msra.mxu0 %v7518_v63  ;;  %v6189_v14 = vpop.f32.mrf.mxu1  ;;  %v6221_v46 = vpop.f32.mrf.mxu2  ;;  %v7812_v42 = vsub.f32 %v7810_v24, %v7811_v11 }
 0x444   : > { %v13447_v45 = vadd.f32 %v6707_v40, %v6699_v13  ;;  %v6190_v16 = vadd.f32 %v6189_v14, %v6154_v31  ;;  %v7956_v13 = vsub.f32 %v13229_v8, %v7929_v48  ;;  %v8102_v31 = vsub.f32 %v13264_v62, %v13466_v43 }
 0x445   : > { %v7813_v2 = vand.u32 4294901760, %v7812_v42 }
 0x446   : > { %v6222_v32 = vadd.f32 %v6221_v46, %v6190_v16  ;;  %7378 = vmatmul.f32.vlgmr.msra.gmra.mxu1 %v13350_v1  ;;  %v7957_v16 = vand.u32 4294901760, %v7956_v13 }
 0x447   : > { %v6277_v4 = vpop.f32.mrf.mxu0  ;;  %7568 = vmatpush.msra.mxu1 %v13407_v61  ;;  %7524 = vmatmul.f32.vlgmr.msrb.gmra.mxu3 %v13350_v1 }
 0x448   : > { %v13451_v56 = vadd.f32 %v6251_v37, %v6222_v32  ;;  %7498 = vmatmul.f32.vlgmr.msrb.gmra.mxu2 %v13371_v18  ;;  %7714 = vmatpush.msrb.mxu3 %v13431_v17  ;;  %v7958_v8 = vsub.f32 %v7956_v13, %v7957_v16 }
 0x449   : > { %7691 = vmatpush.msrb.mxu2 %v7664_v3 }
 0x44a   : > { %7450 = vmatmul.f32.vlgmr.msrb.gmra.mxu0 %v13350_v1  ;;  %v6385_v61 = vpop.f32.mrf.mxu3 }
 0x44b   : > { %7638 = vmatpush.msrb.mxu0 %v13431_v17  ;;  %v6319_v10 = vpop.f32.mrf.mxu1  ;;  %v6351_v63 = vpop.f32.mrf.mxu2 }
 0x44c   : > { %v6320_v5 = vadd.f32 %v6319_v10, %v6277_v4  ;;  %v8103_v4 = vand.u32 4294901760, %v8102_v31 }
 0x44e   : > { %v6352_v22 = vadd.f32 %v6351_v63, %v6320_v5  ;;  %7472 = vmatmul.f32.vlgmr.msrb.gmra.mxu1 %v13350_v1 }
 0x44f   : > { %v6285_v7 = vpop.f32.mrf.mxu0  ;;  %7668 = vmatpush.msrb.mxu1 %v7667_v33  ;;  %7618 = vmatmul.f32.vlgmr.msra.gmra.mxu3 %v13350_v1 }
 0x450   : > { %v6386_v52 = vadd.f32 %v6385_v61, %v6352_v22  ;;  %7596 = vmatmul.f32.vlgmr.msra.gmra.mxu2 %v13350_v1  ;;  %7814 = vmatpush.msra.mxu3 %v7813_v2 }
 0x451   : > { %7784 = vmatpush.msra.mxu2 %v13435_v0 }
 0x452   : > { %7548 = vmatmul.f32.vlgmr.msra.gmra.mxu0 %v13359_v59  ;;  %v6391_v30 = vpop.f32.mrf.mxu3 }
 0x453   : > { %7740 = vmatpush.msra.mxu0 %v7665_v44  ;;  %v6323_v6 = vpop.f32.mrf.mxu1  ;;  %v6356_v39 = vpop.f32.mrf.mxu2 }
 0x454   : > { %v6324_v27 = vadd.f32 %v6323_v6, %v6285_v7  ;;  %v8221_v6 = vand.u32 4294901760, %v13307_v34 }
 0x456   : > { %v6357_v53 = vadd.f32 %v6356_v39, %v6324_v27  ;;  %7572 = vmatmul.f32.vlgmr.msra.gmra.mxu1 %v13363_v15 }
 0x457   : > { %v6293_v25 = vpop.f32.mrf.mxu0  ;;  %7762 = vmatpush.msra.mxu1 %v13431_v17  ;;  %7718 = vmatmul.f32.vlgmr.msrb.gmra.mxu3 %v13363_v15 }
 0x458   : > { %v6392_v3 = vadd.f32 %v6391_v30, %v6357_v53  ;;  %7694 = vmatmul.f32.vlgmr.msrb.gmra.mxu2 %v13359_v59  ;;  %7908 = vmatpush.msrb.mxu3 %v13435_v0  ;;  %v13499_v30 = vand.u32 4294901760, %v13348_v26 }
 0x459   : > { %7886 = vmatpush.msrb.mxu2 %v7811_v11  ;;  %v8104_v11 = vsub.f32 %v8102_v31, %v8103_v4 }
 0x45a   : > { %7644 = vmatmul.f32.vlgmr.msrb.gmra.mxu0 %v13371_v18  ;;  %v6397_v17 = vpop.f32.mrf.mxu3 }
 0x45b   : > { %7837 = vmatpush.msrb.mxu0 %v7810_v24  ;;  %v6327_v40 = vpop.f32.mrf.mxu1  ;;  %v6361_v14 = vpop.f32.mrf.mxu2  ;;  %v8105_v63 = vand.u32 4294901760, %v8104_v11  ;;  %v13523_v11 = vand.u32 4294901760, %v13409_v60 }
 0x45c   : > { %v6328_v46 = vadd.f32 %v6327_v40, %v6293_v25 }
 0x45e   : > { %v6362_v44 = vadd.f32 %v6361_v14, %v6328_v46  ;;  %7670 = vmatmul.f32.vlgmr.msrb.gmra.mxu1 %v13350_v1 }
 0x45f   : > { %v6421_v37 = vpop.f32.mrf.mxu0  ;;  %7860 = vmatpush.msrb.mxu1 %v13435_v0  ;;  %7816 = vmatmul.f32.vlgmr.msra.gmra.mxu3 %v13350_v1  ;;  %v7959_v0 = vand.u32 4294901760, %v7958_v8 }
 0x460   : > { %v13478_v32 = vadd.f32 %v6397_v17, %v6362_v44  ;;  %7790 = vmatmul.f32.vlgmr.msra.gmra.mxu2 %v13371_v18  ;;  %8006 = vmatpush.msra.mxu3 %v7929_v48  ;;  %v6422_v42 = vadd.f32 %v6421_v37, %v6386_v52 }
 0x461   : > { %7983 = vmatpush.msra.mxu2 %v7956_v13 }
 0x462   : > { %7742 = vmatmul.f32.vlgmr.msra.gmra.mxu0 %v13350_v1  ;;  %v13485_v51 = vpop.f32.mrf.mxu3 }
 0x463   : > { %7930 = vmatpush.msra.mxu0 %v7929_v48  ;;  %v6451_v62 = vpop.f32.mrf.mxu1  ;;  %v13483_v24 = vpop.f32.mrf.mxu2 }
 0x464   : > { %v6452_v61 = vadd.f32 %v6451_v62, %v6422_v42  ;;  %v6528_v42 = vadd.f32 %v13485_v51, %v13483_v24 }
 0x466   : > { %7764 = vmatmul.f32.vlgmr.msra.gmra.mxu1 %v13350_v1  ;;  %v6700_v52 = vmul.f32 %v6452_v61, %v13069_v38  ;;  %v8248_v38 = vsub.f32 %v13307_v34, %v8221_v6  ;;  %v8540_v61 = vsub.f32 %v13409_v60, %v13523_v11 }
 0x467   : > { %v6425_v10 = vpop.f32.mrf.mxu0  ;;  %7960 = vmatpush.msra.mxu1 %v7959_v0  ;;  %7910 = vmatmul.f32.vlgmr.msrb.gmra.mxu3 %v13350_v1 }
 0x468   : > { %7888 = vmatmul.f32.vlgmr.msrb.gmra.mxu2 %v13350_v1  ;;  %8106 = vmatpush.msrb.mxu3 %v8105_v63  ;;  %v6426_v5 = vadd.f32 %v6425_v10, %v6392_v3  ;;  %v8249_v40 = vand.u32 4294901760, %v8248_v38  ;;  %v13527_v10 = vand.u32 4294901760, %v13447_v45 }
 0x469   : > { %8076 = vmatpush.msrb.mxu2 %v13466_v43 }
 0x46a   : > { %7840 = vmatmul.f32.vlgmr.msrb.gmra.mxu0 %v13359_v59  ;;  %v6531_v2 = vpop.f32.mrf.mxu3  ;;  %v8250_v34 = vsub.f32 %v8248_v38, %v8249_v40 }
 0x46b   : > { %8032 = vmatpush.msrb.mxu0 %v7957_v16  ;;  %v6455_v33 = vpop.f32.mrf.mxu1  ;;  %v6493_v7 = vpop.f32.mrf.mxu2 }
 0x46c   : > { %v6456_v22 = vadd.f32 %v6455_v33, %v6426_v5  ;;  %v8251_v37 = vand.u32 4294901760, %v8250_v34  ;;  %v6532_v63 = vadd.f32 %v6531_v2, %v6493_v7  ;;  %v8686_v7 = vsub.f32 %v13447_v45, %v13527_v10 }
 0x46e   : > { %v6708_v27 = vmul.f32 %v6456_v22, %v13071_v21  ;;  %7864 = vmatmul.f32.vlgmr.msrb.gmra.mxu1 %v13363_v15  ;;  %v8394_v21 = vsub.f32 %v13348_v26, %v13499_v30 }
 0x46f   : > { %v13494_v39 = vpop.f32.mrf.mxu0  ;;  %8054 = vmatpush.msrb.mxu1 %v7929_v48  ;;  %8010 = vmatmul.f32.vlgmr.msra.gmra.mxu3 %v13363_v15 }
 0x470   : > { %v13501_v25 = vadd.f32 %v6708_v27, %v6700_v52  ;;  %7986 = vmatmul.f32.vlgmr.msra.gmra.mxu2 %v13359_v59  ;;  %8200 = vmatpush.msra.mxu3 %v13466_v43  ;;  %v8395_v46 = vand.u32 4294901760, %v8394_v21 }
 0x471   : > { %8178 = vmatpush.msra.mxu2 %v8103_v4 }
 0x472   : > { %7936 = vmatmul.f32.vlgmr.msra.gmra.mxu0 %v13371_v18  ;;  %v6535_v3 = vpop.f32.mrf.mxu3  ;;  %v8396_v17 = vsub.f32 %v8394_v21, %v8395_v46 }
 0x473   : > { %8129 = vmatpush.msra.mxu0 %v8102_v31  ;;  %v13510_v53 = vpop.f32.mrf.mxu1  ;;  %v6501_v48 = vpop.f32.mrf.mxu2 }
 0x474   : > { %v6536_v13 = vadd.f32 %v6535_v3, %v6501_v48 }
 0x476   : > { %7962 = vmatmul.f32.vlgmr.msra.gmra.mxu1 %v13350_v1 }
 0x477   : > { %v6559_v14 = vpop.f32.mrf.mxu0  ;;  %8152 = vmatpush.msra.mxu1 %v13466_v43  ;;  %8108 = vmatmul.f32.vlgmr.msrb.gmra.mxu3 %v13350_v1  ;;  %v8397_v43 = vand.u32 4294901760, %v8396_v17 }
 0x478   : > { %8082 = vmatmul.f32.vlgmr.msrb.gmra.mxu2 %v13371_v18  ;;  %8298 = vmatpush.msrb.mxu3 %v8221_v6  ;;  %v6560_v22 = vadd.f32 %v6559_v14, %v6528_v42 }
 0x479   : > { %8275 = vmatpush.msrb.mxu2 %v8248_v38  ;;  %v8541_v38 = vand.u32 4294901760, %v8540_v61 }
 0x47a   : > { %8034 = vmatmul.f32.vlgmr.msrb.gmra.mxu0 %v13350_v1  ;;  %v6659_v16 = vpop.f32.mrf.mxu3 }
 0x47b   : > { %8222 = vmatpush.msrb.mxu0 %v8221_v6  ;;  %v6593_v26 = vpop.f32.mrf.mxu1  ;;  %v6629_v31 = vpop.f32.mrf.mxu2 }
 0x47c   : > { %v6594_v51 = vadd.f32 %v6593_v26, %v6560_v22 }
 0x47e   : > { %8056 = vmatmul.f32.vlgmr.msrb.gmra.mxu1 %v13350_v1  ;;  %v6630_v45 = vadd.f32 %v6629_v31, %v6594_v51 }
 0x47f   : > { %v6564_v44 = vpop.f32.mrf.mxu0  ;;  %8252 = vmatpush.msrb.mxu1 %v8251_v37  ;;  %8202 = vmatmul.f32.vlgmr.msra.gmra.mxu3 %v13350_v1 }
 0x480   : > { %8180 = vmatmul.f32.vlgmr.msra.gmra.mxu2 %v13350_v1  ;;  %8398 = vmatpush.msra.mxu3 %v8397_v43  ;;  %v6565_v5 = vadd.f32 %v6564_v44, %v6532_v63  ;;  %v6660_v17 = vadd.f32 %v6659_v16, %v6630_v45 }
 0x481   : > { %8368 = vmatpush.msra.mxu2 %v13499_v30 }
 0x482   : > { %8132 = vmatmul.f32.vlgmr.msra.gmra.mxu0 %v13359_v59  ;;  %v6663_v62 = vpop.f32.mrf.mxu3 }
 0x483   : > { %8324 = vmatpush.msra.mxu0 %v8249_v40  ;;  %v6599_v4 = vpop.f32.mrf.mxu1  ;;  %v6633_v8 = vpop.f32.mrf.mxu2  ;;  %v8542_v40 = vsub.f32 %v8540_v61, %v8541_v38 }
 0x484   : > { %v6600_v2 = vadd.f32 %v6599_v4, %v6565_v5  ;;  %v6701_v4 = vmul.f32 %v6660_v17, %v13143_v12 }
 0x485   : > { %v8543_v37 = vand.u32 4294901760, %v8542_v40 }
 0x486   : > { %8156 = vmatmul.f32.vlgmr.msra.gmra.mxu1 %v13363_v15  ;;  %v6634_v60 = vadd.f32 %v6633_v8, %v6600_v2 }
 0x487   : > { %v6569_v0 = vpop.f32.mrf.mxu0  ;;  %8346 = vmatpush.msra.mxu1 %v8221_v6  ;;  %8302 = vmatmul.f32.vlgmr.msrb.gmra.mxu3 %v13363_v15 }
 0x488   : > { %8278 = vmatmul.f32.vlgmr.msrb.gmra.mxu2 %v13359_v59  ;;  %8492 = vmatpush.msrb.mxu3 %v13499_v30  ;;  %v6570_v33 = vadd.f32 %v6569_v0, %v6536_v13  ;;  %v6664_v14 = vadd.f32 %v6663_v62, %v6634_v60 }
 0x489   : > { %8470 = vmatpush.msrb.mxu2 %v8395_v46 }
 0x48a   : > { %8228 = vmatmul.f32.vlgmr.msrb.gmra.mxu0 %v13371_v18  ;;  %v6667_v24 = vpop.f32.mrf.mxu3  ;;  %v6709_v44 = vmul.f32 %v6664_v14, %v13145_v57  ;;  %v8805_v57 = vand.u32 4294901760, %v13501_v25 }
 0x48b   : > { %8421 = vmatpush.msrb.mxu0 %v8394_v21  ;;  %v6605_v6 = vpop.f32.mrf.mxu1  ;;  %v6637_v52 = vpop.f32.mrf.mxu2  ;;  %v8687_v21 = vand.u32 4294901760, %v8686_v7 }
 0x48c   : > { %v6606_v27 = vadd.f32 %v6605_v6, %v6570_v33  ;;  %v6717_v16 = vadd.f32 %v6709_v44, %v6701_v4  ;;  %v8832_v12 = vsub.f32 %v13501_v25, %v8805_v57  ;;  %v14220_v44 = vld [vmem:[#allocation33_spill] sm:$0xff] }
 0x48d   : > { %v8688_v34 = vsub.f32 %v8686_v7, %v8687_v21 }
 0x48e   : > { %v6638_v48 = vadd.f32 %v6637_v52, %v6606_v27  ;;  %8254 = vmatmul.f32.vlgmr.msrb.gmra.mxu1 %v13350_v1  ;;  %v13569_v42 = vand.u32 4294901760, %v6717_v16  ;;  %v8833_v2 = vand.u32 4294901760, %v8832_v12 }
 0x48f   : > { %v13540_v3 = vpop.f32.mrf.mxu0  ;;  %8444 = vmatpush.msrb.mxu1 %v13499_v30  ;;  %8400 = vmatmul.f32.vlgmr.msra.gmra.mxu3 %v13350_v1  ;;  %v8689_v43 = vand.u32 4294901760, %v8688_v34 }
 0x490   : > { %v13543_v13 = vadd.f32 %v6667_v24, %v6638_v48  ;;  %8374 = vmatmul.f32.vlgmr.msra.gmra.mxu2 %v13371_v18  ;;  %8590 = vmatpush.msra.mxu3 %v13523_v11  ;;  %v8978_v5 = vsub.f32 %v6717_v16, %v13569_v42  ;;  %v8834_v25 = vsub.f32 %v8832_v12, %v8833_v2 }
 0x491   : > { %8567 = vmatpush.msra.mxu2 %v8540_v61 }
 0x492   : > { %8326 = vmatmul.f32.vlgmr.msra.gmra.mxu0 %v13350_v1  ;;  %v13554_v26 = vpop.f32.mrf.mxu3  ;;  %v8979_v6 = vand.u32 4294901760, %v8978_v5  ;;  %v8835_v51 = vand.u32 4294901760, %v8834_v25 }
 0x493   : > { %8514 = vmatpush.msra.mxu0 %v13523_v11  ;;  %v13550_v46 = vpop.f32.mrf.mxu1  ;;  %v13552_v30 = vpop.f32.mrf.mxu2 }
 0x494   : > { %v8980_v27 = vsub.f32 %v8978_v5, %v8979_v6 }
 0x496   : > { %8348 = vmatmul.f32.vlgmr.msra.gmra.mxu1 %v13350_v1  ;;  %v8981_v60 = vand.u32 4294901760, %v8980_v27 }
 0x497   : > { %v13557_v31 = vpop.f32.mrf.mxu0  ;;  %8544 = vmatpush.msra.mxu1 %v8543_v37  ;;  %8494 = vmatmul.f32.vlgmr.msrb.gmra.mxu3 %v13350_v1 }
 0x498   : > { %8472 = vmatmul.f32.vlgmr.msrb.gmra.mxu2 %v13350_v1  ;;  %8690 = vmatpush.msrb.mxu3 %v8689_v43  ;;  %v13591_v43 = vand.u32 4294901760, %v14220_v44 }
 0x499   : > { %8660 = vmatpush.msrb.mxu2 %v13527_v10 }
 0x49a   : > { %8424 = vmatmul.f32.vlgmr.msrb.gmra.mxu0 %v13359_v59  ;;  %v6941_v0 = vpop.f32.mrf.mxu3 }
 0x49b   : > { %8616 = vmatpush.msrb.mxu0 %v8541_v38  ;;  %v13565_v8 = vpop.f32.mrf.mxu1  ;;  %v6915_v62 = vpop.f32.mrf.mxu2 }
 0x49c   : > { %v6942_v38 = vadd.f32 %v6941_v0, %v6915_v62 }
 0x49e   : > { %8448 = vmatmul.f32.vlgmr.msrb.gmra.mxu1 %v13363_v15 }
 0x49f   : > { %v6965_v63 = vpop.f32.mrf.mxu0  ;;  %8638 = vmatpush.msrb.mxu1 %v13523_v11  ;;  %8594 = vmatmul.f32.vlgmr.msra.gmra.mxu3 %v13363_v15 }
 0x4a0   : > { %8570 = vmatmul.f32.vlgmr.msra.gmra.mxu2 %v13359_v59  ;;  %8784 = vmatpush.msra.mxu3 %v13527_v10  ;;  %v6966_v45 = vadd.f32 %v6965_v63, %v6942_v38 }
 0x4a1   : > { %8762 = vmatpush.msra.mxu2 %v8687_v21  ;;  %v6796_v21 = vadd.f32 %v13550_v46, %v13540_v3  ;;  %v14221_v3 = vld [vmem:[#allocation37_spill] sm:$0xff] }
 0x4a2   : > { %8520 = vmatmul.f32.vlgmr.msra.gmra.mxu0 %v13371_v18  ;;  %v7035_v22 = vpop.f32.mrf.mxu3  ;;  %v13596_v46 = vand.u32 4294901760, %v14221_v3 }
 0x4a3   : > { %8713 = vmatpush.msra.mxu0 %v8686_v7  ;;  %v6989_v61 = vpop.f32.mrf.mxu1  ;;  %v7013_v33 = vpop.f32.mrf.mxu2  ;;  %v6820_v4 = vadd.f32 %v13552_v30, %v6796_v21  ;;  %v9124_v30 = vsub.f32 %v14220_v44, %v13591_v43 }
 0x4a4   : > { %v6990_v17 = vadd.f32 %v6989_v61, %v6966_v45 }
 0x4a5   : > { %v9125_v27 = vand.u32 4294901760, %v9124_v30 }
 0x4a6   : > { %8546 = vmatmul.f32.vlgmr.msra.gmra.mxu1 %v13350_v1  ;;  %v7014_v63 = vadd.f32 %v7013_v33, %v6990_v17 }
 0x4a7   : > { %v7061_v11 = vpop.f32.mrf.mxu0  ;;  %8736 = vmatpush.msra.mxu1 %v13527_v10  ;;  %8692 = vmatmul.f32.vlgmr.msrb.gmra.mxu3 %v13350_v1 }
 0x4a8   : > { %8666 = vmatmul.f32.vlgmr.msrb.gmra.mxu2 %v13371_v18  ;;  %8882 = vmatpush.msrb.mxu3 %v8805_v57  ;;  %v7036_v25 = vadd.f32 %v7035_v22, %v7014_v63 }
 0x4a9   : > { %8859 = vmatpush.msrb.mxu2 %v8832_v12  ;;  %v6844_v12 = vadd.f32 %v13554_v26, %v6820_v4 }
 0x4aa   : > { %8618 = vmatmul.f32.vlgmr.msrb.gmra.mxu0 %v13350_v1  ;;  %v7135_v24 = vpop.f32.mrf.mxu3 }
 0x4ab   : > { %8806 = vmatpush.msrb.mxu0 %v8805_v57  ;;  %v7087_v7 = vpop.f32.mrf.mxu1  ;;  %v7111_v52 = vpop.f32.mrf.mxu2 }
 0x4ac   : > { %v7088_v48 = vadd.f32 %v7087_v7, %v7061_v11 }
 0x4ae   : > { %8640 = vmatmul.f32.vlgmr.msrb.gmra.mxu1 %v13350_v1  ;;  %v7112_v40 = vadd.f32 %v7111_v52, %v7088_v48 }
 0x4af   : > { %v7159_v10 = vpop.f32.mrf.mxu0  ;;  %8836 = vmatpush.msrb.mxu1 %v8835_v51  ;;  %8786 = vmatmul.f32.vlgmr.msra.gmra.mxu3 %v13350_v1 }
 0x4b0   : > { %8764 = vmatmul.f32.vlgmr.msra.gmra.mxu2 %v13350_v1  ;;  %8982 = vmatpush.msra.mxu3 %v8981_v60  ;;  %v7136_v16 = vadd.f32 %v7135_v24, %v7112_v40  ;;  %v6868_v24 = vadd.f32 %v13557_v31, %v6844_v12  ;;  %v9126_v31 = vsub.f32 %v9124_v30, %v9125_v27 }
 0x4b1   : > { %8952 = vmatpush.msra.mxu2 %v13569_v42 }
 0x4b2   : > { %8716 = vmatmul.f32.vlgmr.msra.gmra.mxu0 %v13359_v59  ;;  %v7233_v37 = vpop.f32.mrf.mxu3  ;;  %v7160_v61 = vadd.f32 %v7159_v10, %v7136_v16  ;;  %v6890_v22 = vadd.f32 %v13565_v8, %v6868_v24  ;;  %v10619_v8 = vld [vmem:[%s10778_s11] sm:$0xff] }
 0x4b3   : > { %8908 = vmatpush.msra.mxu0 %v8833_v2  ;;  %v7181_v14 = vpop.f32.mrf.mxu1  ;;  %v7207_v34 = vpop.f32.mrf.mxu2 }
 0x4b4   : > { %v7234_v62 = vadd.f32 %v7233_v37, %v7207_v34  ;;  %v7182_v51 = vadd.f32 %v7181_v14, %v7160_v61  ;;  %v9127_v37 = vand.u32 4294901760, %v9126_v31  ;;  %v14224_v61 = vld [vmem:[#allocation42_spill] sm:$0xff] }
 0x4b6   : > { %8740 = vmatmul.f32.vlgmr.msra.gmra.mxu1 %v13363_v15  ;;  %v10259_v10 = vrot.slane %v7182_v51, 4 }
 0x4b7   : > { %v7257_v0 = vpop.f32.mrf.mxu0  ;;  %8930 = vmatpush.msra.mxu1 %v8805_v57  ;;  %8886 = vmatmul.f32.vlgmr.msrb.gmra.mxu3 %v13363_v15  ;;  %v9270_v57 = vsub.f32 %v14221_v3, %v13596_v46 }
 0x4b8   : > { %8862 = vmatmul.f32.vlgmr.msrb.gmra.mxu2 %v13359_v59  ;;  %9076 = vmatpush.msrb.mxu3 %v13569_v42  ;;  %v7258_v2 = vadd.f32 %v7257_v0, %v7234_v62 }
 0x4b9   : > { %9054 = vmatpush.msrb.mxu2 %v8979_v6  ;;  %v10258_v6 = vrot.slane %v7036_v25, 6 }
 0x4ba   : > { %8812 = vmatmul.f32.vlgmr.msrb.gmra.mxu0 %v13371_v18  ;;  %v7327_v52 = vpop.f32.mrf.mxu3 }
 0x4bb   : > { %9005 = vmatpush.msrb.mxu0 %v8978_v5  ;;  %v7281_v33 = vpop.f32.mrf.mxu1  ;;  %v7305_v11 = vpop.f32.mrf.mxu2  ;;  %v9271_v5 = vand.u32 4294901760, %v9270_v57  ;;  %v10265_v40 = vsel %vm10264_vm0, %v6890_v22, %v10258_v6 }
 0x4bc   : > { %v7282_v7 = vadd.f32 %v7281_v33, %v7258_v2  ;;  %v13641_v2 = vand.u32 4294901760, %v14224_v61 }
 0x4bd   : > { %v9272_v45 = vsub.f32 %v9270_v57, %v9271_v5 }
 0x4be   : > { %v7306_v38 = vadd.f32 %v7305_v11, %v7282_v7  ;;  %8838 = vmatmul.f32.vlgmr.msrb.gmra.mxu1 %v13350_v1  ;;  %v9562_v11 = vsub.f32 %v14224_v61, %v13641_v2 }
 0x4bf   : > { %v13609_v26 = vpop.f32.mrf.mxu0  ;;  %9028 = vmatpush.msrb.mxu1 %v13569_v42  ;;  %8984 = vmatmul.f32.vlgmr.msra.gmra.mxu3 %v13350_v1  ;;  %v9273_v16 = vand.u32 4294901760, %v9272_v45 }
 0x4c0   : > { %v7328_v48 = vadd.f32 %v7327_v52, %v7306_v38  ;;  %8958 = vmatmul.f32.vlgmr.msra.gmra.mxu2 %v13371_v18  ;;  %9174 = vmatpush.msra.mxu3 %v13591_v43  ;;  %v9563_v24 = vand.u32 4294901760, %v9562_v11 }
 0x4c1   : > { %9151 = vmatpush.msra.mxu2 %v9124_v30  ;;  %v14223_v30 = vld [vmem:[#allocation30_spill] sm:$0xff] }
 0x4c2   : > { %8910 = vmatmul.f32.vlgmr.msra.gmra.mxu0 %v13350_v1  ;;  %v10260_v60 = vrot.slane %v7328_v48, 2  ;;  %v13624_v34 = vpop.f32.mrf.mxu3  ;;  %v9389_v12 = vand.u32 4294901760, %v14223_v30 }
 0x4c3   : > { %9098 = vmatpush.msra.mxu0 %v13591_v43  ;;  %v13618_v42 = vpop.f32.mrf.mxu1  ;;  %v13620_v21 = vpop.f32.mrf.mxu2 }
 0x4c4   : > { %v10267_v14 = vsel %vm10266_vm3, %v10259_v10, %v10260_v60  ;;  %v9416_v33 = vsub.f32 %v14223_v30, %v9389_v12  ;;  %v7380_v60 = vadd.f32 %v13618_v42, %v13609_v26  ;;  %v14225_v26 = vld [vmem:[#allocation17_spill] sm:$0xff] }
 0x4c5   : > { %v10268_v17 = vsel %vm14222_vm15, %v10265_v40, %v10267_v14  ;;  %v13669_v42 = vand.u32 4294901760, %v14225_v26 }
 0x4c6   : > { %v10274_v44 = vadd.f32 %v10619_v8, %v10268_v17  ;;  %8932 = vmatmul.f32.vlgmr.msra.gmra.mxu1 %v13350_v1 }
 0x4c7   : > { %v13629_v4 = vpop.f32.mrf.mxu0  ;;  %9128 = vmatpush.msra.mxu1 %v9127_v37  ;;  %9078 = vmatmul.f32.vlgmr.msrb.gmra.mxu3 %v13350_v1 }
 0x4c8   : > { %v10298_v62 = vadd.f32 %v12772_v54, %v10274_v44  ;;  %9056 = vmatmul.f32.vlgmr.msrb.gmra.mxu2 %v13350_v1  ;;  %9274 = vmatpush.msrb.mxu3 %v9273_v16  ;;  %v13664_v44 = vand.u32 4294901760, %v12881_v20  ;;  %v7404_v16 = vadd.f32 %v13620_v21, %v7380_v60 }
 0x4c9   : > { %9244 = vmatpush.msrb.mxu2 %v13596_v46 }
 0x4ca   : > { %9008 = vmatmul.f32.vlgmr.msrb.gmra.mxu0 %v13359_v59  ;;  %10390 = vst [vmem:[#allocation1] ss:$2 sm:$0xff] %v10298_v62  ;;  %v7525_v63 = vpop.f32.mrf.mxu3  ;;  %v9708_v21 = vsub.f32 %v12881_v20, %v13664_v44 }
 0x4cb   : > { %9200 = vmatpush.msrb.mxu0 %v9125_v27  ;;  %v13636_v0 = vpop.f32.mrf.mxu1  ;;  %v7499_v3 = vpop.f32.mrf.mxu2  ;;  %v9417_v27 = vand.u32 4294901760, %v9416_v33 }
 0x4cc   : > { %v7526_v31 = vadd.f32 %v7525_v63, %v7499_v3 }
 0x4ce   : > { %9032 = vmatmul.f32.vlgmr.msrb.gmra.mxu1 %v13363_v15 }
 0x4cf   : > { %v7549_v54 = vpop.f32.mrf.mxu0  ;;  %9222 = vmatpush.msrb.mxu1 %v13591_v43  ;;  %9178 = vmatmul.f32.vlgmr.msra.gmra.mxu3 %v13363_v15 }
 0x4d0   : > { %9154 = vmatmul.f32.vlgmr.msra.gmra.mxu2 %v13359_v59  ;;  %9368 = vmatpush.msra.mxu3 %v13596_v46  ;;  %v7550_v45 = vadd.f32 %v7549_v54, %v7526_v31  ;;  %v7428_v54 = vadd.f32 %v13624_v34, %v7404_v16 }
 0x4d1   : > { %9346 = vmatpush.msra.mxu2 %v9271_v5  ;;  %v9564_v5 = vsub.f32 %v9562_v11, %v9563_v24 }
 0x4d2   : > { %9104 = vmatmul.f32.vlgmr.msra.gmra.mxu0 %v13371_v18  ;;  %v7619_v52 = vpop.f32.mrf.mxu3 }
 0x4d3   : > { %9297 = vmatpush.msra.mxu0 %v9270_v57  ;;  %v7573_v25 = vpop.f32.mrf.mxu1  ;;  %v7597_v7 = vpop.f32.mrf.mxu2  ;;  %v9418_v57 = vsub.f32 %v9416_v33, %v9417_v27  ;;  %v9565_v10 = vand.u32 4294901760, %v9564_v5 }
 0x4d4   : > { %v7574_v37 = vadd.f32 %v7573_v25, %v7550_v45 }
 0x4d5   : > { %v9419_v48 = vand.u32 4294901760, %v9418_v57 }
 0x4d6   : > { %9130 = vmatmul.f32.vlgmr.msra.gmra.mxu1 %v13350_v1  ;;  %v7598_v30 = vadd.f32 %v7597_v7, %v7574_v37  ;;  %v10620_v37 = vld [vmem:[%s10778_s11 + $0x8] sm:$0xff]  ;;  %s216_s11 = sand.u32 1, %s10675_s19  }
 0x4d7   : > { %v7645_v43 = vpop.f32.mrf.mxu0  ;;  %9320 = vmatpush.msra.mxu1 %v13596_v46  ;;  %9276 = vmatmul.f32.vlgmr.msrb.gmra.mxu3 %v13350_v1  ;;  %s10514_s15 = sshll.u32 %s216_s11, 5  ;;  %s10435_s22 = scalar_lea.sflag [#allocation3], %s216_s11 }
 0x4d8   : > { %9250 = vmatmul.f32.vlgmr.msrb.gmra.mxu2 %v13371_v18  ;;  %9466 = vmatpush.msrb.mxu3 %v9389_v12  ;;  %s13786_s16 = scalar_lea.vmem [#allocation2], %s10514_s15 }
 0x4d9   : > { %9443 = vmatpush.msrb.mxu2 %v9416_v33  ;;  %s10448_s30 = sshll.u32 %s13786_s16, 4  ;;  %s10449_s30 = int_to_ptr.vmem [resolvable:$true] %s10448_s30 }
 0x4da   : > { %9202 = vmatmul.f32.vlgmr.msrb.gmra.mxu0 %v13350_v1  ;;  %v7719_v6 = vpop.f32.mrf.mxu3 }
 0x4db   : > { %9390 = vmatpush.msrb.mxu0 %v9389_v12  ;;  %v7671_v51 = vpop.f32.mrf.mxu1  ;;  %v7695_v38 = vpop.f32.mrf.mxu2 }
 0x4dc   : > { %v7672_v22 = vadd.f32 %v7671_v51, %v7645_v43  ;;  %v9709_v51 = vand.u32 4294901760, %v9708_v21 }
 0x4de   : > { %9224 = vmatmul.f32.vlgmr.msrb.gmra.mxu1 %v13350_v1  ;;  %v7696_v40 = vadd.f32 %v7695_v38, %v7672_v22  ;;  %v7452_v38 = vadd.f32 %v13629_v4, %v7428_v54  ;;  %v9710_v4 = vsub.f32 %v9708_v21, %v9709_v51 }
 0x4df   : > { %v7743_v46 = vpop.f32.mrf.mxu0  ;;  %9420 = vmatpush.msrb.mxu1 %v9419_v48  ;;  %9370 = vmatmul.f32.vlgmr.msra.gmra.mxu3 %v13350_v1 }
 0x4e0   : > { %9348 = vmatmul.f32.vlgmr.msra.gmra.mxu2 %v13350_v1  ;;  %9566 = vmatpush.msra.mxu3 %v9565_v10  ;;  %v7720_v62 = vadd.f32 %v7719_v6, %v7696_v40 }
 0x4e1   : > { %9536 = vmatpush.msra.mxu2 %v13641_v2 }
 0x4e2   : > { %9300 = vmatmul.f32.vlgmr.msra.gmra.mxu0 %v13359_v59  ;;  %v7817_v8 = vpop.f32.mrf.mxu3  ;;  %v7744_v61 = vadd.f32 %v7743_v46, %v7720_v62 }
 0x4e3   : > { %9492 = vmatpush.msra.mxu0 %v9417_v27  ;;  %v7765_v14 = vpop.f32.mrf.mxu1  ;;  %v7791_v17 = vpop.f32.mrf.mxu2  ;;  %v7620_v27 = vadd.f32 %v7619_v52, %v7598_v30  ;;  %v7474_v52 = vadd.f32 %v13636_v0, %v7452_v38 }
 0x4e4   : > { %v7818_v3 = vadd.f32 %v7817_v8, %v7791_v17  ;;  %v7766_v5 = vadd.f32 %v7765_v14, %v7744_v61  ;;  %v9711_v17 = vand.u32 4294901760, %v9710_v4 }
 0x4e6   : > { %9324 = vmatmul.f32.vlgmr.msra.gmra.mxu1 %v13363_v15  ;;  %v10262_v48 = vrot.slane %v7766_v5, 4 }
 0x4e7   : > { %v7841_v63 = vpop.f32.mrf.mxu0  ;;  %9514 = vmatpush.msra.mxu1 %v9389_v12  ;;  %9470 = vmatmul.f32.vlgmr.msrb.gmra.mxu3 %v13363_v15  ;;  %v13680_v12 = vsub.f32 %v14225_v26, %v13669_v42  ;;  %v5182_v26 = vadd.f32 %v13225_v36, %v13207_v58  ;;  %v13711_v58 = vand.u32 4294901760, %v13180_v47 }
 0x4e8   : > { %9446 = vmatmul.f32.vlgmr.msrb.gmra.mxu2 %v13359_v59  ;;  %9660 = vmatpush.msrb.mxu3 %v13641_v2  ;;  %v7842_v33 = vadd.f32 %v7841_v63, %v7818_v3 }
 0x4e9   : > { %9638 = vmatpush.msrb.mxu2 %v9563_v24  ;;  %v10261_v24 = vrot.slane %v7620_v27, 6 }
 0x4ea   : > { %9396 = vmatmul.f32.vlgmr.msrb.gmra.mxu0 %v13371_v18  ;;  %v7911_v57 = vpop.f32.mrf.mxu3 }
 0x4eb   : > { %9589 = vmatpush.msrb.mxu0 %v9562_v11  ;;  %v7865_v25 = vpop.f32.mrf.mxu1  ;;  %v7889_v7 = vpop.f32.mrf.mxu2  ;;  %v9855_v11 = vand.u32 4294901760, %v13680_v12  ;;  %v10269_v10 = vsel %vm10264_vm0, %v7474_v52, %v10261_v24 }
 0x4ec   : > { %v7866_v43 = vadd.f32 %v7865_v25, %v7842_v33 }
 0x4ed   : > { %v9856_v46 = vsub.f32 %v13680_v12, %v9855_v11 }
 0x4ee   : > { %v7890_v20 = vadd.f32 %v7889_v7, %v7866_v43  ;;  %9422 = vmatmul.f32.vlgmr.msrb.gmra.mxu1 %v13350_v1  ;;  %v14227_v7 = vld [vmem:[#allocation34_spill] sm:$0xff] }
 0x4ef   : > { %v7937_v34 = vpop.f32.mrf.mxu0  ;;  %9612 = vmatpush.msrb.mxu1 %v13641_v2  ;;  %9568 = vmatmul.f32.vlgmr.msra.gmra.mxu3 %v13350_v1  ;;  %v9857_v62 = vand.u32 4294901760, %v9856_v46  ;;  %v9973_v27 = vand.u32 4294901760, %v14227_v7 }
 0x4f0   : > { %v7912_v6 = vadd.f32 %v7911_v57, %v7890_v20  ;;  %9542 = vmatmul.f32.vlgmr.msra.gmra.mxu2 %v13371_v18  ;;  %9758 = vmatpush.msra.mxu3 %v13664_v44 }
 0x4f1   : > { %9735 = vmatpush.msra.mxu2 %v9708_v21 }
 0x4f2   : > { %9494 = vmatmul.f32.vlgmr.msra.gmra.mxu0 %v13350_v1  ;;  %v10263_v31 = vrot.slane %v7912_v6, 2  ;;  %v8011_v40 = vpop.f32.mrf.mxu3 }
 0x4f3   : > { %9682 = vmatpush.msra.mxu0 %v13664_v44  ;;  %v7963_v2 = vpop.f32.mrf.mxu1  ;;  %v7987_v22 = vpop.f32.mrf.mxu2 }
 0x4f4   : > { %v10270_v60 = vsel %vm10266_vm3, %v10262_v48, %v10263_v31  ;;  %v7964_v45 = vadd.f32 %v7963_v2, %v7937_v34 }
 0x4f5   : > { %v10271_v14 = vsel %vm14226_vm2, %v10269_v10, %v10270_v60 }
 0x4f6   : > { %v10275_v0 = vadd.f32 %v10620_v37, %v10271_v14  ;;  %v7988_v8 = vadd.f32 %v7987_v22, %v7964_v45  ;;  %9516 = vmatmul.f32.vlgmr.msra.gmra.mxu1 %v13350_v1 }
 0x4f7   : > { %v8035_v16 = vpop.f32.mrf.mxu0  ;;  %9712 = vmatpush.msra.mxu1 %v9711_v17  ;;  %9662 = vmatmul.f32.vlgmr.msrb.gmra.mxu3 %v13350_v1 }
 0x4f8   : > { %v10299_v3 = vadd.f32 %v13191_v50, %v10275_v0  ;;  %v8012_v63 = vadd.f32 %v8011_v40, %v7988_v8  ;;  %9640 = vmatmul.f32.vlgmr.msrb.gmra.mxu2 %v13350_v1  ;;  %9858 = vmatpush.msrb.mxu3 %v9857_v62  ;;  %v5212_v50 = vadd.f32 %v13238_v28, %v5182_v26 }
 0x4f9   : > { %9828 = vmatpush.msrb.mxu2 %v13669_v42  ;;  %v10000_v28 = vsub.f32 %v14227_v7, %v9973_v27 }
 0x4fa   : > { %9592 = vmatmul.f32.vlgmr.msrb.gmra.mxu0 %v13359_v59  ;;  %10392 = vst [vmem:[#allocation1 + $0x10] ss:$2 sm:$0xff] %v10299_v3  ;;  %v8036_v30 = vadd.f32 %v8035_v16, %v8012_v63  ;;  %v8109_v33 = vpop.f32.mrf.mxu3 }
 0x4fb   : > { %9784 = vmatpush.msrb.mxu0 %v9709_v51  ;;  %v8057_v21 = vpop.f32.mrf.mxu1  ;;  %v8083_v54 = vpop.f32.mrf.mxu2  ;;  %v10146_v51 = vsub.f32 %v13180_v47, %v13711_v58  ;;  %v10001_v34 = vand.u32 4294901760, %v10000_v28 }
 0x4fc   : > { %v8058_v61 = vadd.f32 %v8057_v21, %v8036_v30  ;;  %v8110_v25 = vadd.f32 %v8109_v33, %v8083_v54 }
 0x4fd   : > { %v10147_v4 = vand.u32 4294901760, %v10146_v51  ;;  %v10002_v47 = vsub.f32 %v10000_v28, %v10001_v34 }
 0x4fe   : > { %v13707_v43 = vadd.f32 %v8058_v61, %v5212_v50  ;;  %9616 = vmatmul.f32.vlgmr.msrb.gmra.mxu1 %v13363_v15 }
 0x4ff   : > { %v8133_v57 = vpop.f32.mrf.mxu0  ;;  %9806 = vmatpush.msrb.mxu1 %v13664_v44  ;;  %9762 = vmatmul.f32.vlgmr.msra.gmra.mxu3 %v13363_v15  ;;  %v10148_v31 = vsub.f32 %v10146_v51, %v10147_v4  ;;  %v10003_v22 = vand.u32 4294901760, %v10002_v47 }
 0x500   : > { %v8134_v36 = vadd.f32 %v8133_v57, %v8110_v25  ;;  %9738 = vmatmul.f32.vlgmr.msra.gmra.mxu2 %v13359_v59  ;;  %9952 = vmatpush.msra.mxu3 %v13669_v42 }
 0x501   : > { %9930 = vmatpush.msra.mxu2 %v9855_v11  ;;  %v10149_v60 = vand.u32 4294901760, %v10148_v31 }
 0x502   : > { %9688 = vmatmul.f32.vlgmr.msra.gmra.mxu0 %v13371_v18  ;;  %v8203_v20 = vpop.f32.mrf.mxu3 }
 0x503   : > { %9881 = vmatpush.msra.mxu0 %v13680_v12  ;;  %v8157_v38 = vpop.f32.mrf.mxu1  ;;  %v8181_v5 = vpop.f32.mrf.mxu2 }
 0x504   : > { %v8158_v44 = vadd.f32 %v8157_v38, %v8134_v36 }
 0x506   : > { %v8182_v24 = vadd.f32 %v8181_v5, %v8158_v44  ;;  %9714 = vmatmul.f32.vlgmr.msra.gmra.mxu1 %v13350_v1 }
 0x507   : > { %v8229_v6 = vpop.f32.mrf.mxu0  ;;  %9904 = vmatpush.msra.mxu1 %v13669_v42  ;;  %9860 = vmatmul.f32.vlgmr.msrb.gmra.mxu3 %v13350_v1 }
 0x508   : > { %v8204_v52 = vadd.f32 %v8203_v20, %v8182_v24  ;;  %9834 = vmatmul.f32.vlgmr.msrb.gmra.mxu2 %v13371_v18  ;;  %10050 = vmatpush.msrb.mxu3 %v9973_v27 }
 0x509   : > { %10027 = vmatpush.msrb.mxu2 %v10000_v28 }
 0x50a   : > { %9786 = vmatmul.f32.vlgmr.msrb.gmra.mxu0 %v13350_v1  ;;  %v13728_v12 = vadd.f32 %v8204_v52, %v13268_v9  ;;  %v8303_v42 = vpop.f32.mrf.mxu3  ;;  %v5598_v9 = vadd.f32 %v13303_v29, %v13285_v41 }
 0x50b   : > { %9974 = vmatpush.msrb.mxu0 %v9973_v27  ;;  %v8255_v11 = vpop.f32.mrf.mxu1  ;;  %v8279_v48 = vpop.f32.mrf.mxu2 }
 0x50c   : > { %v8256_v2 = vadd.f32 %v8255_v11, %v8229_v6  ;;  %v5628_v37 = vadd.f32 %v13316_v19, %v5598_v9 }
 0x50e   : > { %v8280_v46 = vadd.f32 %v8279_v48, %v8256_v2  ;;  %9808 = vmatmul.f32.vlgmr.msrb.gmra.mxu1 %v13350_v1 }
 0x50f   : > { %v8327_v10 = vpop.f32.mrf.mxu0  ;;  %10004 = vmatpush.msrb.mxu1 %v10003_v22  ;;  %9954 = vmatmul.f32.vlgmr.msra.gmra.mxu3 %v13350_v1 }
 0x510   : > { %v8304_v45 = vadd.f32 %v8303_v42, %v8280_v46  ;;  %9932 = vmatmul.f32.vlgmr.msra.gmra.mxu2 %v13350_v1  ;;  %10150 = vmatpush.msra.mxu3 %v10149_v60 }
 0x511   : > { %10120 = vmatpush.msra.mxu2 %v13711_v58 }
 0x512   : > { %9884 = vmatmul.f32.vlgmr.msra.gmra.mxu0 %v13359_v59  ;;  %v8328_v40 = vadd.f32 %v8327_v10, %v8304_v45  ;;  %v8401_v8 = vpop.f32.mrf.mxu3 }
 0x513   : > { %10076 = vmatpush.msra.mxu0 %v10001_v34  ;;  %v8349_v14 = vpop.f32.mrf.mxu1  ;;  %v8375_v17 = vpop.f32.mrf.mxu2 }
 0x514   : > { %v8350_v0 = vadd.f32 %v8349_v14, %v8328_v40  ;;  %v8402_v16 = vadd.f32 %v8401_v8, %v8375_v17 }
 0x516   : > { %v13738_v62 = vadd.f32 %v8350_v0, %v5628_v37  ;;  %9908 = vmatmul.f32.vlgmr.msra.gmra.mxu1 %v13363_v15 }
 0x517   : > { %v8425_v3 = vpop.f32.mrf.mxu0  ;;  %10098 = vmatpush.msra.mxu1 %v9973_v27  ;;  %10054 = vmatmul.f32.vlgmr.msrb.gmra.mxu3 %v13363_v15 }
 0x518   : > { %v8426_v63 = vadd.f32 %v8425_v3, %v8402_v16  ;;  %10030 = vmatmul.f32.vlgmr.msrb.gmra.mxu2 %v13359_v59  ;;  %10244 = vmatpush.msrb.mxu3 %v13711_v58 }
 0x519   : > { %10222 = vmatpush.msrb.mxu2 %v10147_v4 }
 0x51a   : > { %9980 = vmatmul.f32.vlgmr.msrb.gmra.mxu0 %v13371_v18  ;;  %v8495_v26 = vpop.f32.mrf.mxu3 }
 0x51b   : > { %10173 = vmatpush.msrb.mxu0 %v10146_v51  ;;  %v8449_v41 = vpop.f32.mrf.mxu1  ;;  %v8473_v29 = vpop.f32.mrf.mxu2 }
 0x51c   : > { %v8450_v19 = vadd.f32 %v8449_v41, %v8426_v63 }
 0x51e   : > { %v8474_v30 = vadd.f32 %v8473_v29, %v8450_v19  ;;  %10006 = vmatmul.f32.vlgmr.msrb.gmra.mxu1 %v13350_v1 }
 0x51f   : > { %v8521_v21 = vpop.f32.mrf.mxu0  ;;  %10196 = vmatpush.msrb.mxu1 %v13711_v58  ;;  %10152 = vmatmul.f32.vlgmr.msra.gmra.mxu3 %v13350_v1 }
 0x520   : > { %v8496_v54 = vadd.f32 %v8495_v26, %v8474_v30  ;;  %10126 = vmatmul.f32.vlgmr.msra.gmra.mxu2 %v13371_v18  ;;  %v6014_v18 = vadd.f32 %v13402_v35, %v13390_v49 }
 0x522   : > { %10078 = vmatmul.f32.vlgmr.msra.gmra.mxu0 %v13350_v1  ;;  %v13751_v50 = vadd.f32 %v8496_v54, %v13354_v55  ;;  %v8595_v7 = vpop.f32.mrf.mxu3  ;;  %v6044_v51 = vadd.f32 %v13418_v23, %v6014_v18  ;;  %v10308_v54 = vadd.f32 1.0, %v13707_v43 }
 0x523   : > { %v8547_v61 = vpop.f32.mrf.mxu1  ;;  %v8571_v33 = vpop.f32.mrf.mxu2 }
 0x524   : > { %v8548_v25 = vadd.f32 %v8547_v61, %v8521_v21 }
 0x526   : > { %v8572_v27 = vadd.f32 %v8571_v33, %v8548_v25  ;;  %10100 = vmatmul.f32.vlgmr.msra.gmra.mxu1 %v13350_v1 }
 0x527   : > { %v8619_v57 = vpop.f32.mrf.mxu0  ;;  %10246 = vmatmul.f32.vlgmr.msrb.gmra.mxu3 %v13350_v1 }
 0x528   : > { %v8596_v36 = vadd.f32 %v8595_v7, %v8572_v27  ;;  %10224 = vmatmul.f32.vlgmr.msrb.gmra.mxu2 %v13350_v1  ;;  %v10324_v27 = vrot.slane %v10308_v54, 1 }
 0x52a   : > { %10176 = vmatmul.f32.vlgmr.msrb.gmra.mxu0 %v13359_v59  ;;  %v8620_v55 = vadd.f32 %v8619_v57, %v8596_v36  ;;  %v8693_v5 = vpop.f32.mrf.mxu3 }
 0x52b   : > { %v8641_v58 = vpop.f32.mrf.mxu1  ;;  %v8667_v28 = vpop.f32.mrf.mxu2 }
 0x52c   : > { %v8642_v38 = vadd.f32 %v8641_v58, %v8620_v55  ;;  %v8694_v44 = vadd.f32 %v8693_v5, %v8667_v28  ;;  %v10340_v28 = vmul.f32 %v10324_v27, %v10308_v54 }
 0x52e   : > { %v13760_v20 = vadd.f32 %v8642_v38, %v6044_v51  ;;  %10200 = vmatmul.f32.vlgmr.msrb.gmra.mxu1 %v13363_v15  ;;  %v6430_v15 = vadd.f32 %v13494_v39, %v13478_v32 }
 0x52f   : > { %v8717_v34 = vpop.f32.mrf.mxu0 }
 0x530   : > { %v8718_v24 = vadd.f32 %v8717_v34, %v8694_v44  ;;  %v6460_v45 = vadd.f32 %v13510_v53, %v6430_v15  ;;  %v10309_v34 = vadd.f32 1.0, %v13728_v12 }
 0x532   : > { %v8787_v4 = vpop.f32.mrf.mxu3 }
 0x533   : > { %v8741_v1 = vpop.f32.mrf.mxu1  ;;  %v8765_v6 = vpop.f32.mrf.mxu2 }
 0x534   : > { %v8742_v59 = vadd.f32 %v8741_v1, %v8718_v24 }
 0x536   : > { %v8766_v52 = vadd.f32 %v8765_v6, %v8742_v59  ;;  %v10325_v59 = vrot.slane %v10309_v34, 1 }
 0x537   : > { %v8813_v49 = vpop.f32.mrf.mxu0 }
 0x538   : > { %v8788_v35 = vadd.f32 %v8787_v4, %v8766_v52 }
 0x53a   : > { %v13764_v47 = vadd.f32 %v8788_v35, %v13451_v56  ;;  %v8887_v31 = vpop.f32.mrf.mxu3 }
 0x53b   : > { %v8839_v23 = vpop.f32.mrf.mxu1  ;;  %v8863_v11 = vpop.f32.mrf.mxu2 }
 0x53c   : > { %v8840_v48 = vadd.f32 %v8839_v23, %v8813_v49  ;;  %v10341_v23 = vmul.f32 %v10325_v59, %v10309_v34  ;;  %v10312_v59 = vadd.f32 1.0, %v13760_v20 }
 0x53e   : > { %v8864_v2 = vadd.f32 %v8863_v11, %v8840_v48 }
 0x53f   : > { %v8911_v42 = vpop.f32.mrf.mxu0 }
 0x540   : > { %v8888_v22 = vadd.f32 %v8887_v31, %v8864_v2 }
 0x542   : > { %v8912_v46 = vadd.f32 %v8911_v42, %v8888_v22  ;;  %v8985_v40 = vpop.f32.mrf.mxu3 }
 0x543   : > { %v8933_v10 = vpop.f32.mrf.mxu1  ;;  %v8959_v60 = vpop.f32.mrf.mxu2 }
 0x544   : > { %v8934_v9 = vadd.f32 %v8933_v10, %v8912_v46  ;;  %v8986_v14 = vadd.f32 %v8985_v40, %v8959_v60 }
 0x546   : > { %v13769_v56 = vadd.f32 %v8934_v9, %v6460_v45 }
 0x547   : > { %v9009_v17 = vpop.f32.mrf.mxu0 }
 0x548   : > { %v9010_v37 = vadd.f32 %v9009_v17, %v8986_v14 }
 0x54a   : > { %v9079_v3 = vpop.f32.mrf.mxu3 }
 0x54b   : > { %v9033_v0 = vpop.f32.mrf.mxu1  ;;  %v9057_v8 = vpop.f32.mrf.mxu2 }
 0x54c   : > { %v9034_v16 = vadd.f32 %v9033_v0, %v9010_v37  ;;  %v10310_v37 = vadd.f32 1.0, %v13738_v62 }
 0x54e   : > { %v9058_v63 = vadd.f32 %v9057_v8, %v9034_v16 }
 0x54f   : > { %v9105_v41 = vpop.f32.mrf.mxu0 }
 0x550   : > { %v9080_v29 = vadd.f32 %v9079_v3, %v9058_v63  ;;  %v10311_v3 = vadd.f32 1.0, %v13751_v50 }
 0x552   : > { %v13772_v32 = vadd.f32 %v9080_v29, %v13543_v13  ;;  %v9179_v26 = vpop.f32.mrf.mxu3 }
 0x553   : > { %v9131_v39 = vpop.f32.mrf.mxu1  ;;  %v9155_v19 = vpop.f32.mrf.mxu2 }
 0x554   : > { %v9132_v53 = vadd.f32 %v9131_v39, %v9105_v41  ;;  %v10326_v39 = vrot.slane %v10310_v37, 1 }
 0x556   : > { %v9156_v30 = vadd.f32 %v9155_v19, %v9132_v53  ;;  %v10342_v54 = vmul.f32 %v10326_v39, %v10310_v37  ;;  %v10394_v37 = vld.sshfl [vmem:[#allocation1 + $0x8] sm:$0xff pattern:$0x75643120] }
 0x557   : > { %v9203_v21 = vpop.f32.mrf.mxu0  ;;  %10402 = vst [vmem:[%s13786_s16 + $0x8] sm:$0x33] %v10394_v37 }
 0x558   : > { %v9180_v61 = vadd.f32 %v9179_v26, %v9156_v30  ;;  %v10327_v26 = vrot.slane %v10311_v3, 1 }
 0x55a   : > { %v9204_v33 = vadd.f32 %v9203_v21, %v9180_v61  ;;  %v9277_v36 = vpop.f32.mrf.mxu3 }
 0x55b   : > { %v9225_v25 = vpop.f32.mrf.mxu1  ;;  %v9251_v7 = vpop.f32.mrf.mxu2 }
 0x55c   : > { %v9226_v57 = vadd.f32 %v9225_v25, %v9204_v33  ;;  %v9278_v18 = vadd.f32 %v9277_v36, %v9251_v7  ;;  %v10343_v7 = vmul.f32 %v10327_v26, %v10311_v3  ;;  %v10395_v3 = vld.sshfl [vmem:[#allocation1 + $0x10] sm:$0xff pattern:$0x75643120] }
 0x55d   : > { %10403 = vst [vmem:[%s13786_s16 + $0x10] sm:$0x33] %v10395_v3 }
 0x55e   : > { %v10356_v55 = vrot.slane %v9226_v57, 1 }
 0x55f   : > { %v9301_v58 = vpop.f32.mrf.mxu0 }
 0x560   : > { %v9302_v13 = vadd.f32 %v9301_v58, %v9278_v18  ;;  %v10372_v51 = vmul.f32 %v10356_v55, %v9226_v57 }
 0x562   : > { %v10380_v38 = vsub.f32 %v10340_v28, %v10372_v51  ;;  %v9371_v43 = vpop.f32.mrf.mxu3 }
 0x563   : > { %v9325_v5 = vpop.f32.mrf.mxu1  ;;  %v9349_v44 = vpop.f32.mrf.mxu2 }
 0x564   : > { %v9326_v24 = vadd.f32 %v9325_v5, %v9302_v13 }
 0x566   : > { %v9350_v1 = vadd.f32 %v9349_v44, %v9326_v24 }
 0x567   : > { %v9397_v6 = vpop.f32.mrf.mxu0 }
 0x568   : > { %v9372_v4 = vadd.f32 %v9371_v43, %v9350_v1 }
 0x56a   : > { %v10357_v52 = vrot.slane %v9372_v4, 1  ;;  %v9471_v31 = vpop.f32.mrf.mxu3 }
 0x56b   : > { %v9423_v49 = vpop.f32.mrf.mxu1  ;;  %v9447_v35 = vpop.f32.mrf.mxu2 }
 0x56c   : > { %v10373_v11 = vmul.f32 %v10357_v52, %v9372_v4  ;;  %v9424_v48 = vadd.f32 %v9423_v49, %v9397_v6 }
 0x56e   : > { %v10381_v2 = vsub.f32 %v10341_v23, %v10373_v11  ;;  %v9448_v42 = vadd.f32 %v9447_v35, %v9424_v48  ;;  %v10313_v35 = vadd.f32 1.0, %v13764_v47 }
 0x56f   : > { %v9495_v22 = vpop.f32.mrf.mxu0 }
 0x570   : > { %v10413_v15 = vrot.slane %v10381_v2, 7  ;;  %v9472_v46 = vadd.f32 %v9471_v31, %v9448_v42  ;;  %v10328_v31 = vrot.slane %v10312_v59, 1 }
 0x572   : > { %v10421_v12 = vsel %vm10420_vm14, %v10380_v38, %v10413_v15  ;;  %v9496_v45 = vadd.f32 %v9495_v22, %v9472_v46  ;;  %v9569_v9 = vpop.f32.mrf.mxu3  ;;  %v10329_v22 = vrot.slane %v10313_v35, 1 }
 0x573   : > { %v9517_v10 = vpop.f32.mrf.mxu1  ;;  %v9543_v60 = vpop.f32.mrf.mxu2 }
 0x574   : > { %v9570_v40 = vadd.f32 %v9569_v9, %v9543_v60  ;;  %v9518_v17 = vadd.f32 %v9517_v10, %v9496_v45  ;;  %v10345_v45 = vmul.f32 %v10329_v22, %v10313_v35 }
 0x576   : > { %v10358_v63 = vrot.slane %v9518_v17, 1 }
 0x577   : > { %v9593_v14 = vpop.f32.mrf.mxu0 }
 0x578   : > { %v9594_v0 = vadd.f32 %v9593_v14, %v9570_v40  ;;  %v10374_v30 = vmul.f32 %v10358_v63, %v9518_v17  ;;  %v10393_v17 = vld.sshfl [vmem:[#allocation1] sm:$0xff pattern:$0x75643120]  ;;  %v10396_v63 = vld.sshfl [vmem:[#allocation1 + $0x18] sm:$0xff pattern:$0x75643120] }
 0x579   : > { %10401 = vst [vmem:[%s13786_s16] sm:$0x33] %v10393_v17 }
 0x57a   : > { %v9663_v29 = vpop.f32.mrf.mxu3  ;;  %v10382_v62 = vsub.f32 %v10342_v54, %v10374_v30  ;;  %10404 = vst [vmem:[%s13786_s16 + $0x18] sm:$0x33] %v10396_v63 }
 0x57b   : > { %v9617_v8 = vpop.f32.mrf.mxu1  ;;  %v9641_v16 = vpop.f32.mrf.mxu2 }
 0x57c   : > { %v9618_v41 = vadd.f32 %v9617_v8, %v9594_v0  ;;  %v10414_v58 = vrot.slane %v10382_v62, 6 }
 0x57e   : > { %v9642_v19 = vadd.f32 %v9641_v16, %v9618_v41 }
 0x57f   : > { %v9689_v53 = vpop.f32.mrf.mxu0 }
 0x580   : > { %v9664_v21 = vadd.f32 %v9663_v29, %v9642_v19 }
 0x582   : > { %v10359_v61 = vrot.slane %v9664_v21, 1  ;;  %v9763_v36 = vpop.f32.mrf.mxu3 }
 0x583   : > { %v9715_v33 = vpop.f32.mrf.mxu1  ;;  %v9739_v25 = vpop.f32.mrf.mxu2 }
 0x584   : > { %v10375_v27 = vmul.f32 %v10359_v61, %v9664_v21  ;;  %v9716_v57 = vadd.f32 %v9715_v33, %v9689_v53 }
 0x586   : > { %v10383_v18 = vsub.f32 %v10343_v7, %v10375_v27  ;;  %v9740_v50 = vadd.f32 %v9739_v25, %v9716_v57  ;;  %v10314_v25 = vadd.f32 1.0, %v13769_v56  ;;  %v10315_v57 = vadd.f32 1.0, %v13772_v32 }
 0x587   : > { %v9787_v55 = vpop.f32.mrf.mxu0 }
 0x588   : > { %v10415_v13 = vrot.slane %v10383_v18, 5  ;;  %v9764_v28 = vadd.f32 %v9763_v36, %v9740_v50 }
 0x58a   : > { %v10423_v51 = vsel %vm10422_vm10, %v10414_v58, %v10415_v13  ;;  %v9788_v34 = vadd.f32 %v9787_v55, %v9764_v28  ;;  %v9861_v24 = vpop.f32.mrf.mxu3  ;;  %v10330_v55 = vrot.slane %v10314_v25, 1  ;;  %v10331_v13 = vrot.slane %v10315_v57, 1 }
 0x58b   : > { %v13779_v38 = vsel %vm10264_vm0, %v10421_v12, %v10423_v51  ;;  %v9809_v5 = vpop.f32.mrf.mxu1  ;;  %v9835_v44 = vpop.f32.mrf.mxu2  ;;  %v10344_v12 = vmul.f32 %v10328_v31, %v10312_v59  ;;  %vm10425_vm0 = vcmask 1044484  }
 0x58c   : > { %v9862_v43 = vadd.f32 %v9861_v24, %v9835_v44  ;;  %v9810_v6 = vadd.f32 %v9809_v5, %v9788_v34  ;;  %v10346_v5 = vmul.f32 %v10330_v55, %v10314_v25  ;;  %v10347_v34 = vmul.f32 %v10331_v13, %v10315_v57 }
 0x58e   : > { %v10360_v23 = vrot.slane %v9810_v6, 1 }
 0x58f   : > { %v9885_v1 = vpop.f32.mrf.mxu0 }
 0x590   : > { %v9886_v4 = vadd.f32 %v9885_v1, %v9862_v43  ;;  %v10376_v15 = vmul.f32 %v10360_v23, %v9810_v6 }
 0x592   : > { %v9955_v48 = vpop.f32.mrf.mxu3  ;;  %v10384_v9 = vsub.f32 %v10344_v12, %v10376_v15 }
 0x593   : > { %v9909_v52 = vpop.f32.mrf.mxu1  ;;  %v9933_v49 = vpop.f32.mrf.mxu2 }
 0x594   : > { %v9910_v11 = vadd.f32 %v9909_v52, %v9886_v4  ;;  %v10416_v41 = vrot.slane %v10384_v9, 4 }
 0x596   : > { %v9934_v2 = vadd.f32 %v9933_v49, %v9910_v11 }
 0x597   : > { %v9981_v42 = vpop.f32.mrf.mxu0 }
 0x598   : > { %v9956_v46 = vadd.f32 %v9955_v48, %v9934_v2 }
 0x59a   : > { %v10361_v10 = vrot.slane %v9956_v46, 1  ;;  %v10055_v14 = vpop.f32.mrf.mxu3 }
 0x59b   : > { %v10007_v20 = vpop.f32.mrf.mxu1  ;;  %v10031_v60 = vpop.f32.mrf.mxu2 }
 0x59c   : > { %v10377_v40 = vmul.f32 %v10361_v10, %v9956_v46  ;;  %v10008_v47 = vadd.f32 %v10007_v20, %v9981_v42 }
 0x59e   : > { %v10385_v0 = vsub.f32 %v10345_v45, %v10377_v40  ;;  %v10032_v8 = vadd.f32 %v10031_v60, %v10008_v47 }
 0x59f   : > { %v10079_v16 = vpop.f32.mrf.mxu0 }
 0x5a0   : > { %v10417_v29 = vrot.slane %v10385_v0, 3  ;;  %v10056_v39 = vadd.f32 %v10055_v14, %v10032_v8 }
 0x5a2   : > { %v10426_v19 = vsel %vm10425_vm0, %v10416_v41, %v10417_v29  ;;  %v10080_v30 = vadd.f32 %v10079_v16, %v10056_v39  ;;  %v10153_v21 = vpop.f32.mrf.mxu3 }
 0x5a3   : > { %v10101_v53 = vpop.f32.mrf.mxu1  ;;  %v10127_v26 = vpop.f32.mrf.mxu2 }
 0x5a4   : > { %v10154_v54 = vadd.f32 %v10153_v21, %v10127_v26  ;;  %v10102_v33 = vadd.f32 %v10101_v53, %v10080_v30 }
 0x5a6   : > { %v10362_v36 = vrot.slane %v10102_v33, 1 }
 0x5a7   : > { %v10177_v61 = vpop.f32.mrf.mxu0 }
 0x5a8   : > { %v10178_v7 = vadd.f32 %v10177_v61, %v10154_v54  ;;  %v10378_v28 = vmul.f32 %v10362_v36, %v10102_v33 }
 0x5aa   : > { %v10247_v50 = vpop.f32.mrf.mxu3  ;;  %v10386_v56 = vsub.f32 %v10346_v5, %v10378_v28 }
 0x5ab   : > { %v10201_v62 = vpop.f32.mrf.mxu1  ;;  %v10225_v27 = vpop.f32.mrf.mxu2 }
 0x5ac   : > { %v10202_v18 = vadd.f32 %v10201_v62, %v10178_v7  ;;  %v10418_v43 = vrot.slane %v10386_v56, 2 }
 0x5ae   : > { %v10226_v58 = vadd.f32 %v10225_v27, %v10202_v18 }
 0x5b0   : > { %v10248_v51 = vadd.f32 %v10247_v50, %v10226_v58 }
 0x5b2   : > { %v10363_v44 = vrot.slane %v10248_v51, 1 }
 0x5b4   : > { %v10379_v24 = vmul.f32 %v10363_v44, %v10248_v51 }
 0x5b6   : > { %v10387_v32 = vsub.f32 %v10347_v34, %v10379_v24 }
 0x5b8   : > { %v10419_v1 = vrot.slane %v10387_v32, 1 }
 0x5ba   : > { %v10428_v6 = vsel %vm10427_vm6, %v10418_v43, %v10419_v1 }
 0x5bb   : > { %v10429_v59 = vsel %vm10266_vm3, %v10426_v19, %v10428_v6 }
 0x5bc   : > { %v10430_v4 = vsel %vm14228_vm13, %v13779_v38, %v10429_v59 }
 0x5bd   : > { %10565 = vst [vmem:[%s13786_s16 + $0x2] ss:$4 sm:$0xff] %v10430_v4 }
 0x5be   : > { %10648 = shalt.err (!%p10645_p3)
}
 0x5bf   : > { %10572 = dma.vmem_to_hbm [thread:$0]  (%p10760_p5), %s10449_s30, 512, %s10451_s6, %s10435_s22  }
 0x5c0 PF: > { %p10578_p4 = scmp.ge.s32.totalorder %s10683_s21, 2  ;;  %s10462_s11 = sand.u32 1, %s10671_s18  }
 0x5c1   : > { %s10463_s15 = scalar_lea.sflag [#allocation3], %s10462_s11 }
 0x5c2   : > { %p10575_p7 = pnand %p10578_p4, %p10764_p6 }
 0x5c4   : > { %p10576_p8 = pneg %p10575_p7 }
 0x5c6   : > { %10666 = dma.done.wait (%p10576_p8), %s10463_s15, 512  }
 0x5c7   : > { %10668 = vsyncadd (%p10576_p8), %s10463_s15, 4294966784  ;;  %p15_p9 = scmp.ge.s32.totalorder %s10747_s24, 4   ;;  %s14229_s18 = smov %s10675_s19 }
 0x5c8   : > { %s14230_s19 = smov %s10679_s20  ;;  %s14231_s20 = smov %s10758_s27 }
 0x5c9   : > { %s14232_s21 = smov %s10747_s24  ;;  %17 = sbr.rel (!%p15_p9) target bundleno = 3 (0x3), region = 77 }
 0x5ce   :  { %10469 = vsyncpa [#allocation3], 1 }
 0x5cf   :  { %10471 = vsyncpa [#allocation3 + $0x1], 1 }

</bundles_post_ra>
